<compile_context>
chip_gen: v7x
topology: tpu7x:2x2x1
jax: 0.10.0
libtpu: 0.0.40
codegen_flags: <defaults>
</compile_context>

<pallas_src>
import numpy as np
import jax
import jax.numpy as jnp
from jax.experimental import pallas as pl
from jax.experimental.pallas import tpu as pltpu


def cnn_kernel(x_ref, p_ref, pt_ref, w1_ref, b1_ref, w2_ref, b2_ref,
               wf1_ref, bf1_ref, wf2_ref, bf2_ref, out_ref):
    f32 = jnp.float32

    # avg_pool2d(10, stride=10) + channel-3 pick + /127.5 scale, folded into two matmuls.
    # Re-associated (column pool first) so the big K=1120 contraction feeds a skinny
    # (280,32) result instead of a (28,1120) one.
    colpool = jnp.dot(x_ref[...], pt_ref[...], preferred_element_type=f32)   # (280, 32)
    ps = jnp.dot(p_ref[...], colpool, preferred_element_type=f32)            # (28, 32)

    # conv1 (1->3 ch, 19x19, VALID): im2col along lanes -> single fat-K matmul.
    # L1 block kh (cols kh*32 : kh*32+32) lines up with W1 rows kh*32 : kh*32+32.
    l1 = jnp.concatenate([ps[kh:kh + 10, :] for kh in range(19)], axis=1)    # (10, 608)
    acc1 = jnp.dot(l1, w1_ref[...], preferred_element_type=f32)              # (10, 32)
    h1 = jnp.maximum(acc1 + b1_ref[...], 0.0)          # layout [oh, oc*10 + ow]

    # conv2 (3->5 ch, 8x8, VALID): same fusion -> single (3,256)@(256,16) matmul.
    l2 = jnp.concatenate([h1[kh:kh + 3, :] for kh in range(8)], axis=1)      # (3, 256)
    acc2 = jnp.dot(l2, w2_ref[...], preferred_element_type=f32)              # (3, 16)
    h2 = jnp.maximum(acc2 + b2_ref[...], 0.0)           # layout [oh, oc*3 + ow]

    # FC1 (45 -> 20): torch's .view(-1,45) flatten folded into the permuted weight blocks;
    # the three per-row dots fused into one (1,48)@(48,20).
    lf = jnp.concatenate([h2[0:1, :], h2[1:2, :], h2[2:3, :]], axis=1)       # (1, 48)
    f1 = jnp.maximum(jnp.dot(lf, wf1_ref[...], preferred_element_type=f32)
                     + bf1_ref[...], 0.0)                                    # (1, 20)

    # FC2 (20 -> 10) + softmax over lanes (torch F.softmax default dim=1 on 2-D input)
    logits = jnp.dot(f1, wf2_ref[...], preferred_element_type=f32) + bf2_ref[...]
    m = jnp.max(logits, axis=-1, keepdims=True)
    e = jnp.exp(logits - m)
    out_ref[...] = e / jnp.sum(e, axis=-1, keepdims=True)                    # (1, 10)


def init_params(key):
    """Deterministic PyTorch-default-style init (uniform +-1/sqrt(fan_in))."""
    ks = jax.random.split(key, 8)

    def u(k, shape, fan_in):
        b = 1.0 / np.sqrt(fan_in)
        return jax.random.uniform(k, shape, jnp.float32, -b, b)

    return {
        "w_conv1": u(ks[0], (3, 1, 19, 19), 1 * 19 * 19),
        "b_conv1": u(ks[1], (3,), 1 * 19 * 19),
        "w_conv2": u(ks[2], (5, 3, 8, 8), 3 * 8 * 8),
        "b_conv2": u(ks[3], (5,), 3 * 8 * 8),
        "w_fc1":   u(ks[4], (20, 45), 45),
        "b_fc1":   u(ks[5], (20,), 45),
        "w_fc2":   u(ks[6], (10, 20), 20),
        "b_fc2":   u(ks[7], (10,), 20),
    }


def pack_params(params):
    """Host-side, one-time packing: fold channel-pick / normalization / conv banding /
    flatten permutation into sublane-aligned matmul weights."""
    w1 = np.asarray(params["w_conv1"], np.float32)     # (3,1,19,19)
    b1 = np.asarray(params["b_conv1"], np.float32)
    w2 = np.asarray(params["w_conv2"], np.float32)     # (5,3,8,8)
    b2 = np.asarray(params["b_conv2"], np.float32)
    fc1w = np.asarray(params["w_fc1"], np.float32)     # (20,45)
    fc1b = np.asarray(params["b_fc1"], np.float32)
    fc2w = np.asarray(params["w_fc2"], np.float32)     # (10,20)
    fc2b = np.asarray(params["b_fc2"], np.float32)

    # Row-pooling matrix with the ((x/255)-0.5)/0.5 scale folded in (the "-1" offset is
    # folded into conv1's bias below).
    P = (np.kron(np.eye(28, dtype=np.float32), np.ones((1, 10), np.float32))
         / (10.0 * 127.5)).astype(np.float32)                      # (28, 280)

    # Column-pooling matrix extended over the interleaved RGBA width (280*4), so the
    # channel-3 extraction happens inside the matmul; padded to 32 output columns.
    Pt = np.zeros((280 * 4, 32), np.float32)
    for j in range(28):
        for b in range(10 * j, 10 * j + 10):
            Pt[b * 4 + 3, j] = 0.1

    # conv1 banded weights, one sublane-aligned (32, 32) block per kh:
    #   W1[kh*32 + (ow+kw), oc*10 + ow] = w1[oc, 0, kh, kw]
    W1 = np.zeros((19 * 32, 32), np.float32)
    for oc in range(3):
        for kh in range(19):
            for kw in range(19):
                for ow in range(10):
                    W1[kh * 32 + ow + kw, oc * 10 + ow] = w1[oc, 0, kh, kw]
    # conv1 bias with the "-1" normalization offset folded in
    b1_adj = b1 - w1.reshape(3, -1).sum(axis=1)
    B1 = np.zeros((1, 32), np.float32)
    B1[0, :30] = np.repeat(b1_adj, 10)

    # conv2 banded weights with the input-channel loop folded in, one (32, 16) block per kh:
    #   W2[kh*32 + ic*10 + (ow+kw), oc*3 + ow] = w2[oc, ic, kh, kw]
    W2 = np.zeros((8 * 32, 16), np.float32)
    for oc in range(5):
        for ic in range(3):
            for kh in range(8):
                for kw in range(8):
                    for ow in range(3):
                        W2[kh * 32 + ic * 10 + ow + kw, oc * 3 + ow] = w2[oc, ic, kh, kw]
    B2 = np.zeros((1, 16), np.float32)
    B2[0, :15] = np.repeat(b2, 3)

    # FC1 weights permuted so the [oh, oc*3+ow] conv2 layout matches torch's C,H,W-ordered
    # .view(-1, 45); one aligned (16, 20) block per output row oh.
    WF1 = np.zeros((3 * 16, 20), np.float32)
    for oh in range(3):
        for oc in range(5):
            for ow in range(3):
                WF1[oh * 16 + oc * 3 + ow, :] = fc1w[:, oc * 9 + oh * 3 + ow]
    BF1 = fc1b.reshape(1, 20).astype(np.float32)

    WF2 = fc2w.T.copy()                                # (20, 10)
    BF2 = fc2b.reshape(1, 10).astype(np.float32)

    return (P, Pt, W1, B1, W2, B2, WF1, BF1, WF2, BF2)


@jax.jit
def cnn_forward(x, p, pt, w1, b1, w2, b2, wf1, bf1, wf2, bf2):
    # torch's reshape(280, 280, 4) viewed as a flat (280, 1120) row-major plane; the
    # narrow(dim=2, start=3) channel pick is folded into `pt` inside the kernel, so the
    # whole forward is a single pallas_call with no extra slice op.
    x2d = jnp.reshape(x, (280, 280 * 4)).astype(jnp.float32)
    args = (x2d, p, pt, w1, b1, w2, b2, wf1, bf1, wf2, bf2)

    vmem = pl.BlockSpec(memory_space=pltpu.MemorySpace.VMEM)
    return pl.pallas_call(
        cnn_kernel,
        out_shape=jax.ShapeDtypeStruct((1, 10), jnp.float32),
        in_specs=[vmem] * len(args),
        out_specs=vmem,
    )(*args)


def reference_forward(x, params):
    """Pure-JAX reference mirroring the torch forward, for correctness checking."""
    xp = jnp.reshape(x, (280, 280, 4))[:, :, 3].reshape(1, 1, 280, 280).astype(jnp.float32)
    pooled = xp.reshape(1, 1, 28, 10, 28, 10).mean(axis=(3, 5))
    xn = ((pooled / 255.0) - 0.5) / 0.5
    c1 = jax.lax.conv_general_dilated(xn, params["w_conv1"], (1, 1), "VALID",
                                      dimension_numbers=("NCHW", "OIHW", "NCHW"))
    c1 = jax.nn.relu(c1 + params["b_conv1"].reshape(1, 3, 1, 1))
    c2 = jax.lax.conv_general_dilated(c1, params["w_conv2"], (1, 1), "VALID",
                                      dimension_numbers=("NCHW", "OIHW", "NCHW"))
    c2 = jax.nn.relu(c2 + params["b_conv2"].reshape(1, 5, 1, 1))
    v = c2.reshape(-1, 45)
    f1 = jax.nn.relu(v @ params["w_fc1"].T + params["b_fc1"])
    logits = f1 @ params["w_fc2"].T + params["b_fc2"]
    return jax.nn.softmax(logits, axis=1)


if __name__ == "__main__":
    key = jax.random.PRNGKey(0)
    kx, kp = jax.random.split(key)

    # input: 280x280 RGBA-like image, values in [0, 255)  (shape dictated by the module)
    x = jax.random.uniform(kx, (280, 280, 4), jnp.float32, 0.0, 255.0)

    params = init_params(kp)
    # device-resident packed weights, uploaded once (outside the per-call path)
    packed = tuple(jnp.asarray(a) for a in pack_params(params))

    out = cnn_forward(x, *packed)
    out = jax.block_until_ready(out)

    assert out.shape == (1, 10)
    ref = np.asarray(jax.block_until_ready(reference_forward(x, params)))
    np.testing.assert_allclose(np.asarray(out), ref, rtol=1e-4, atol=1e-4)
    np.testing.assert_allclose(float(np.asarray(out).sum()), 1.0, rtol=1e-5)

    print("KERNEL_OK")
</pallas_src>

<mosaic_0001>
module attributes {stable_mosaic.version = 11 : i64} {
  func.func @cnn_kernel(%arg0: memref<280x1120xf32, #tpu.memory_space<vmem>>, %arg1: memref<28x280xf32, #tpu.memory_space<vmem>>, %arg2: memref<1120x32xf32, #tpu.memory_space<vmem>>, %arg3: memref<608x32xf32, #tpu.memory_space<vmem>>, %arg4: memref<1x32xf32, #tpu.memory_space<vmem>>, %arg5: memref<256x16xf32, #tpu.memory_space<vmem>>, %arg6: memref<1x16xf32, #tpu.memory_space<vmem>>, %arg7: memref<48x20xf32, #tpu.memory_space<vmem>>, %arg8: memref<1x20xf32, #tpu.memory_space<vmem>>, %arg9: memref<20x10xf32, #tpu.memory_space<vmem>>, %arg10: memref<1x10xf32, #tpu.memory_space<vmem>>, %arg11: memref<1x10xf32, #tpu.memory_space<vmem>>) attributes {dimension_semantics = [], scalar_prefetch = 0 : i64, scratch_operands = 0 : i64, tpu.core_type = #tpu.core_type<tc>} {
    %c0 = arith.constant 0 : index
    %c0_0 = arith.constant 0 : index
    %0 = vector.load %arg0[%c0, %c0_0] : memref<280x1120xf32, #tpu.memory_space<vmem>>, vector<280x1120xf32>
    %c0_1 = arith.constant 0 : index
    %c0_2 = arith.constant 0 : index
    %1 = vector.load %arg2[%c0_1, %c0_2] : memref<1120x32xf32, #tpu.memory_space<vmem>>, vector<1120x32xf32>
    %cst = arith.constant dense<0.000000e+00> : vector<280x32xf32>
    %2 = tpu.matmul %0, %1, %cst {dimension_numbers = #tpu.dot_dimension_numbers<[1], [0], [0], [1], [0, 0, 1, 1], [], []>} : vector<280x1120xf32>, vector<1120x32xf32>, vector<280x32xf32> -> vector<280x32xf32>
    %c0_3 = arith.constant 0 : index
    %c0_4 = arith.constant 0 : index
    %3 = vector.load %arg1[%c0_3, %c0_4] : memref<28x280xf32, #tpu.memory_space<vmem>>, vector<28x280xf32>
    %cst_5 = arith.constant dense<0.000000e+00> : vector<28x32xf32>
    %4 = tpu.matmul %3, %2, %cst_5 {dimension_numbers = #tpu.dot_dimension_numbers<[1], [0], [0], [1], [0, 0, 1, 1], [], []>} : vector<28x280xf32>, vector<280x32xf32>, vector<28x32xf32> -> vector<28x32xf32>
    %5 = vector.extract_strided_slice %4 {offsets = [0, 0], sizes = [10, 32], strides = [1, 1]} : vector<28x32xf32> to vector<10x32xf32>
    %6 = vector.extract_strided_slice %4 {offsets = [1, 0], sizes = [10, 32], strides = [1, 1]} : vector<28x32xf32> to vector<10x32xf32>
    %7 = vector.extract_strided_slice %4 {offsets = [2, 0], sizes = [10, 32], strides = [1, 1]} : vector<28x32xf32> to vector<10x32xf32>
    %8 = vector.extract_strided_slice %4 {offsets = [3, 0], sizes = [10, 32], strides = [1, 1]} : vector<28x32xf32> to vector<10x32xf32>
    %9 = vector.extract_strided_slice %4 {offsets = [4, 0], sizes = [10, 32], strides = [1, 1]} : vector<28x32xf32> to vector<10x32xf32>
    %10 = vector.extract_strided_slice %4 {offsets = [5, 0], sizes = [10, 32], strides = [1, 1]} : vector<28x32xf32> to vector<10x32xf32>
    %11 = vector.extract_strided_slice %4 {offsets = [6, 0], sizes = [10, 32], strides = [1, 1]} : vector<28x32xf32> to vector<10x32xf32>
    %12 = vector.extract_strided_slice %4 {offsets = [7, 0], sizes = [10, 32], strides = [1, 1]} : vector<28x32xf32> to vector<10x32xf32>
    %13 = vector.extract_strided_slice %4 {offsets = [8, 0], sizes = [10, 32], strides = [1, 1]} : vector<28x32xf32> to vector<10x32xf32>
    %14 = vector.extract_strided_slice %4 {offsets = [9, 0], sizes = [10, 32], strides = [1, 1]} : vector<28x32xf32> to vector<10x32xf32>
    %15 = vector.extract_strided_slice %4 {offsets = [10, 0], sizes = [10, 32], strides = [1, 1]} : vector<28x32xf32> to vector<10x32xf32>
    %16 = vector.extract_strided_slice %4 {offsets = [11, 0], sizes = [10, 32], strides = [1, 1]} : vector<28x32xf32> to vector<10x32xf32>
    %17 = vector.extract_strided_slice %4 {offsets = [12, 0], sizes = [10, 32], strides = [1, 1]} : vector<28x32xf32> to vector<10x32xf32>
    %18 = vector.extract_strided_slice %4 {offsets = [13, 0], sizes = [10, 32], strides = [1, 1]} : vector<28x32xf32> to vector<10x32xf32>
    %19 = vector.extract_strided_slice %4 {offsets = [14, 0], sizes = [10, 32], strides = [1, 1]} : vector<28x32xf32> to vector<10x32xf32>
    %20 = vector.extract_strided_slice %4 {offsets = [15, 0], sizes = [10, 32], strides = [1, 1]} : vector<28x32xf32> to vector<10x32xf32>
    %21 = vector.extract_strided_slice %4 {offsets = [16, 0], sizes = [10, 32], strides = [1, 1]} : vector<28x32xf32> to vector<10x32xf32>
    %22 = vector.extract_strided_slice %4 {offsets = [17, 0], sizes = [10, 32], strides = [1, 1]} : vector<28x32xf32> to vector<10x32xf32>
    %23 = vector.extract_strided_slice %4 {offsets = [18, 0], sizes = [10, 32], strides = [1, 1]} : vector<28x32xf32> to vector<10x32xf32>
    %24 = tpu.concatenate %5, %6, %7, %8, %9, %10, %11, %12, %13, %14, %15, %16, %17, %18, %19, %20 in 1 : vector<10x32xf32>, vector<10x32xf32>, vector<10x32xf32>, vector<10x32xf32>, vector<10x32xf32>, vector<10x32xf32>, vector<10x32xf32>, vector<10x32xf32>, vector<10x32xf32>, vector<10x32xf32>, vector<10x32xf32>, vector<10x32xf32>, vector<10x32xf32>, vector<10x32xf32>, vector<10x32xf32>, vector<10x32xf32> -> vector<10x512xf32>
    %25 = tpu.concatenate %21, %22, %23 in 1 : vector<10x32xf32>, vector<10x32xf32>, vector<10x32xf32> -> vector<10x96xf32>
    %26 = tpu.concatenate %24, %25 in 1 : vector<10x512xf32>, vector<10x96xf32> -> vector<10x608xf32>
    %c0_6 = arith.constant 0 : index
    %c0_7 = arith.constant 0 : index
    %27 = vector.load %arg3[%c0_6, %c0_7] : memref<608x32xf32, #tpu.memory_space<vmem>>, vector<608x32xf32>
    %cst_8 = arith.constant dense<0.000000e+00> : vector<10x32xf32>
    %28 = tpu.matmul %26, %27, %cst_8 {dimension_numbers = #tpu.dot_dimension_numbers<[1], [0], [0], [1], [0, 0, 1, 1], [], []>} : vector<10x608xf32>, vector<608x32xf32>, vector<10x32xf32> -> vector<10x32xf32>
    %c0_9 = arith.constant 0 : index
    %c0_10 = arith.constant 0 : index
    %29 = vector.load %arg4[%c0_9, %c0_10] : memref<1x32xf32, #tpu.memory_space<vmem>>, vector<1x32xf32>
    %30 = vector.broadcast %29 : vector<1x32xf32> to vector<10x32xf32>
    %31 = arith.addf %28, %30 : vector<10x32xf32>
    %cst_11 = arith.constant 0.000000e+00 : f32
    %32 = vector.broadcast %cst_11 : f32 to vector<10x32xf32>
    %33 = arith.maximumf %31, %32 : vector<10x32xf32>
    %34 = vector.extract_strided_slice %33 {offsets = [0, 0], sizes = [3, 32], strides = [1, 1]} : vector<10x32xf32> to vector<3x32xf32>
    %35 = vector.extract_strided_slice %33 {offsets = [1, 0], sizes = [3, 32], strides = [1, 1]} : vector<10x32xf32> to vector<3x32xf32>
    %36 = vector.extract_strided_slice %33 {offsets = [2, 0], sizes = [3, 32], strides = [1, 1]} : vector<10x32xf32> to vector<3x32xf32>
    %37 = vector.extract_strided_slice %33 {offsets = [3, 0], sizes = [3, 32], strides = [1, 1]} : vector<10x32xf32> to vector<3x32xf32>
    %38 = vector.extract_strided_slice %33 {offsets = [4, 0], sizes = [3, 32], strides = [1, 1]} : vector<10x32xf32> to vector<3x32xf32>
    %39 = vector.extract_strided_slice %33 {offsets = [5, 0], sizes = [3, 32], strides = [1, 1]} : vector<10x32xf32> to vector<3x32xf32>
    %40 = vector.extract_strided_slice %33 {offsets = [6, 0], sizes = [3, 32], strides = [1, 1]} : vector<10x32xf32> to vector<3x32xf32>
    %41 = vector.extract_strided_slice %33 {offsets = [7, 0], sizes = [3, 32], strides = [1, 1]} : vector<10x32xf32> to vector<3x32xf32>
    %42 = tpu.concatenate %34, %35, %36, %37, %38, %39, %40, %41 in 1 : vector<3x32xf32>, vector<3x32xf32>, vector<3x32xf32>, vector<3x32xf32>, vector<3x32xf32>, vector<3x32xf32>, vector<3x32xf32>, vector<3x32xf32> -> vector<3x256xf32>
    %c0_12 = arith.constant 0 : index
    %c0_13 = arith.constant 0 : index
    %43 = vector.load %arg5[%c0_12, %c0_13] : memref<256x16xf32, #tpu.memory_space<vmem>>, vector<256x16xf32>
    %cst_14 = arith.constant dense<0.000000e+00> : vector<3x16xf32>
    %44 = tpu.matmul %42, %43, %cst_14 {dimension_numbers = #tpu.dot_dimension_numbers<[1], [0], [0], [1], [0, 0, 1, 1], [], []>} : vector<3x256xf32>, vector<256x16xf32>, vector<3x16xf32> -> vector<3x16xf32>
    %c0_15 = arith.constant 0 : index
    %c0_16 = arith.constant 0 : index
    %45 = vector.load %arg6[%c0_15, %c0_16] : memref<1x16xf32, #tpu.memory_space<vmem>>, vector<1x16xf32>
    %46 = vector.broadcast %45 : vector<1x16xf32> to vector<3x16xf32>
    %47 = arith.addf %44, %46 : vector<3x16xf32>
    %cst_17 = arith.constant 0.000000e+00 : f32
    %48 = vector.broadcast %cst_17 : f32 to vector<3x16xf32>
    %49 = arith.maximumf %47, %48 : vector<3x16xf32>
    %50 = vector.extract_strided_slice %49 {offsets = [0, 0], sizes = [1, 16], strides = [1, 1]} : vector<3x16xf32> to vector<1x16xf32>
    %51 = vector.extract_strided_slice %49 {offsets = [1, 0], sizes = [1, 16], strides = [1, 1]} : vector<3x16xf32> to vector<1x16xf32>
    %52 = vector.extract_strided_slice %49 {offsets = [2, 0], sizes = [1, 16], strides = [1, 1]} : vector<3x16xf32> to vector<1x16xf32>
    %53 = tpu.concatenate %50, %51, %52 in 1 : vector<1x16xf32>, vector<1x16xf32>, vector<1x16xf32> -> vector<1x48xf32>
    %c0_18 = arith.constant 0 : index
    %c0_19 = arith.constant 0 : index
    %54 = vector.load %arg7[%c0_18, %c0_19] : memref<48x20xf32, #tpu.memory_space<vmem>>, vector<48x20xf32>
    %cst_20 = arith.constant dense<0.000000e+00> : vector<1x20xf32>
    %55 = tpu.matmul %53, %54, %cst_20 {dimension_numbers = #tpu.dot_dimension_numbers<[1], [0], [0], [1], [0, 0, 1, 1], [], []>} : vector<1x48xf32>, vector<48x20xf32>, vector<1x20xf32> -> vector<1x20xf32>
    %c0_21 = arith.constant 0 : index
    %c0_22 = arith.constant 0 : index
    %56 = vector.load %arg8[%c0_21, %c0_22] : memref<1x20xf32, #tpu.memory_space<vmem>>, vector<1x20xf32>
    %57 = arith.addf %55, %56 : vector<1x20xf32>
    %cst_23 = arith.constant 0.000000e+00 : f32
    %58 = vector.broadcast %cst_23 : f32 to vector<1x20xf32>
    %59 = arith.maximumf %57, %58 : vector<1x20xf32>
    %c0_24 = arith.constant 0 : index
    %c0_25 = arith.constant 0 : index
    %60 = vector.load %arg9[%c0_24, %c0_25] : memref<20x10xf32, #tpu.memory_space<vmem>>, vector<20x10xf32>
    %cst_26 = arith.constant dense<0.000000e+00> : vector<1x10xf32>
    %61 = tpu.matmul %59, %60, %cst_26 {dimension_numbers = #tpu.dot_dimension_numbers<[1], [0], [0], [1], [0, 0, 1, 1], [], []>} : vector<1x20xf32>, vector<20x10xf32>, vector<1x10xf32> -> vector<1x10xf32>
    %c0_27 = arith.constant 0 : index
    %c0_28 = arith.constant 0 : index
    %62 = vector.load %arg10[%c0_27, %c0_28] : memref<1x10xf32, #tpu.memory_space<vmem>>, vector<1x10xf32>
    %63 = arith.addf %61, %62 : vector<1x10xf32>
    %cst_29 = arith.constant dense<0xFF800000> : vector<1xf32>
    %64 = vector.multi_reduction <maximumf>, %63, %cst_29 [1] : vector<1x10xf32> to vector<1xf32>
    %65 = vector.shape_cast %64 : vector<1xf32> to vector<1x1xf32>
    %66 = vector.broadcast %65 : vector<1x1xf32> to vector<1x10xf32>
    %67 = arith.subf %63, %66 : vector<1x10xf32>
    %68 = math.exp %67 : vector<1x10xf32>
    %cst_30 = arith.constant dense<0.000000e+00> : vector<1xf32>
    %69 = vector.multi_reduction <add>, %68, %cst_30 [1] : vector<1x10xf32> to vector<1xf32>
    %70 = vector.shape_cast %69 : vector<1xf32> to vector<1x1xf32>
    %71 = vector.broadcast %70 : vector<1x1xf32> to vector<1x10xf32>
    %72 = arith.divf %68, %71 : vector<1x10xf32>
    %c0_31 = arith.constant 0 : index
    %c0_32 = arith.constant 0 : index
    %73 = vector.load %arg11[%c0_31, %c0_32] : memref<1x10xf32, #tpu.memory_space<vmem>>, vector<1x10xf32>
    tpu.vector_store %arg11[%c0_31, %c0_32], %72 {strides = array<i32>} : memref<1x10xf32, #tpu.memory_space<vmem>>, vector<1x10xf32>,
    return
  }
}

</mosaic_0001>

<bundles_post_ra>
// kernel: cnn_forward.1
= control target key start
LH: loop header
LB: loop body
LE: loop exit
PB: predicated region body
PF: predicated region fallthrough
CT: control target
= control target key end

     0   :  { %v6504_v3 = vmov 0.0|0.0   ;;  %s6490_s0 = inlined_call_operand.vmem [shape: f32[280,1120], index: 0, kind: input, shape index: {}]   ;;  %s6491_s1 = inlined_call_operand.vmem [shape: f32[28,280], index: 1, kind: input, shape index: {}]   ;;  %s6492_s2 = inlined_call_operand.vmem [shape: f32[1120,32], index: 2, kind: input, shape index: {}]   ;;  %s6493_s3 = inlined_call_operand.vmem [shape: f32[608,32], index: 3, kind: input, shape index: {}]   ;;  %s6494_s4 = inlined_call_operand.vmem [shape: f32[1,32], index: 4, kind: input, shape index: {}]   ;;  %s6495_s5 = inlined_call_operand.vmem [shape: f32[256,16], index: 5, kind: input, shape index: {}]   ;;  %s6496_s6 = inlined_call_operand.vmem [shape: f32[1,16], index: 6, kind: input, shape index: {}]   ;;  %s6497_s7 = inlined_call_operand.vmem [shape: f32[48,20], index: 7, kind: input, shape index: {}]   ;;  %s6498_s8 = inlined_call_operand.vmem [shape: f32[1,20], index: 8, kind: input, shape index: {}]   ;;  %s6499_s9 = inlined_call_operand.vmem [shape: f32[20,10], index: 9, kind: input, shape index: {}]   ;;  %s6500_s10 = inlined_call_operand.vmem [shape: f32[1,10], index: 10, kind: input, shape index: {}]   ;;  %s6501_s11 = inlined_call_operand.hbm [shape: f32[1,10], index: 11, kind: output, shape index: {}]  }
   0x1   :  { %v386_v0 = vld [vmem:[%s6492_s2 + $0x100] sm:$0xff]  ;;  %v387_v1 = vld [vmem:[%s6492_s2 + $0x108] sm:$0xff]  ;;  %v388_v2 = vld [vmem:[%s6492_s2 + $0x110] sm:$0xff]  ;;  %3348 = vmatprep.subr.bf16.mxu0 %v6504_v3  ;;  %3300 = vmatprep.subr.bf16.mxu1 %v6504_v3 }
   0x2   :  { %v3349_v4 = vpack.c.bf16 %v387_v1, %v386_v0  ;;  %v389_v5 = vld [vmem:[%s6492_s2 + $0x118] sm:$0xff]  ;;  %v390_v7 = vld [vmem:[%s6492_s2 + $0x120] sm:$0xff]  ;;  %v391_v8 = vld [vmem:[%s6492_s2 + $0x128] sm:$0xff] }
   0x3   :  { %v3352_v6 = vpack.c.bf16 %v389_v5, %v388_v2  ;;  %v3355_v9 = vpack.c.bf16 %v391_v8, %v390_v7  ;;  %v392_v10 = vld [vmem:[%s6492_s2 + $0x130] sm:$0xff]  ;;  %v393_v11 = vld [vmem:[%s6492_s2 + $0x138] sm:$0xff]  ;;  %v394_v14 = vld [vmem:[%s6492_s2 + $0x140] sm:$0xff] }
   0x4   :  { %3350 = vmatpush1.bf16.msra.mxu0 %v3349_v4  ;;  %v42_v12 = vld [vmem:[%s6490_s0 + $0x18] sm:$0xff]  ;;  %v3358_v13 = vpack.c.bf16 %v393_v11, %v392_v10  ;;  %v395_v15 = vld [vmem:[%s6492_s2 + $0x148] sm:$0xff]  ;;  %v396_v17 = vld [vmem:[%s6492_s2 + $0x150] sm:$0xff] }
   0x5   :  { %3351 = vmatprep.subr.bf16.mxu0 %v6504_v3  ;;  %904 = vmatprep.mubr.f32.mxu0 %v42_v12  ;;  %v3361_v16 = vpack.c.bf16 %v395_v15, %v394_v14  ;;  %v397_v18 = vld [vmem:[%s6492_s2 + $0x158] sm:$0xff]  ;;  %v398_v20 = vld [vmem:[%s6492_s2 + $0x160] sm:$0xff]  ;;  %v399_v21 = vld [vmem:[%s6492_s2 + $0x168] sm:$0xff] }
   0x6   :  { %v3364_v19 = vpack.c.bf16 %v397_v18, %v396_v17  ;;  %v3367_v22 = vpack.c.bf16 %v399_v21, %v398_v20  ;;  %v400_v23 = vld [vmem:[%s6492_s2 + $0x170] sm:$0xff]  ;;  %v401_v24 = vld [vmem:[%s6492_s2 + $0x178] sm:$0xff]  ;;  %v402_v26 = vld [vmem:[%s6492_s2 + $0x180] sm:$0xff] }
   0x7   :  { %v3370_v25 = vpack.c.bf16 %v401_v24, %v400_v23  ;;  %v403_v27 = vld [vmem:[%s6492_s2 + $0x188] sm:$0xff]  ;;  %v354_v28 = vld [vmem:[%s6492_s2] sm:$0xff]  ;;  %v356_v31 = vld [vmem:[%s6492_s2 + $0x10] sm:$0xff] }
   0x8   :  { %3353 = vmatpush1.bf16.msra.mxu0 %v3352_v6  ;;  %v355_v29 = vld [vmem:[%s6492_s2 + $0x8] sm:$0xff]  ;;  %v3373_v32 = vpack.c.bf16 %v403_v27, %v402_v26  ;;  %v357_v33 = vld [vmem:[%s6492_s2 + $0x18] sm:$0xff]  ;;  %v404_v34 = vld [vmem:[%s6492_s2 + $0x190] sm:$0xff] }
   0x9   :  { %3354 = vmatprep.subr.bf16.mxu0 %v6504_v3  ;;  %v3301_v30 = vpack.c.bf16 %v355_v29, %v354_v28  ;;  %v405_v35 = vld [vmem:[%s6492_s2 + $0x198] sm:$0xff]  ;;  %v3304_v36 = vpack.c.bf16 %v357_v33, %v356_v31 }
   0xb   :  { %3302 = vmatpush1.bf16.msra.mxu1 %v3301_v30 }
   0xc   :  { %3356 = vmatpush1.bf16.msra.mxu0 %v3355_v9 }
   0xd   :  { %3357 = vmatprep.subr.bf16.mxu0 %v6504_v3 }
  0x10   :  { %3359 = vmatpush1.bf16.msra.mxu0 %v3358_v13 }
  0x11   :  { %3360 = vmatprep.subr.bf16.mxu0 %v6504_v3 }
  0x14   :  { %3362 = vmatpush1.bf16.msra.mxu0 %v3361_v16 }
  0x15   :  { %3363 = vmatprep.subr.bf16.mxu0 %v6504_v3 }
  0x18   :  { %3365 = vmatpush1.bf16.msra.mxu0 %v3364_v19 }
  0x19   :  { %3366 = vmatprep.subr.bf16.mxu0 %v6504_v3 }
  0x1c   :  { %3368 = vmatpush1.bf16.msra.mxu0 %v3367_v22 }
  0x1d   :  { %3369 = vmatprep.subr.bf16.mxu0 %v6504_v3 }
  0x20   :  { %3371 = vmatpush1.bf16.msra.mxu0 %v3370_v25 }
  0x21   :  { %3372 = vmatprep.subr.bf16.mxu0 %v6504_v3 }
  0x22   :  { %16 = vsyncpa [#allocation3], 0  ;;  %3303 = vmatprep.subr.bf16.mxu1 %v6504_v3  ;;  %v358_v37 = vld [vmem:[%s6492_s2 + $0x20] sm:$0xff]  ;;  %v359_v38 = vld [vmem:[%s6492_s2 + $0x28] sm:$0xff]  ;;  %v3376_v39 = vpack.c.bf16 %v405_v35, %v404_v34  ;;  %vm4010_vm0 = vmmov 0   ;;  %vm494_vm1 = vcmask 785408  }
  0x23   :  { %v406_v40 = vld [vmem:[%s6492_s2 + $0x1a0] sm:$0xff]  ;;  %v407_v41 = vld [vmem:[%s6492_s2 + $0x1a8] sm:$0xff]  ;;  %3305 = vmatpush1.bf16.msra.mxu1 %v3304_v36  ;;  %v3307_v42 = vpack.c.bf16 %v359_v38, %v358_v37  ;;  %v360_v43 = vld [vmem:[%s6492_s2 + $0x30] sm:$0xff]  ;;  %vm1812_vm2 = vcmask 195584   ;;  %vm2017_vm3 = vcmask 1044480   ;;  %vm2054_vm4 = vcmask 1040384  }
  0x24   :  { %3374 = vmatpush1.bf16.msra.mxu0 %v3373_v32  ;;  %3306 = vmatprep.subr.bf16.mxu1 %v6504_v3  ;;  %v361_v44 = vld [vmem:[%s6492_s2 + $0x38] sm:$0xff]  ;;  %v3379_v45 = vpack.c.bf16 %v407_v41, %v406_v40  ;;  %v408_v46 = vld [vmem:[%s6492_s2 + $0x1b0] sm:$0xff]  ;;  %v362_v49 = vld [vmem:[%s6492_s2 + $0x40] sm:$0xff]  ;;  %vm1997_vm5 = vcmask 1046528   ;;  %vm2033_vm6 = vcmask 1042432   ;;  %vm2007_vm7 = vcmask 1045504  }
  0x25   :  { %3375 = vmatprep.subr.bf16.mxu0 %v6504_v3  ;;  %v409_v47 = vld [vmem:[%s6492_s2 + $0x1b8] sm:$0xff]  ;;  %v3310_v48 = vpack.c.bf16 %v361_v44, %v360_v43  ;;  %v363_v50 = vld [vmem:[%s6492_s2 + $0x48] sm:$0xff]  ;;  %v410_v52 = vld [vmem:[%s6492_s2 + $0x1c0] sm:$0xff]  ;;  %vm2043_vm8 = vcmask 1041408   ;;  %s4012_s13 = smov 96   ;;  %s4013_s14 = smov 32  }
  0x26   :  { %v3382_v51 = vpack.c.bf16 %v409_v47, %v408_v46  ;;  %v411_v53 = vld [vmem:[%s6492_s2 + $0x1c8] sm:$0xff]  ;;  %v3313_v54 = vpack.c.bf16 %v363_v50, %v362_v49  ;;  %v364_v55 = vld [vmem:[%s6492_s2 + $0x50] sm:$0xff]  ;;  %v365_v56 = vld [vmem:[%s6492_s2 + $0x58] sm:$0xff]  ;;  %s4014_s26 = smov 64   ;;  %vm2027_vm9 = vcmask 1043456   ;;  %vm2116_vm10 = vcmask 261120  }
  0x27   :  { %3308 = vmatpush1.bf16.msra.mxu1 %v3307_v42  ;;  %v3385_v57 = vpack.c.bf16 %v411_v53, %v410_v52  ;;  %v412_v58 = vld [vmem:[%s6492_s2 + $0x1d0] sm:$0xff]  ;;  %v413_v59 = vld [vmem:[%s6492_s2 + $0x1d8] sm:$0xff]  ;;  %v3316_v60 = vpack.c.bf16 %v365_v56, %v364_v55  ;;  %v366_v61 = vld [vmem:[%s6492_s2 + $0x60] sm:$0xff]  ;;  %vm2119_vm11 = vcmask 523264   ;;  %vm2635_vm12 = vcmask 130048  }
  0x28   :  { %3377 = vmatpush1.bf16.msra.mxu0 %v3376_v39  ;;  %3309 = vmatprep.subr.bf16.mxu1 %v6504_v3  ;;  %v367_v62 = vld [vmem:[%s6492_s2 + $0x68] sm:$0xff]  ;;  %v3388_v63 = vpack.c.bf16 %v413_v59, %v412_v58  ;;  %v414_v0 = vld [vmem:[%s6492_s2 + $0x1e0] sm:$0xff]  ;;  %v368_v4 = vld [vmem:[%s6492_s2 + $0x70] sm:$0xff]  ;;  %vm2645_vm13 = vcmask 392192   ;;  %vm2724_vm14 = vcmask 162816   ;;  %vm2801_vm15 = vcmask 73728  }
  0x29   :  { %3378 = vmatprep.subr.bf16.mxu0 %v6504_v3  ;;  %v415_v1 = vld [vmem:[%s6492_s2 + $0x1e8] sm:$0xff]  ;;  %v3319_v2 = vpack.c.bf16 %v367_v62, %v366_v61  ;;  %v369_v5 = vld [vmem:[%s6492_s2 + $0x78] sm:$0xff]  ;;  %v416_v7 = vld [vmem:[%s6492_s2 + $0x1f0] sm:$0xff] }
  0x2a   :  { %v3391_v6 = vpack.c.bf16 %v415_v1, %v414_v0  ;;  %v417_v8 = vld [vmem:[%s6492_s2 + $0x1f8] sm:$0xff]  ;;  %v3322_v9 = vpack.c.bf16 %v369_v5, %v368_v4  ;;  %v370_v10 = vld [vmem:[%s6492_s2 + $0x80] sm:$0xff]  ;;  %v371_v11 = vld [vmem:[%s6492_s2 + $0x88] sm:$0xff] }
  0x2b   :  { %3311 = vmatpush1.bf16.msra.mxu1 %v3310_v48  ;;  %v3394_v12 = vpack.c.bf16 %v417_v8, %v416_v7  ;;  %v418_v13 = vld [vmem:[%s6492_s2 + $0x200] sm:$0xff]  ;;  %v419_v14 = vld [vmem:[%s6492_s2 + $0x208] sm:$0xff]  ;;  %v3325_v15 = vpack.c.bf16 %v371_v11, %v370_v10  ;;  %v372_v16 = vld [vmem:[%s6492_s2 + $0x90] sm:$0xff] }
  0x2c   :  { %3380 = vmatpush1.bf16.msra.mxu0 %v3379_v45  ;;  %3312 = vmatprep.subr.bf16.mxu1 %v6504_v3  ;;  %v373_v17 = vld [vmem:[%s6492_s2 + $0x98] sm:$0xff]  ;;  %v41_v18 = vld [vmem:[%s6490_s0 + $0x10] sm:$0xff]  ;;  %v3397_v19 = vpack.c.bf16 %v419_v14, %v418_v13  ;;  %v51_v20 = vld [vmem:[%s6490_s0 + $0x60] sm:$0xff] }
  0x2d   :  { %3381 = vmatprep.subr.bf16.mxu0 %v6504_v3  ;;  %v420_v21 = vld [vmem:[%s6492_s2 + $0x210] sm:$0xff]  ;;  %v421_v22 = vld [vmem:[%s6492_s2 + $0x218] sm:$0xff]  ;;  %v3328_v23 = vpack.c.bf16 %v373_v17, %v372_v16  ;;  %v374_v24 = vld [vmem:[%s6492_s2 + $0xa0] sm:$0xff] }
  0x2e   :  { %v375_v25 = vld [vmem:[%s6492_s2 + $0xa8] sm:$0xff]  ;;  %v50_v26 = vld [vmem:[%s6490_s0 + $0x58] sm:$0xff]  ;;  %v3400_v27 = vpack.c.bf16 %v421_v22, %v420_v21  ;;  %v422_v29 = vld [vmem:[%s6492_s2 + $0x220] sm:$0xff] }
  0x2f   :  { %3314 = vmatpush1.bf16.msra.mxu1 %v3313_v54  ;;  %v60_v28 = vld [vmem:[%s6490_s0 + $0xa8] sm:$0xff]  ;;  %v3331_v31 = vpack.c.bf16 %v375_v25, %v374_v24  ;;  %v376_v32 = vld [vmem:[%s6492_s2 + $0xb0] sm:$0xff]  ;;  %v377_v33 = vld [vmem:[%s6492_s2 + $0xb8] sm:$0xff] }
  0x30   :  { %3383 = vmatpush1.bf16.msra.mxu0 %v3382_v51  ;;  %3315 = vmatprep.subr.bf16.mxu1 %v6504_v3  ;;  %v423_v30 = vld [vmem:[%s6492_s2 + $0x228] sm:$0xff]  ;;  %v59_v34 = vld [vmem:[%s6490_s0 + $0xa0] sm:$0xff]  ;;  %v69_v36 = vld [vmem:[%s6490_s0 + $0xf0] sm:$0xff]  ;;  %v3334_v39 = vpack.c.bf16 %v377_v33, %v376_v32 }
  0x31   :  { %3384 = vmatprep.subr.bf16.mxu0 %v6504_v3  ;;  %v3403_v35 = vpack.c.bf16 %v423_v30, %v422_v29  ;;  %v424_v37 = vld [vmem:[%s6492_s2 + $0x230] sm:$0xff]  ;;  %v425_v38 = vld [vmem:[%s6492_s2 + $0x238] sm:$0xff]  ;;  %v378_v40 = vld [vmem:[%s6492_s2 + $0xc0] sm:$0xff] }
  0x32   :  { %v379_v41 = vld [vmem:[%s6492_s2 + $0xc8] sm:$0xff]  ;;  %v3406_v43 = vpack.c.bf16 %v425_v38, %v424_v37  ;;  %v78_v44 = vld [vmem:[%s6490_s0 + $0x138] sm:$0xff]  ;;  %v426_v45 = vld [vmem:[%s6492_s2 + $0x240] sm:$0xff] }
  0x33   :  { %3317 = vmatpush1.bf16.msra.mxu1 %v3316_v60  ;;  %v68_v42 = vld [vmem:[%s6490_s0 + $0xe8] sm:$0xff]  ;;  %v3337_v47 = vpack.c.bf16 %v379_v41, %v378_v40  ;;  %v380_v48 = vld [vmem:[%s6492_s2 + $0xd0] sm:$0xff]  ;;  %v381_v49 = vld [vmem:[%s6492_s2 + $0xd8] sm:$0xff] }
  0x34   :  { %3386 = vmatpush1.bf16.msra.mxu0 %v3385_v57  ;;  %3318 = vmatprep.subr.bf16.mxu1 %v6504_v3  ;;  %v427_v46 = vld [vmem:[%s6492_s2 + $0x248] sm:$0xff]  ;;  %v77_v50 = vld [vmem:[%s6490_s0 + $0x130] sm:$0xff]  ;;  %v87_v52 = vld [vmem:[%s6490_s0 + $0x180] sm:$0xff]  ;;  %v3340_v55 = vpack.c.bf16 %v381_v49, %v380_v48 }
  0x35   :  { %3387 = vmatprep.subr.bf16.mxu0 %v6504_v3  ;;  %v3409_v51 = vpack.c.bf16 %v427_v46, %v426_v45  ;;  %v428_v53 = vld [vmem:[%s6492_s2 + $0x250] sm:$0xff]  ;;  %v429_v54 = vld [vmem:[%s6492_s2 + $0x258] sm:$0xff]  ;;  %v382_v56 = vld [vmem:[%s6492_s2 + $0xe0] sm:$0xff] }
  0x36   :  { %v383_v57 = vld [vmem:[%s6492_s2 + $0xe8] sm:$0xff]  ;;  %v86_v58 = vld [vmem:[%s6490_s0 + $0x178] sm:$0xff]  ;;  %v3412_v59 = vpack.c.bf16 %v429_v54, %v428_v53  ;;  %v430_v61 = vld [vmem:[%s6492_s2 + $0x260] sm:$0xff] }
  0x37   :  { %3320 = vmatpush1.bf16.msra.mxu1 %v3319_v2  ;;  %v96_v60 = vld [vmem:[%s6490_s0 + $0x1c8] sm:$0xff]  ;;  %v384_v0 = vld [vmem:[%s6492_s2 + $0xf0] sm:$0xff]  ;;  %v385_v1 = vld [vmem:[%s6492_s2 + $0xf8] sm:$0xff] }
  0x38   :  { %3389 = vmatpush1.bf16.msra.mxu0 %v3388_v63  ;;  %3321 = vmatprep.subr.bf16.mxu1 %v6504_v3  ;;  %v431_v62 = vld [vmem:[%s6492_s2 + $0x268] sm:$0xff]  ;;  %v3343_v63 = vpack.c.bf16 %v383_v57, %v382_v56  ;;  %v95_v2 = vld [vmem:[%s6490_s0 + $0x1c0] sm:$0xff]  ;;  %v105_v5 = vld [vmem:[%s6490_s0 + $0x210] sm:$0xff]  ;;  %v3346_v8 = vpack.c.bf16 %v385_v1, %v384_v0 }
  0x39   :  { %3390 = vmatprep.subr.bf16.mxu0 %v6504_v3  ;;  %v3415_v4 = vpack.c.bf16 %v431_v62, %v430_v61  ;;  %v433_v7 = vld [vmem:[%s6492_s2 + $0x278] sm:$0xff]  ;;  %v104_v10 = vld [vmem:[%s6490_s0 + $0x208] sm:$0xff]  ;;  %v434_v13 = vld [vmem:[%s6492_s2 + $0x280] sm:$0xff] }
  0x3a   :  { %v435_v14 = vld [vmem:[%s6492_s2 + $0x288] sm:$0xff]  ;;  %v49_v16 = vld [vmem:[%s6490_s0 + $0x50] sm:$0xff]  ;;  %v437_v21 = vld [vmem:[%s6492_s2 + $0x298] sm:$0xff] }
  0x3b   :  { %3323 = vmatpush1.bf16.msra.mxu1 %v3322_v9  ;;  %v40_v9 = vld [vmem:[%s6490_s0 + $0x8] sm:$0xff]  ;;  %v113_v17 = vld [vmem:[%s6490_s0 + $0x250] sm:$0xff]  ;;  %v122_v24 = vld [vmem:[%s6490_s0 + $0x298] sm:$0xff] }
  0x3c   :  { %3392 = vmatpush1.bf16.msra.mxu0 %v3391_v6  ;;  %3324 = vmatprep.subr.bf16.mxu1 %v6504_v3  ;;  %v432_v6 = vld [vmem:[%s6492_s2 + $0x270] sm:$0xff]  ;;  %v48_v22 = vld [vmem:[%s6490_s0 + $0x48] sm:$0xff]  ;;  %v67_v30 = vld [vmem:[%s6490_s0 + $0xe0] sm:$0xff] }
  0x3d   :  { %3393 = vmatprep.subr.bf16.mxu0 %v6504_v3  ;;  %v3418_v11 = vpack.c.bf16 %v433_v7, %v432_v6  ;;  %664 = vmatprep.mubr.f32.mxu1 %v40_v9  ;;  %v57_v29 = vld [vmem:[%s6490_s0 + $0x90] sm:$0xff]  ;;  %v76_v37 = vld [vmem:[%s6490_s0 + $0x128] sm:$0xff]  ;;  %v150_v40 = vld [vmem:[%s6490_s0 + $0x378] sm:$0xff] }
  0x3e   :  { %v141_v33 = vld [vmem:[%s6490_s0 + $0x330] sm:$0xff]  ;;  %v140_v38 = vld [vmem:[%s6490_s0 + $0x328] sm:$0xff]  ;;  %v442_v41 = vld [vmem:[%s6492_s2 + $0x2c0] sm:$0xff] }
  0x3f   :  { %3326 = vmatpush1.bf16.msra.mxu1 %v3325_v15  ;;  %v39_v15 = vld [vmem:[%s6490_s0] sm:$0xff]  ;;  %v149_v45 = vld [vmem:[%s6490_s0 + $0x370] sm:$0xff]  ;;  %v445_v49 = vld [vmem:[%s6492_s2 + $0x2d8] sm:$0xff] }
  0x40   :  { %3395 = vmatpush1.bf16.msra.mxu0 %v3394_v12  ;;  %3327 = vmatprep.subr.bf16.mxu1 %v6504_v3  ;;  %v114_v12 = vld [vmem:[%s6490_s0 + $0x258] sm:$0xff]  ;;  %v444_v48 = vld [vmem:[%s6492_s2 + $0x2d0] sm:$0xff]  ;;  %v168_v54 = vld [vmem:[%s6490_s0 + $0x408] sm:$0xff] }
  0x41   :  { %3396 = vmatprep.subr.bf16.mxu0 %v6504_v3  ;;  %v3436_v53 = vpack.c.bf16 %v445_v49, %v444_v48  ;;  %v447_v56 = vld [vmem:[%s6492_s2 + $0x2e8] sm:$0xff]  ;;  %v93_v57 = vld [vmem:[%s6490_s0 + $0x1b0] sm:$0xff]  ;;  %v102_v0 = vld [vmem:[%s6490_s0 + $0x1f8] sm:$0xff] }
  0x42   :  { %v177_v61 = vld [vmem:[%s6490_s0 + $0x450] sm:$0xff]  ;;  %v112_v1 = vld [vmem:[%s6490_s0 + $0x248] sm:$0xff]  ;;  %v111_v6 = vld [vmem:[%s6490_s0 + $0x240] sm:$0xff] }
  0x43   :  { %905 = vmatmul.mubr.f32.vlgmr.msra.gmra.mrb[0].mxu0 %v41_v18  ;;  %3329 = vmatpush1.bf16.msra.mxu1 %v3328_v23  ;;  %v3421_v18 = vpack.c.bf16 %v435_v14, %v434_v13  ;;  %v58_v23 = vld [vmem:[%s6490_s0 + $0x98] sm:$0xff]  ;;  %v448_v62 = vld [vmem:[%s6492_s2 + $0x2f0] sm:$0xff]  ;;  %v195_v9 = vld [vmem:[%s6490_s0 + $0x4e0] sm:$0xff] }
  0x44   :  { %909 = vmatprep.mubr.f32.mxu0 %v51_v20  ;;  %3398 = vmatpush1.bf16.msra.mxu0 %v3397_v19  ;;  %v123_v19 = vld [vmem:[%s6490_s0 + $0x2a0] sm:$0xff]  ;;  %v436_v20 = vld [vmem:[%s6492_s2 + $0x290] sm:$0xff]  ;;  %v204_v13 = vld [vmem:[%s6490_s0 + $0x528] sm:$0xff] }
  0x45   :  { %3399 = vmatprep.subr.bf16.mxu0 %v6504_v3  ;;  %3330 = vmatprep.subr.bf16.mxu1 %v6504_v3  ;;  %v3424_v25 = vpack.c.bf16 %v437_v21, %v436_v20  ;;  %v121_v7 = vld [vmem:[%s6490_s0 + $0x290] sm:$0xff]  ;;  %v212_v20 = vld [vmem:[%s6490_s0 + $0x568] sm:$0xff]  ;;  %v222_v21 = vld [vmem:[%s6490_s0 + $0x5b8] sm:$0xff] }
  0x46   :  { %v129_v14 = vld [vmem:[%s6490_s0 + $0x2d0] sm:$0xff]  ;;  %v275_v48 = vld [vmem:[%s6490_s0 + $0x760] sm:$0xff] }
  0x47   :  { %910 = vmatmul.mubr.f32.gmra.mrb[2].mxu0 %v50_v26  ;;  %3332 = vmatpush1.bf16.msra.mxu1 %v3331_v31  ;;  %v132_v26 = vld [vmem:[%s6490_s0 + $0x2e8] sm:$0xff]  ;;  %v131_v31 = vld [vmem:[%s6490_s0 + $0x2e0] sm:$0xff]  ;;  %v285_v49 = vld [vmem:[%s6490_s0 + $0x7b0] sm:$0xff] }
  0x48   :  { %914 = vmatprep.mubr.f32.mxu0 %v60_v28  ;;  %3401 = vmatpush1.bf16.msra.mxu0 %v3400_v27  ;;  %v438_v27 = vld [vmem:[%s6492_s2 + $0x2a0] sm:$0xff]  ;;  %v439_v28 = vld [vmem:[%s6492_s2 + $0x2a8] sm:$0xff] }
  0x49   :  { %3402 = vmatprep.subr.bf16.mxu0 %v6504_v3  ;;  %3333 = vmatprep.subr.bf16.mxu1 %v6504_v3  ;;  %v3427_v32 = vpack.c.bf16 %v439_v28, %v438_v27  ;;  %v166_v27 = vld [vmem:[%s6490_s0 + $0x3f8] sm:$0xff] }
  0x4a   :  { %v230_v28 = vld [vmem:[%s6490_s0 + $0x5f8] sm:$0xff] }
  0x4b   :  { %915 = vmatmul.mubr.f32.gmra.mrb[4].mxu0 %v59_v34  ;;  %3335 = vmatpush1.bf16.msra.mxu1 %v3334_v39  ;;  %v440_v34 = vld [vmem:[%s6492_s2 + $0x2b0] sm:$0xff] }
  0x4c   :  { %919 = vmatprep.mubr.f32.mxu0 %v69_v36  ;;  %3404 = vmatpush1.bf16.msra.mxu0 %v3403_v35  ;;  %v441_v35 = vld [vmem:[%s6492_s2 + $0x2b8] sm:$0xff] }
  0x4d   :  { %3405 = vmatprep.subr.bf16.mxu0 %v6504_v3  ;;  %3336 = vmatprep.subr.bf16.mxu1 %v6504_v3  ;;  %v66_v36 = vld [vmem:[%s6490_s0 + $0xd8] sm:$0xff]  ;;  %v3430_v39 = vpack.c.bf16 %v441_v35, %v440_v34  ;;  %v184_v35 = vld [vmem:[%s6490_s0 + $0x488] sm:$0xff] }
  0x4e   :  { %v174_v34 = vld [vmem:[%s6490_s0 + $0x438] sm:$0xff] }
  0x4f   :  { %920 = vmatmul.mubr.f32.gmra.mrb[6].mxu0 %v68_v42  ;;  %3338 = vmatpush1.bf16.msra.mxu1 %v3337_v47  ;;  %v443_v42 = vld [vmem:[%s6492_s2 + $0x2c8] sm:$0xff]  ;;  %v159_v47 = vld [vmem:[%s6490_s0 + $0x3c0] sm:$0xff] }
  0x50   :  { %924 = vmatprep.mubr.f32.mxu0 %v78_v44  ;;  %3407 = vmatpush1.bf16.msra.mxu0 %v3406_v43  ;;  %v75_v43 = vld [vmem:[%s6490_s0 + $0x120] sm:$0xff]  ;;  %v85_v44 = vld [vmem:[%s6490_s0 + $0x170] sm:$0xff]  ;;  %v3433_v46 = vpack.c.bf16 %v443_v42, %v442_v41  ;;  %v192_v42 = vld [vmem:[%s6490_s0 + $0x4c8] sm:$0xff] }
  0x51   :  { %3408 = vmatprep.subr.bf16.mxu0 %v6504_v3  ;;  %3339 = vmatprep.subr.bf16.mxu1 %v6504_v3  ;;  %v267_v41 = vld [vmem:[%s6490_s0 + $0x720] sm:$0xff] }
  0x53   :  { %925 = vmatmul.mubr.f32.gmra.mrb[8].mxu0 %v77_v50  ;;  %3341 = vmatpush1.bf16.msra.mxu1 %v3340_v55  ;;  %v84_v50 = vld [vmem:[%s6490_s0 + $0x168] sm:$0xff]  ;;  %v446_v55 = vld [vmem:[%s6492_s2 + $0x2e0] sm:$0xff] }
  0x54   :  { %929 = vmatprep.mubr.f32.mxu0 %v87_v52  ;;  %3410 = vmatpush1.bf16.msra.mxu0 %v3409_v51  ;;  %v94_v51 = vld [vmem:[%s6490_s0 + $0x1b8] sm:$0xff] }
  0x55   :  { %3411 = vmatprep.subr.bf16.mxu0 %v6504_v3  ;;  %3342 = vmatprep.subr.bf16.mxu1 %v6504_v3  ;;  %v158_v52 = vld [vmem:[%s6490_s0 + $0x3b8] sm:$0xff] }
  0x57   :  { %930 = vmatmul.mubr.f32.gmra.mrb[10].mxu0 %v86_v58  ;;  %3344 = vmatpush1.bf16.msra.mxu1 %v3343_v63  ;;  %v103_v58 = vld [vmem:[%s6490_s0 + $0x200] sm:$0xff]  ;;  %v449_v63 = vld [vmem:[%s6492_s2 + $0x2f8] sm:$0xff] }
  0x58   :  { %934 = vmatprep.mubr.f32.mxu0 %v96_v60  ;;  %3413 = vmatpush1.bf16.msra.mxu0 %v3412_v59  ;;  %v167_v59 = vld [vmem:[%s6490_s0 + $0x400] sm:$0xff]  ;;  %v3439_v60 = vpack.c.bf16 %v447_v56, %v446_v55  ;;  %v229_v55 = vld [vmem:[%s6490_s0 + $0x5f0] sm:$0xff] }
  0x59   :  { %3414 = vmatprep.subr.bf16.mxu0 %v6504_v3  ;;  %3345 = vmatprep.subr.bf16.mxu1 %v6504_v3  ;;  %v293_v56 = vld [vmem:[%s6490_s0 + $0x7f0] sm:$0xff] }
  0x5b   :  { %935 = vmatmul.mubr.f32.gmra.mrb[12].mxu0 %v95_v2  ;;  %3347 = vmatpush1.bf16.msra.mxu1 %v3346_v8  ;;  %v176_v2 = vld [vmem:[%s6490_s0 + $0x448] sm:$0xff]  ;;  %v185_v8 = vld [vmem:[%s6490_s0 + $0x490] sm:$0xff] }
  0x5c   :  { %939 = vmatprep.mubr.f32.mxu0 %v105_v5  ;;  %3416 = vmatpush1.bf16.msra.mxu0 %v3415_v4  ;;  %v3442_v4 = vpack.c.bf16 %v449_v63, %v448_v62  ;;  %v186_v5 = vld [vmem:[%s6490_s0 + $0x498] sm:$0xff]  ;;  %v237_v62 = vld [vmem:[%s6490_s0 + $0x630] sm:$0xff]  ;;  %v247_v63 = vld [vmem:[%s6490_s0 + $0x680] sm:$0xff] }
  0x5d   :  { %3417 = vmatprep.subr.bf16.mxu0 %v6504_v3  ;;  %3678 = vmatprep.subr.bf16.mxu1 %v6504_v3 }
  0x5e   :  { %665 = vmatmul.mubr.f32.vlgmr.msra.gmra.mrb[0].mxu1 %v39_v15  ;;  %v139_v15 = vld [vmem:[%s6490_s0 + $0x320] sm:$0xff] }
  0x5f   :  { %940 = vmatmul.mubr.f32.gmra.mrb[14].mxu0 %v104_v10  ;;  %669 = vmatprep.mubr.f32.mxu1 %v49_v16  ;;  %v120_v10 = vld [vmem:[%s6490_s0 + $0x288] sm:$0xff]  ;;  %v203_v16 = vld [vmem:[%s6490_s0 + $0x520] sm:$0xff] }
  0x60   :  { %944 = vmatprep.mubr.f32.mxu0 %v114_v12  ;;  %3419 = vmatpush1.bf16.msra.mxu0 %v3418_v11  ;;  %v130_v11 = vld [vmem:[%s6490_s0 + $0x2d8] sm:$0xff] }
  0x61   :  { %3420 = vmatprep.subr.bf16.mxu0 %v6504_v3  ;;  %v194_v12 = vld [vmem:[%s6490_s0 + $0x4d8] sm:$0xff] }
  0x62   :  { %670 = vmatmul.mubr.f32.gmra.mrb[2].mxu1 %v48_v22  ;;  %v147_v22 = vld [vmem:[%s6490_s0 + $0x360] sm:$0xff] }
  0x63   :  { %945 = vmatmul.mubr.f32.gmra.mrb[16].mxu0 %v113_v17  ;;  %674 = vmatprep.mubr.f32.mxu1 %v58_v23  ;;  %v213_v17 = vld [vmem:[%s6490_s0 + $0x570] sm:$0xff] }
  0x64   :  { %949 = vmatprep.mubr.f32.mxu0 %v123_v19  ;;  %3422 = vmatpush1.bf16.msra.mxu0 %v3421_v18  ;;  %v138_v18 = vld [vmem:[%s6490_s0 + $0x318] sm:$0xff]  ;;  %v148_v19 = vld [vmem:[%s6490_s0 + $0x368] sm:$0xff]  ;;  %v157_v23 = vld [vmem:[%s6490_s0 + $0x3b0] sm:$0xff] }
  0x65   :  { %3423 = vmatprep.subr.bf16.mxu0 %v6504_v3 }
  0x66   :  { %675 = vmatmul.mubr.f32.gmra.mrb[4].mxu1 %v57_v29  ;;  %v240_v29 = vld [vmem:[%s6490_s0 + $0x648] sm:$0xff] }
  0x67   :  { %950 = vmatmul.mubr.f32.gmra.mrb[18].mxu0 %v122_v24  ;;  %679 = vmatprep.mubr.f32.mxu1 %v67_v30  ;;  %v221_v24 = vld [vmem:[%s6490_s0 + $0x5b0] sm:$0xff] }
  0x68   :  { %954 = vmatprep.mubr.f32.mxu0 %v132_v26  ;;  %3425 = vmatpush1.bf16.msra.mxu0 %v3424_v25  ;;  %v231_v25 = vld [vmem:[%s6490_s0 + $0x600] sm:$0xff]  ;;  %v156_v26 = vld [vmem:[%s6490_s0 + $0x3a8] sm:$0xff]  ;;  %v165_v30 = vld [vmem:[%s6490_s0 + $0x3f0] sm:$0xff] }
  0x69   :  { %3426 = vmatprep.subr.bf16.mxu0 %v6504_v3 }
  0x6a   :  { %680 = vmatmul.mubr.f32.gmra.mrb[6].mxu1 %v66_v36  ;;  %v248_v36 = vld [vmem:[%s6490_s0 + $0x688] sm:$0xff] }
  0x6b   :  { %955 = vmatmul.mubr.f32.gmra.mrb[20].mxu0 %v131_v31  ;;  %684 = vmatprep.mubr.f32.mxu1 %v76_v37  ;;  %v175_v31 = vld [vmem:[%s6490_s0 + $0x440] sm:$0xff]  ;;  %v258_v37 = vld [vmem:[%s6490_s0 + $0x6d8] sm:$0xff] }
  0x6c   :  { %959 = vmatprep.mubr.f32.mxu0 %v141_v33  ;;  %3428 = vmatpush1.bf16.msra.mxu0 %v3427_v32  ;;  %v239_v32 = vld [vmem:[%s6490_s0 + $0x640] sm:$0xff]  ;;  %v249_v33 = vld [vmem:[%s6490_s0 + $0x690] sm:$0xff] }
  0x6d   :  { %3429 = vmatprep.subr.bf16.mxu0 %v6504_v3 }
  0x6e   :  { %685 = vmatmul.mubr.f32.gmra.mrb[8].mxu1 %v75_v43  ;;  %v202_v43 = vld [vmem:[%s6490_s0 + $0x518] sm:$0xff] }
  0x6f   :  { %960 = vmatmul.mubr.f32.gmra.mrb[22].mxu0 %v140_v38  ;;  %689 = vmatprep.mubr.f32.mxu1 %v85_v44  ;;  %v183_v38 = vld [vmem:[%s6490_s0 + $0x480] sm:$0xff]  ;;  %v266_v44 = vld [vmem:[%s6490_s0 + $0x718] sm:$0xff] }
  0x70   :  { %964 = vmatprep.mubr.f32.mxu0 %v150_v40  ;;  %3431 = vmatpush1.bf16.msra.mxu0 %v3430_v39  ;;  %v193_v39 = vld [vmem:[%s6490_s0 + $0x4d0] sm:$0xff] }
  0x71   :  { %3432 = vmatprep.subr.bf16.mxu0 %v6504_v3  ;;  %v257_v40 = vld [vmem:[%s6490_s0 + $0x6d0] sm:$0xff] }
  0x72   :  { %690 = vmatmul.mubr.f32.gmra.mrb[10].mxu1 %v84_v50  ;;  %v210_v50 = vld [vmem:[%s6490_s0 + $0x558] sm:$0xff] }
  0x73   :  { %965 = vmatmul.mubr.f32.gmra.mrb[24].mxu0 %v149_v45  ;;  %694 = vmatprep.mubr.f32.mxu1 %v94_v51  ;;  %v276_v45 = vld [vmem:[%s6490_s0 + $0x768] sm:$0xff] }
  0x74   :  { %969 = vmatprep.mubr.f32.mxu0 %v159_v47  ;;  %3434 = vmatpush1.bf16.msra.mxu0 %v3433_v46  ;;  %v201_v46 = vld [vmem:[%s6490_s0 + $0x510] sm:$0xff]  ;;  %v211_v47 = vld [vmem:[%s6490_s0 + $0x560] sm:$0xff]  ;;  %v220_v51 = vld [vmem:[%s6490_s0 + $0x5a8] sm:$0xff] }
  0x75   :  { %3435 = vmatprep.subr.bf16.mxu0 %v6504_v3 }
  0x76   :  { %695 = vmatmul.mubr.f32.gmra.mrb[12].mxu1 %v93_v57  ;;  %v303_v57 = vld [vmem:[%s6490_s0 + $0x840] sm:$0xff] }
  0x77   :  { %970 = vmatmul.mubr.f32.gmra.mrb[26].mxu0 %v158_v52  ;;  %699 = vmatprep.mubr.f32.mxu1 %v103_v58  ;;  %v284_v52 = vld [vmem:[%s6490_s0 + $0x7a8] sm:$0xff] }
  0x78   :  { %974 = vmatprep.mubr.f32.mxu0 %v168_v54  ;;  %3437 = vmatpush1.bf16.msra.mxu0 %v3436_v53  ;;  %v294_v53 = vld [vmem:[%s6490_s0 + $0x7f8] sm:$0xff]  ;;  %v219_v54 = vld [vmem:[%s6490_s0 + $0x5a0] sm:$0xff]  ;;  %v228_v58 = vld [vmem:[%s6490_s0 + $0x5e8] sm:$0xff] }
  0x79   :  { %3438 = vmatprep.subr.bf16.mxu0 %v6504_v3 }
  0x7a   :  { %700 = vmatmul.mubr.f32.gmra.mrb[14].mxu1 %v102_v0  ;;  %v311_v0 = vld [vmem:[%s6490_s0 + $0x880] sm:$0xff] }
  0x7b   :  { %975 = vmatmul.mubr.f32.gmra.mrb[28].mxu0 %v167_v59  ;;  %704 = vmatprep.mubr.f32.mxu1 %v112_v1  ;;  %v238_v59 = vld [vmem:[%s6490_s0 + $0x638] sm:$0xff]  ;;  %v321_v1 = vld [vmem:[%s6490_s0 + $0x8d0] sm:$0xff] }
  0x7c   :  { %979 = vmatprep.mubr.f32.mxu0 %v177_v61  ;;  %3440 = vmatpush1.bf16.msra.mxu0 %v3439_v60  ;;  %v302_v60 = vld [vmem:[%s6490_s0 + $0x838] sm:$0xff]  ;;  %v312_v61 = vld [vmem:[%s6490_s0 + $0x888] sm:$0xff] }
  0x7d   :  { %3441 = vmatprep.subr.bf16.mxu0 %v6504_v3 }
  0x7e   :  { %705 = vmatmul.mubr.f32.gmra.mrb[16].mxu1 %v111_v6  ;;  %v330_v6 = vld [vmem:[%s6490_s0 + $0x918] sm:$0xff] }
  0x7f   :  { %980 = vmatmul.mubr.f32.gmra.mrb[30].mxu0 %v176_v2  ;;  %709 = vmatprep.mubr.f32.mxu1 %v121_v7  ;;  %v246_v2 = vld [vmem:[%s6490_s0 + $0x678] sm:$0xff]  ;;  %v255_v7 = vld [vmem:[%s6490_s0 + $0x6c0] sm:$0xff] }
  0x80   :  { %984 = vmatprep.mubr.f32.mxu0 %v186_v5  ;;  %3443 = vmatpush1.bf16.msra.mxu0 %v3442_v4  ;;  %v256_v4 = vld [vmem:[%s6490_s0 + $0x6c8] sm:$0xff] }
  0x81   :  { %3444 = vmatprep.subr.bf16.mxu0 %v6504_v3  ;;  %v320_v5 = vld [vmem:[%s6490_s0 + $0x8c8] sm:$0xff] }
  0x82   :  { %710 = vmatmul.mubr.f32.gmra.mrb[18].mxu1 %v120_v10  ;;  %v339_v10 = vld [vmem:[%s6490_s0 + $0x960] sm:$0xff] }
  0x83   :  { %985 = vmatmul.mubr.f32.gmra.mrb[32].mxu0 %v185_v8  ;;  %714 = vmatprep.mubr.f32.mxu1 %v130_v11  ;;  %v265_v8 = vld [vmem:[%s6490_s0 + $0x710] sm:$0xff]  ;;  %v264_v11 = vld [vmem:[%s6490_s0 + $0x708] sm:$0xff] }
  0x84   :  { %989 = vmatprep.mubr.f32.mxu0 %v195_v9  ;;  %v329_v9 = vld [vmem:[%s6490_s0 + $0x910] sm:$0xff] }
  0x86   :  { %715 = vmatmul.mubr.f32.gmra.mrb[20].mxu1 %v129_v14  ;;  %v348_v14 = vld [vmem:[%s6490_s0 + $0x9a8] sm:$0xff] }
  0x87   :  { %990 = vmatmul.mubr.f32.gmra.mrb[34].mxu0 %v194_v12  ;;  %719 = vmatprep.mubr.f32.mxu1 %v139_v15  ;;  %v274_v12 = vld [vmem:[%s6490_s0 + $0x758] sm:$0xff]  ;;  %v273_v15 = vld [vmem:[%s6490_s0 + $0x750] sm:$0xff] }
  0x88   :  { %994 = vmatprep.mubr.f32.mxu0 %v204_v13  ;;  %v338_v13 = vld [vmem:[%s6490_s0 + $0x958] sm:$0xff] }
  0x8a   :  { %720 = vmatmul.mubr.f32.gmra.mrb[22].mxu1 %v138_v18  ;;  %v44_v18 = vld [vmem:[%s6490_s0 + $0x28] sm:$0xff] }
  0x8b   :  { %995 = vmatmul.mubr.f32.gmra.mrb[36].mxu0 %v203_v16  ;;  %724 = vmatprep.mubr.f32.mxu1 %v148_v19  ;;  %v283_v16 = vld [vmem:[%s6490_s0 + $0x7a0] sm:$0xff] }
  0x8c   :  { %999 = vmatprep.mubr.f32.mxu0 %v213_v17  ;;  %v347_v17 = vld [vmem:[%s6490_s0 + $0x9a0] sm:$0xff] }
  0x8d   :  { %v450_v19 = vld [vmem:[%s6492_s2 + $0x300] sm:$0xff] }
  0x8e   :  { %725 = vmatmul.mubr.f32.gmra.mrb[24].mxu1 %v147_v22  ;;  %v292_v22 = vld [vmem:[%s6490_s0 + $0x7e8] sm:$0xff] }
  0x8f   :  { %1000 = vmatmul.mubr.f32.gmra.mrb[38].mxu0 %v212_v20  ;;  %729 = vmatprep.mubr.f32.mxu1 %v157_v23  ;;  %v451_v20 = vld [vmem:[%s6492_s2 + $0x308] sm:$0xff]  ;;  %v43_v23 = vld [vmem:[%s6490_s0 + $0x20] sm:$0xff] }
  0x90   :  { %1004 = vmatprep.mubr.f32.mxu0 %v222_v21  ;;  %v282_v21 = vld [vmem:[%s6490_s0 + $0x798] sm:$0xff] }
  0x92   :  { %730 = vmatmul.mubr.f32.gmra.mrb[26].mxu1 %v156_v26  ;;  %v452_v26 = vld [vmem:[%s6492_s2 + $0x310] sm:$0xff] }
  0x93   :  { %1005 = vmatmul.mubr.f32.gmra.mrb[40].mxu0 %v221_v24  ;;  %734 = vmatprep.mubr.f32.mxu1 %v166_v27  ;;  %v3445_v24 = vpack.c.bf16 %v451_v20, %v450_v19  ;;  %v453_v27 = vld [vmem:[%s6492_s2 + $0x318] sm:$0xff]  ;;  %v492_v19 = vld [vmem:[%s6492_s2 + $0x450] sm:$0xff] }
  0x94   :  { %1009 = vmatprep.mubr.f32.mxu0 %v231_v25  ;;  %v53_v25 = vld [vmem:[%s6490_s0 + $0x70] sm:$0xff]  ;;  %v493_v20 = vld [vmem:[%s6492_s2 + $0x458] sm:$0xff] }
  0x96   :  { %735 = vmatmul.mubr.f32.gmra.mrb[28].mxu1 %v165_v30  ;;  %v52_v30 = vld [vmem:[%s6490_s0 + $0x68] sm:$0xff] }
  0x97   :  { %1010 = vmatmul.mubr.f32.gmra.mrb[42].mxu0 %v230_v28  ;;  %739 = vmatprep.mubr.f32.mxu1 %v175_v31  ;;  %v291_v28 = vld [vmem:[%s6490_s0 + $0x7e0] sm:$0xff]  ;;  %v3448_v31 = vpack.c.bf16 %v453_v27, %v452_v26  ;;  %v106_v26 = vld [vmem:[%s6490_s0 + $0x218] sm:$0xff] }
  0x98   :  { %1014 = vmatprep.mubr.f32.mxu0 %v240_v29  ;;  %v301_v29 = vld [vmem:[%s6490_s0 + $0x830] sm:$0xff] }
  0x9a   :  { %740 = vmatmul.mubr.f32.gmra.mrb[30].mxu1 %v174_v34  ;;  %v62_v34 = vld [vmem:[%s6490_s0 + $0xb8] sm:$0xff] }
  0x9b   :  { %1015 = vmatmul.mubr.f32.gmra.mrb[44].mxu0 %v239_v32  ;;  %744 = vmatprep.mubr.f32.mxu1 %v184_v35  ;;  %v482_v32 = vld [vmem:[%s6492_s2 + $0x400] sm:$0xff] }
  0x9c   :  { %1019 = vmatprep.mubr.f32.mxu0 %v249_v33  ;;  %v483_v33 = vld [vmem:[%s6492_s2 + $0x408] sm:$0xff]  ;;  %v454_v35 = vld [vmem:[%s6492_s2 + $0x320] sm:$0xff] }
  0x9e   :  { %745 = vmatmul.mubr.f32.gmra.mrb[32].mxu1 %v183_v38  ;;  %v300_v38 = vld [vmem:[%s6490_s0 + $0x828] sm:$0xff] }
  0x9f   :  { %1020 = vmatmul.mubr.f32.gmra.mrb[46].mxu0 %v248_v36  ;;  %749 = vmatprep.mubr.f32.mxu1 %v193_v39  ;;  %v455_v36 = vld [vmem:[%s6492_s2 + $0x328] sm:$0xff]  ;;  %v310_v39 = vld [vmem:[%s6490_s0 + $0x878] sm:$0xff] }
  0xa0   :  { %1024 = vmatprep.mubr.f32.mxu0 %v258_v37  ;;  %v4842_v37 = vpack.c.bf16 %v483_v33, %v482_v32  ;;  %v74_v32 = vld [vmem:[%s6490_s0 + $0x118] sm:$0xff]  ;;  %v115_v33 = vld [vmem:[%s6490_s0 + $0x260] sm:$0xff] }
  0xa2   :  { %750 = vmatmul.mubr.f32.gmra.mrb[34].mxu1 %v192_v42  ;;  %v484_v42 = vld [vmem:[%s6492_s2 + $0x410] sm:$0xff] }
  0xa3   :  { %1025 = vmatmul.mubr.f32.gmra.mrb[48].mxu0 %v257_v40  ;;  %754 = vmatprep.mubr.f32.mxu1 %v202_v43  ;;  %v61_v40 = vld [vmem:[%s6490_s0 + $0xb0] sm:$0xff]  ;;  %v485_v43 = vld [vmem:[%s6492_s2 + $0x418] sm:$0xff] }
  0xa4   :  { %1029 = vmatprep.mubr.f32.mxu0 %v267_v41  ;;  %3684 = vmatpush3.bf16.msra.mxu1 %v4842_v37  ;;  %v3451_v41 = vpack.c.bf16 %v455_v36, %v454_v35  ;;  %v125_v35 = vld [vmem:[%s6490_s0 + $0x2b0] sm:$0xff] }
  0xa5   :  { %3679 = vmatprep.subr.bf16.mxu1 %v6504_v3  ;;  %v468_v36 = vld [vmem:[%s6492_s2 + $0x390] sm:$0xff] }
  0xa6   :  { %755 = vmatmul.mubr.f32.gmra.mrb[36].mxu1 %v201_v46  ;;  %v457_v46 = vld [vmem:[%s6492_s2 + $0x338] sm:$0xff] }
  0xa7   :  { %1030 = vmatmul.mubr.f32.gmra.mrb[50].mxu0 %v266_v44  ;;  %759 = vmatprep.mubr.f32.mxu1 %v211_v47  ;;  %v71_v44 = vld [vmem:[%s6490_s0 + $0x100] sm:$0xff]  ;;  %v4870_v47 = vpack.c.bf16 %v485_v43, %v484_v42  ;;  %v134_v42 = vld [vmem:[%s6490_s0 + $0x2f8] sm:$0xff] }
  0xa8   :  { %1034 = vmatprep.mubr.f32.mxu0 %v276_v45  ;;  %v456_v45 = vld [vmem:[%s6492_s2 + $0x330] sm:$0xff]  ;;  %v470_v43 = vld [vmem:[%s6492_s2 + $0x3a0] sm:$0xff] }
  0xa9   :  { %3685 = vmatpush3.bf16.msra.mxu1 %v4870_v47 }
  0xaa   :  { %760 = vmatmul.mubr.f32.gmra.mrb[38].mxu1 %v210_v50  ;;  %v70_v50 = vld [vmem:[%s6490_s0 + $0xf8] sm:$0xff]  ;;  %3680 = vmatprep.subr.bf16.mxu1 %v6504_v3 }
  0xab   :  { %1035 = vmatmul.mubr.f32.gmra.mrb[52].mxu0 %v275_v48  ;;  %764 = vmatprep.mubr.f32.mxu1 %v220_v51  ;;  %v309_v48 = vld [vmem:[%s6490_s0 + $0x870] sm:$0xff]  ;;  %v3454_v51 = vpack.c.bf16 %v457_v46, %v456_v45  ;;  %v92_v45 = vld [vmem:[%s6490_s0 + $0x1a8] sm:$0xff] }
  0xac   :  { %1039 = vmatprep.mubr.f32.mxu0 %v285_v49  ;;  %v319_v49 = vld [vmem:[%s6490_s0 + $0x8c0] sm:$0xff]  ;;  %v133_v46 = vld [vmem:[%s6490_s0 + $0x2f0] sm:$0xff] }
  0xae   :  { %765 = vmatmul.mubr.f32.gmra.mrb[40].mxu1 %v219_v54  ;;  %v80_v54 = vld [vmem:[%s6490_s0 + $0x148] sm:$0xff] }
  0xaf   :  { %1040 = vmatmul.mubr.f32.gmra.mrb[54].mxu0 %v284_v52  ;;  %769 = vmatprep.mubr.f32.mxu1 %v229_v55  ;;  %v486_v52 = vld [vmem:[%s6492_s2 + $0x420] sm:$0xff] }
  0xb0   :  { %1044 = vmatprep.mubr.f32.mxu0 %v294_v53  ;;  %v487_v53 = vld [vmem:[%s6492_s2 + $0x428] sm:$0xff]  ;;  %v458_v55 = vld [vmem:[%s6492_s2 + $0x340] sm:$0xff] }
  0xb2   :  { %770 = vmatmul.mubr.f32.gmra.mrb[42].mxu1 %v228_v58  ;;  %v318_v58 = vld [vmem:[%s6490_s0 + $0x8b8] sm:$0xff] }
  0xb3   :  { %1045 = vmatmul.mubr.f32.gmra.mrb[56].mxu0 %v293_v56  ;;  %774 = vmatprep.mubr.f32.mxu1 %v238_v59  ;;  %v459_v56 = vld [vmem:[%s6492_s2 + $0x348] sm:$0xff] }
  0xb4   :  { %1049 = vmatprep.mubr.f32.mxu0 %v303_v57  ;;  %v4899_v57 = vpack.c.bf16 %v487_v53, %v486_v52  ;;  %v328_v59 = vld [vmem:[%s6490_s0 + $0x908] sm:$0xff]  ;;  %v101_v52 = vld [vmem:[%s6490_s0 + $0x1f0] sm:$0xff]  ;;  %v142_v53 = vld [vmem:[%s6490_s0 + $0x338] sm:$0xff] }
  0xb6   :  { %775 = vmatmul.mubr.f32.gmra.mrb[44].mxu1 %v237_v62  ;;  %v488_v62 = vld [vmem:[%s6492_s2 + $0x430] sm:$0xff] }
  0xb7   :  { %1050 = vmatmul.mubr.f32.gmra.mrb[58].mxu0 %v302_v60  ;;  %779 = vmatprep.mubr.f32.mxu1 %v247_v63  ;;  %v79_v60 = vld [vmem:[%s6490_s0 + $0x140] sm:$0xff]  ;;  %v489_v63 = vld [vmem:[%s6492_s2 + $0x438] sm:$0xff] }
  0xb8   :  { %1054 = vmatprep.mubr.f32.mxu0 %v312_v61  ;;  %3686 = vmatpush3.bf16.msra.mxu1 %v4899_v57  ;;  %v3457_v61 = vpack.c.bf16 %v459_v56, %v458_v55  ;;  %v152_v55 = vld [vmem:[%s6490_s0 + $0x388] sm:$0xff]  ;;  %v474_v56 = vld [vmem:[%s6492_s2 + $0x3c0] sm:$0xff] }
  0xb9   :  { %3681 = vmatprep.subr.bf16.mxu1 %v6504_v3 }
  0xba   :  { %780 = vmatmul.mubr.f32.gmra.mrb[46].mxu1 %v246_v2  ;;  %v461_v2 = vld [vmem:[%s6492_s2 + $0x358] sm:$0xff] }
  0xbb   :  { %1055 = vmatmul.mubr.f32.gmra.mrb[60].mxu0 %v311_v0  ;;  %784 = vmatprep.mubr.f32.mxu1 %v256_v4  ;;  %v89_v0 = vld [vmem:[%s6490_s0 + $0x190] sm:$0xff]  ;;  %v4928_v4 = vpack.c.bf16 %v489_v63, %v488_v62 }
  0xbc   :  { %1059 = vmatprep.mubr.f32.mxu0 %v321_v1  ;;  %v460_v1 = vld [vmem:[%s6492_s2 + $0x350] sm:$0xff] }
  0xbd   :  { %3687 = vmatpush3.bf16.msra.mxu1 %v4928_v4  ;;  %v161_v62 = vld [vmem:[%s6490_s0 + $0x3d0] sm:$0xff] }
  0xbe   :  { %785 = vmatmul.mubr.f32.gmra.mrb[48].mxu1 %v255_v7  ;;  %v88_v7 = vld [vmem:[%s6490_s0 + $0x188] sm:$0xff]  ;;  %3682 = vmatprep.subr.bf16.mxu1 %v6504_v3  ;;  %v476_v63 = vld [vmem:[%s6492_s2 + $0x3d0] sm:$0xff] }
  0xbf   :  { %1060 = vmatmul.mubr.f32.gmra.mrb[62].mxu0 %v320_v5  ;;  %789 = vmatprep.mubr.f32.mxu1 %v265_v8  ;;  %v327_v5 = vld [vmem:[%s6490_s0 + $0x900] sm:$0xff]  ;;  %v3460_v8 = vpack.c.bf16 %v461_v2, %v460_v1  ;;  %v160_v2 = vld [vmem:[%s6490_s0 + $0x3c8] sm:$0xff] }
  0xc0   :  { %1064 = vmatprep.mubr.f32.mxu0 %v330_v6  ;;  %v337_v6 = vld [vmem:[%s6490_s0 + $0x950] sm:$0xff]  ;;  %v119_v1 = vld [vmem:[%s6490_s0 + $0x280] sm:$0xff] }
  0xc2   :  { %790 = vmatmul.mubr.f32.gmra.mrb[50].mxu1 %v264_v11  ;;  %v98_v11 = vld [vmem:[%s6490_s0 + $0x1d8] sm:$0xff] }
  0xc3   :  { %1065 = vmatmul.mubr.f32.gmra.mrb[64].mxu0 %v329_v9  ;;  %794 = vmatprep.mubr.f32.mxu1 %v274_v12  ;;  %v490_v9 = vld [vmem:[%s6492_s2 + $0x440] sm:$0xff] }
  0xc4   :  { %1069 = vmatprep.mubr.f32.mxu0 %v339_v10  ;;  %v491_v10 = vld [vmem:[%s6492_s2 + $0x448] sm:$0xff]  ;;  %v462_v12 = vld [vmem:[%s6492_s2 + $0x360] sm:$0xff] }
  0xc6   :  { %795 = vmatmul.mubr.f32.gmra.mrb[52].mxu1 %v273_v15  ;;  %v336_v15 = vld [vmem:[%s6490_s0 + $0x948] sm:$0xff] }
  0xc7   :  { %1070 = vmatmul.mubr.f32.gmra.mrb[66].mxu0 %v338_v13  ;;  %799 = vmatprep.mubr.f32.mxu1 %v283_v16  ;;  %v463_v13 = vld [vmem:[%s6492_s2 + $0x368] sm:$0xff]  ;;  %v346_v16 = vld [vmem:[%s6490_s0 + $0x998] sm:$0xff] }
  0xc8   :  { %1074 = vmatprep.mubr.f32.mxu0 %v348_v14  ;;  %v4957_v14 = vpack.c.bf16 %v491_v10, %v490_v9  ;;  %v128_v9 = vld [vmem:[%s6490_s0 + $0x2c8] sm:$0xff]  ;;  %v169_v10 = vld [vmem:[%s6490_s0 + $0x410] sm:$0xff] }
  0xca   :  { %800 = vmatmul.mubr.f32.gmra.mrb[54].mxu1 %v282_v21  ;;  %v107_v21 = vld [vmem:[%s6490_s0 + $0x220] sm:$0xff] }
  0xcb   :  { %1075 = vmatmul.mubr.f32.gmra.mrb[68].mxu0 %v347_v17  ;;  %804 = vmatprep.mubr.f32.mxu1 %v292_v22  ;;  %v97_v17 = vld [vmem:[%s6490_s0 + $0x1d0] sm:$0xff] }
  0xcc   :  { %1144 = vmatprep.mubr.f32.mxu0 %v44_v18  ;;  %3688 = vmatpush3.bf16.msra.mxu1 %v4957_v14  ;;  %v3463_v18 = vpack.c.bf16 %v463_v13, %v462_v12  ;;  %v464_v22 = vld [vmem:[%s6492_s2 + $0x370] sm:$0xff]  ;;  %v179_v12 = vld [vmem:[%s6490_s0 + $0x460] sm:$0xff] }
  0xcd   :  { %3683 = vmatprep.subr.bf16.mxu1 %v6504_v3  ;;  %v480_v13 = vld [vmem:[%s6492_s2 + $0x3f0] sm:$0xff] }
  0xce   :  { %805 = vmatmul.mubr.f32.gmra.mrb[56].mxu1 %v291_v28  ;;  %v116_v28 = vld [vmem:[%s6490_s0 + $0x268] sm:$0xff] }
  0xcf   :  { %1145 = vmatmul.mubr.f32.vlgmr.msra.gmra.mrb[0].mxu0 %v43_v23  ;;  %809 = vmatprep.mubr.f32.mxu1 %v301_v29  ;;  %v465_v23 = vld [vmem:[%s6492_s2 + $0x378] sm:$0xff]  ;;  %v466_v29 = vld [vmem:[%s6492_s2 + $0x380] sm:$0xff] }
  0xd0   :  { %1149 = vmatprep.mubr.f32.mxu0 %v53_v25  ;;  %3446 = vmatpush1.bf16.msra.mxu0 %v3445_v24  ;;  %v4986_v24 = vpack.c.bf16 %v493_v20, %v492_v19  ;;  %v345_v25 = vld [vmem:[%s6490_s0 + $0x990] sm:$0xff]  ;;  %v3466_v27 = vpack.c.bf16 %v465_v23, %v464_v22  ;;  %v188_v19 = vld [vmem:[%s6490_s0 + $0x4a8] sm:$0xff]  ;;  %v146_v20 = vld [vmem:[%s6490_s0 + $0x358] sm:$0xff] }
  0xd1   :  { %3447 = vmatprep.subr.bf16.mxu0 %v6504_v3  ;;  %v197_v22 = vld [vmem:[%s6490_s0 + $0x4f0] sm:$0xff]  ;;  %v155_v23 = vld [vmem:[%s6490_s0 + $0x3a0] sm:$0xff] }
  0xd2   :  { %810 = vmatmul.mubr.f32.gmra.mrb[58].mxu1 %v300_v38  ;;  %v469_v38 = vld [vmem:[%s6492_s2 + $0x398] sm:$0xff] }
  0xd3   :  { %1150 = vmatmul.mubr.f32.gmra.mrb[2].mxu0 %v52_v30  ;;  %814 = vmatprep.mubr.f32.mxu1 %v310_v39  ;;  %v467_v30 = vld [vmem:[%s6492_s2 + $0x388] sm:$0xff]  ;;  %v83_v39 = vld [vmem:[%s6490_s0 + $0x160] sm:$0xff] }
  0xd4   :  { %1154 = vmatprep.mubr.f32.mxu0 %v62_v34  ;;  %3449 = vmatpush1.bf16.msra.mxu0 %v3448_v31  ;;  %v6502_v31 = vmov 0.0   ;;  %v3469_v34 = vpack.c.bf16 %v467_v30, %v466_v29  ;;  %v215_v29 = vld [vmem:[%s6490_s0 + $0x580] sm:$0xff]  ;;  %v173_v30 = vld [vmem:[%s6490_s0 + $0x430] sm:$0xff] }
  0xd5   :  { %3450 = vmatprep.subr.bf16.mxu0 %v6504_v3  ;;  %3689 = vmatpush3.bf16.msra.mxu1 %v4986_v24 }
  0xd6   :  { %815 = vmatmul.mubr.f32.gmra.mrb[60].mxu1 %v309_v48 }
  0xd7   :  { %1155 = vmatmul.mubr.f32.gmra.mrb[4].mxu0 %v61_v40  ;;  %819 = vmatprep.mubr.f32.mxu1 %v319_v49  ;;  %v124_v40 = vld [vmem:[%s6490_s0 + $0x2a8] sm:$0xff]  ;;  %v143_v49 = vld [vmem:[%s6490_s0 + $0x340] sm:$0xff] }
  0xd8   :  { %1159 = vmatprep.mubr.f32.mxu0 %v71_v44  ;;  %3452 = vmatpush1.bf16.msra.mxu0 %v3451_v41  ;;  %v3472_v41 = vpack.c.bf16 %v469_v38, %v468_v36  ;;  %v471_v44 = vld [vmem:[%s6492_s2 + $0x3a8] sm:$0xff]  ;;  %v233_v36 = vld [vmem:[%s6490_s0 + $0x610] sm:$0xff]  ;;  %v191_v38 = vld [vmem:[%s6490_s0 + $0x4c0] sm:$0xff] }
  0xd9   :  { %3453 = vmatprep.subr.bf16.mxu0 %v6504_v3  ;;  %v3475_v48 = vpack.c.bf16 %v471_v44, %v470_v43  ;;  %v251_v43 = vld [vmem:[%s6490_s0 + $0x6a0] sm:$0xff]  ;;  %v209_v44 = vld [vmem:[%s6490_s0 + $0x550] sm:$0xff] }
  0xda   :  { %820 = vmatmul.mubr.f32.gmra.mrb[62].mxu1 %v318_v58  ;;  %v475_v58 = vld [vmem:[%s6492_s2 + $0x3c8] sm:$0xff] }
  0xdb   :  { %1160 = vmatmul.mubr.f32.gmra.mrb[6].mxu0 %v70_v50  ;;  %824 = vmatprep.mubr.f32.mxu1 %v328_v59  ;;  %v472_v50 = vld [vmem:[%s6492_s2 + $0x3b0] sm:$0xff]  ;;  %v110_v59 = vld [vmem:[%s6490_s0 + $0x238] sm:$0xff] }
  0xdc   :  { %1164 = vmatprep.mubr.f32.mxu0 %v80_v54  ;;  %3455 = vmatpush1.bf16.msra.mxu0 %v3454_v51  ;;  %v473_v51 = vld [vmem:[%s6492_s2 + $0x3b8] sm:$0xff] }
  0xdd   :  { %3456 = vmatprep.subr.bf16.mxu0 %v6504_v3  ;;  %v3478_v54 = vpack.c.bf16 %v473_v51, %v472_v50  ;;  %v269_v50 = vld [vmem:[%s6490_s0 + $0x730] sm:$0xff]  ;;  %v227_v51 = vld [vmem:[%s6490_s0 + $0x5e0] sm:$0xff] }
  0xde   :  { %825 = vmatmul.mubr.f32.gmra.mrb[64].mxu1 %v327_v5 }
  0xdf   :  { %1165 = vmatmul.mubr.f32.gmra.mrb[8].mxu0 %v79_v60  ;;  %829 = vmatprep.mubr.f32.mxu1 %v337_v6  ;;  %v151_v60 = vld [vmem:[%s6490_s0 + $0x380] sm:$0xff]  ;;  %v170_v6 = vld [vmem:[%s6490_s0 + $0x418] sm:$0xff] }
  0xe0   :  { %1169 = vmatprep.mubr.f32.mxu0 %v89_v0  ;;  %3458 = vmatpush1.bf16.msra.mxu0 %v3457_v61  ;;  %v3481_v61 = vpack.c.bf16 %v475_v58, %v474_v56  ;;  %v477_v0 = vld [vmem:[%s6492_s2 + $0x3d8] sm:$0xff]  ;;  %v287_v56 = vld [vmem:[%s6490_s0 + $0x7c0] sm:$0xff]  ;;  %v245_v58 = vld [vmem:[%s6490_s0 + $0x670] sm:$0xff] }
  0xe1   :  { %3459 = vmatprep.subr.bf16.mxu0 %v6504_v3  ;;  %v3484_v5 = vpack.c.bf16 %v477_v0, %v476_v63  ;;  %v305_v63 = vld [vmem:[%s6490_s0 + $0x850] sm:$0xff]  ;;  %v263_v0 = vld [vmem:[%s6490_s0 + $0x700] sm:$0xff] }
  0xe2   :  { %830 = vmatmul.mubr.f32.gmra.mrb[66].mxu1 %v336_v15  ;;  %v481_v15 = vld [vmem:[%s6492_s2 + $0x3f8] sm:$0xff] }
  0xe3   :  { %1170 = vmatmul.mubr.f32.gmra.mrb[10].mxu0 %v88_v7  ;;  %834 = vmatprep.mubr.f32.mxu1 %v346_v16  ;;  %v478_v7 = vld [vmem:[%s6492_s2 + $0x3e0] sm:$0xff]  ;;  %v137_v16 = vld [vmem:[%s6490_s0 + $0x310] sm:$0xff] }
  0xe4   :  { %1174 = vmatprep.mubr.f32.mxu0 %v98_v11  ;;  %3461 = vmatpush1.bf16.msra.mxu0 %v3460_v8  ;;  %v479_v8 = vld [vmem:[%s6492_s2 + $0x3e8] sm:$0xff] }
  0xe5   :  { %3462 = vmatprep.subr.bf16.mxu0 %v6504_v3  ;;  %v3487_v11 = vpack.c.bf16 %v479_v8, %v478_v7  ;;  %v323_v7 = vld [vmem:[%s6490_s0 + $0x8e0] sm:$0xff]  ;;  %v281_v8 = vld [vmem:[%s6490_s0 + $0x790] sm:$0xff] }
  0xe6   :  { %835 = vmatmul.mubr.f32.gmra.mrb[68].mxu1 %v345_v25  ;;  %v196_v25 = vld [vmem:[%s6490_s0 + $0x4e8] sm:$0xff] }
  0xe7   :  { %1175 = vmatmul.mubr.f32.gmra.mrb[12].mxu0 %v97_v17  ;;  %3141 = vmatprep.mubr.msk.f32.mxu1 %vm4010_vm0, %v6502_v31  ;;  %v178_v17 = vld [vmem:[%s6490_s0 + $0x458] sm:$0xff] }
  0xe8   :  { %1179 = vmatprep.mubr.f32.mxu0 %v107_v21  ;;  %3464 = vmatpush1.bf16.msra.mxu0 %v3463_v18  ;;  %v3490_v18 = vpack.c.bf16 %v481_v15, %v480_v13  ;;  %v187_v21 = vld [vmem:[%s6490_s0 + $0x4a0] sm:$0xff]  ;;  %v341_v13 = vld [vmem:[%s6490_s0 + $0x970] sm:$0xff] }
  0xe9   :  { %3465 = vmatprep.subr.bf16.mxu0 %v6504_v3  ;;  %v299_v15 = vld [vmem:[%s6490_s0 + $0x820] sm:$0xff] }
  0xea   :  { %3142 = vmatmul.mubr.msk.f32.vlgmr.msra.gmra.mrb[70].mxu1 %vm494_vm1, %v74_v32  ;;  %v214_v32 = vld [vmem:[%s6490_s0 + $0x578] sm:$0xff] }
  0xeb   :  { %1180 = vmatmul.mubr.f32.gmra.mrb[14].mxu0 %v106_v26  ;;  %3144 = vmatprep.mubr.msk.f32.mxu1 %vm4010_vm0, %v6502_v31  ;;  %v206_v26 = vld [vmem:[%s6490_s0 + $0x538] sm:$0xff] }
  0xec   :  { %1184 = vmatprep.mubr.f32.mxu0 %v116_v28  ;;  %3467 = vmatpush1.bf16.msra.mxu0 %v3466_v27  ;;  %v164_v27 = vld [vmem:[%s6490_s0 + $0x3e8] sm:$0xff]  ;;  %v205_v28 = vld [vmem:[%s6490_s0 + $0x530] sm:$0xff] }
  0xed   :  { %3468 = vmatprep.subr.bf16.mxu0 %v6504_v3 }
  0xee   :  { %3145 = vmatmul.mubr.msk.f32.gmra.mrb[72].mxu1 %vm494_vm1, %v83_v39  ;;  %v232_v39 = vld [vmem:[%s6490_s0 + $0x608] sm:$0xff] }
  0xef   :  { %1185 = vmatmul.mubr.f32.gmra.mrb[16].mxu0 %v115_v33  ;;  %3147 = vmatprep.mubr.msk.f32.mxu1 %vm4010_vm0, %v6502_v31  ;;  %v224_v33 = vld [vmem:[%s6490_s0 + $0x5c8] sm:$0xff] }
  0xf0   :  { %1189 = vmatprep.mubr.f32.mxu0 %v125_v35  ;;  %3470 = vmatpush1.bf16.msra.mxu0 %v3469_v34  ;;  %v182_v34 = vld [vmem:[%s6490_s0 + $0x478] sm:$0xff]  ;;  %v223_v35 = vld [vmem:[%s6490_s0 + $0x5c0] sm:$0xff] }
  0xf1   :  { %3471 = vmatprep.subr.bf16.mxu0 %v6504_v3 }
  0xf2   :  { %3148 = vmatmul.mubr.msk.f32.gmra.mrb[74].mxu1 %vm494_vm1, %v92_v45  ;;  %v250_v45 = vld [vmem:[%s6490_s0 + $0x698] sm:$0xff] }
  0xf3   :  { %1190 = vmatmul.mubr.f32.gmra.mrb[18].mxu0 %v124_v40  ;;  %3150 = vmatprep.mubr.msk.f32.mxu1 %vm4010_vm0, %v6502_v31  ;;  %v242_v40 = vld [vmem:[%s6490_s0 + $0x658] sm:$0xff] }
  0xf4   :  { %1194 = vmatprep.mubr.f32.mxu0 %v134_v42  ;;  %3473 = vmatpush1.bf16.msra.mxu0 %v3472_v41  ;;  %v200_v41 = vld [vmem:[%s6490_s0 + $0x508] sm:$0xff]  ;;  %v241_v42 = vld [vmem:[%s6490_s0 + $0x650] sm:$0xff] }
  0xf5   :  { %3474 = vmatprep.subr.bf16.mxu0 %v6504_v3 }
  0xf6   :  { %3151 = vmatmul.mubr.msk.f32.gmra.mrb[76].mxu1 %vm494_vm1, %v101_v52  ;;  %v268_v52 = vld [vmem:[%s6490_s0 + $0x728] sm:$0xff] }
  0xf7   :  { %1195 = vmatmul.mubr.f32.gmra.mrb[20].mxu0 %v133_v46  ;;  %3153 = vmatprep.mubr.msk.f32.mxu1 %vm4010_vm0, %v6502_v31  ;;  %v260_v46 = vld [vmem:[%s6490_s0 + $0x6e8] sm:$0xff] }
  0xf8   :  { %1199 = vmatprep.mubr.f32.mxu0 %v143_v49  ;;  %3476 = vmatpush1.bf16.msra.mxu0 %v3475_v48  ;;  %v218_v48 = vld [vmem:[%s6490_s0 + $0x598] sm:$0xff]  ;;  %v259_v49 = vld [vmem:[%s6490_s0 + $0x6e0] sm:$0xff] }
  0xf9   :  { %3477 = vmatprep.subr.bf16.mxu0 %v6504_v3 }
  0xfa   :  { %3154 = vmatmul.mubr.msk.f32.gmra.mrb[78].mxu1 %vm494_vm1, %v110_v59  ;;  %v286_v59 = vld [vmem:[%s6490_s0 + $0x7b8] sm:$0xff] }
  0xfb   :  { %1200 = vmatmul.mubr.f32.gmra.mrb[22].mxu0 %v142_v53  ;;  %3156 = vmatprep.mubr.msk.f32.mxu1 %vm4010_vm0, %v6502_v31  ;;  %v278_v53 = vld [vmem:[%s6490_s0 + $0x778] sm:$0xff] }
  0xfc   :  { %1204 = vmatprep.mubr.f32.mxu0 %v152_v55  ;;  %3479 = vmatpush1.bf16.msra.mxu0 %v3478_v54  ;;  %v236_v54 = vld [vmem:[%s6490_s0 + $0x628] sm:$0xff]  ;;  %v277_v55 = vld [vmem:[%s6490_s0 + $0x770] sm:$0xff] }
  0xfd   :  { %3480 = vmatprep.subr.bf16.mxu0 %v6504_v3 }
  0xfe   :  { %3157 = vmatmul.mubr.msk.f32.gmra.mrb[80].mxu1 %vm494_vm1, %v119_v1  ;;  %v304_v1 = vld [vmem:[%s6490_s0 + $0x848] sm:$0xff] }
  0xff   :  { %1205 = vmatmul.mubr.f32.gmra.mrb[24].mxu0 %v151_v60  ;;  %3159 = vmatprep.mubr.msk.f32.mxu1 %vm4010_vm0, %v6502_v31  ;;  %v296_v60 = vld [vmem:[%s6490_s0 + $0x808] sm:$0xff] }
 0x100   :  { %1209 = vmatprep.mubr.f32.mxu0 %v161_v62  ;;  %3482 = vmatpush1.bf16.msra.mxu0 %v3481_v61  ;;  %v254_v61 = vld [vmem:[%s6490_s0 + $0x6b8] sm:$0xff]  ;;  %v295_v62 = vld [vmem:[%s6490_s0 + $0x800] sm:$0xff] }
 0x101   :  { %3483 = vmatprep.subr.bf16.mxu0 %v6504_v3 }
 0x102   :  { %3160 = vmatmul.mubr.msk.f32.gmra.mrb[82].mxu1 %vm494_vm1, %v128_v9  ;;  %v322_v9 = vld [vmem:[%s6490_s0 + $0x8d8] sm:$0xff] }
 0x103   :  { %1210 = vmatmul.mubr.f32.gmra.mrb[26].mxu0 %v160_v2  ;;  %3162 = vmatprep.mubr.msk.f32.mxu1 %vm4010_vm0, %v6502_v31  ;;  %v314_v2 = vld [vmem:[%s6490_s0 + $0x898] sm:$0xff] }
 0x104   :  { %1214 = vmatprep.mubr.f32.mxu0 %v170_v6  ;;  %3485 = vmatpush1.bf16.msra.mxu0 %v3484_v5  ;;  %v272_v5 = vld [vmem:[%s6490_s0 + $0x748] sm:$0xff]  ;;  %v313_v6 = vld [vmem:[%s6490_s0 + $0x890] sm:$0xff] }
 0x105   :  { %3486 = vmatprep.subr.bf16.mxu0 %v6504_v3 }
 0x106   :  { %3163 = vmatmul.mubr.msk.f32.gmra.mrb[84].mxu1 %vm494_vm1, %v137_v16  ;;  %v340_v16 = vld [vmem:[%s6490_s0 + $0x968] sm:$0xff] }
 0x107   :  { %1215 = vmatmul.mubr.f32.gmra.mrb[28].mxu0 %v169_v10  ;;  %3165 = vmatprep.mubr.msk.f32.mxu1 %vm4010_vm0, %v6502_v31  ;;  %v332_v10 = vld [vmem:[%s6490_s0 + $0x928] sm:$0xff] }
 0x108   :  { %1219 = vmatprep.mubr.f32.mxu0 %v179_v12  ;;  %3488 = vmatpush1.bf16.msra.mxu0 %v3487_v11  ;;  %v290_v11 = vld [vmem:[%s6490_s0 + $0x7d8] sm:$0xff]  ;;  %v331_v12 = vld [vmem:[%s6490_s0 + $0x920] sm:$0xff] }
 0x109   :  { %3489 = vmatprep.subr.bf16.mxu0 %v6504_v3 }
 0x10a   :  { %3166 = vmatmul.mubr.msk.f32.gmra.mrb[86].mxu1 %vm494_vm1, %v146_v20  ;;  %v46_v20 = vld [vmem:[%s6490_s0 + $0x38] sm:$0xff] }
 0x10b   :  { %1220 = vmatmul.mubr.f32.gmra.mrb[30].mxu0 %v178_v17  ;;  %3168 = vmatprep.mubr.msk.f32.mxu1 %vm4010_vm0, %v6502_v31  ;;  %v350_v17 = vld [vmem:[%s6490_s0 + $0x9b8] sm:$0xff] }
 0x10c   :  { %1224 = vmatprep.mubr.f32.mxu0 %v188_v19  ;;  %3491 = vmatpush1.bf16.msra.mxu0 %v3490_v18  ;;  %v308_v18 = vld [vmem:[%s6490_s0 + $0x868] sm:$0xff]  ;;  %v349_v19 = vld [vmem:[%s6490_s0 + $0x9b0] sm:$0xff] }
 0x10d   :  { %3492 = vmatprep.subr.bf16.mxu0 %v6504_v3 }
 0x10e   :  { %3169 = vmatmul.mubr.msk.f32.gmra.mrb[88].mxu1 %vm494_vm1, %v155_v23  ;;  %v55_v23 = vld [vmem:[%s6490_s0 + $0x80] sm:$0xff] }
 0x10f   :  { %1225 = vmatmul.mubr.f32.gmra.mrb[32].mxu0 %v187_v21  ;;  %3171 = vmatprep.mubr.msk.f32.mxu1 %vm4010_vm0, %v6502_v31  ;;  %v317_v21 = vld [vmem:[%s6490_s0 + $0x8b0] sm:$0xff] }
 0x110   :  { %1229 = vmatprep.mubr.f32.mxu0 %v197_v22  ;;  %v45_v22 = vld [vmem:[%s6490_s0 + $0x30] sm:$0xff] }
 0x112   :  { %3172 = vmatmul.mubr.msk.f32.gmra.mrb[90].mxu1 %vm494_vm1, %v164_v27 }
 0x113   :  { %1230 = vmatmul.mubr.f32.gmra.mrb[34].mxu0 %v196_v25  ;;  %3174 = vmatprep.mubr.msk.f32.mxu1 %vm4010_vm0, %v6502_v31  ;;  %v326_v25 = vld [vmem:[%s6490_s0 + $0x8f8] sm:$0xff] }
 0x114   :  { %1234 = vmatprep.mubr.f32.mxu0 %v206_v26  ;;  %v54_v26 = vld [vmem:[%s6490_s0 + $0x78] sm:$0xff] }
 0x116   :  { %3175 = vmatmul.mubr.msk.f32.gmra.mrb[92].mxu1 %vm494_vm1, %v173_v30  ;;  %v335_v30 = vld [vmem:[%s6490_s0 + $0x940] sm:$0xff] }
 0x117   :  { %1235 = vmatmul.mubr.f32.gmra.mrb[36].mxu0 %v205_v28  ;;  %3177 = vmatprep.mubr.msk.f32.mxu1 %vm4010_vm0, %v6502_v31  ;;  %v64_v28 = vld [vmem:[%s6490_s0 + $0xc8] sm:$0xff] }
 0x118   :  { %1239 = vmatprep.mubr.f32.mxu0 %v215_v29 }
 0x11a   :  { %3178 = vmatmul.mubr.msk.f32.gmra.mrb[94].mxu1 %vm494_vm1, %v182_v34 }
 0x11b   :  { %1240 = vmatmul.mubr.f32.gmra.mrb[38].mxu0 %v214_v32  ;;  %3180 = vmatprep.mubr.msk.f32.mxu1 %vm4010_vm0, %v6502_v31 }
 0x11c   :  { %1244 = vmatprep.mubr.f32.mxu0 %v224_v33  ;;  %v73_v33 = vld [vmem:[%s6490_s0 + $0x110] sm:$0xff] }
 0x11e   :  { %3181 = vmatmul.mubr.msk.f32.gmra.mrb[96].mxu1 %vm494_vm1, %v191_v38  ;;  %v82_v38 = vld [vmem:[%s6490_s0 + $0x158] sm:$0xff] }
 0x11f   :  { %1245 = vmatmul.mubr.f32.gmra.mrb[40].mxu0 %v223_v35  ;;  %3183 = vmatprep.mubr.msk.f32.mxu1 %vm4010_vm0, %v6502_v31  ;;  %v344_v35 = vld [vmem:[%s6490_s0 + $0x988] sm:$0xff] }
 0x120   :  { %1249 = vmatprep.mubr.f32.mxu0 %v233_v36 }
 0x122   :  { %3184 = vmatmul.mubr.msk.f32.gmra.mrb[98].mxu1 %vm494_vm1, %v200_v41 }
 0x123   :  { %1250 = vmatmul.mubr.f32.gmra.mrb[42].mxu0 %v232_v39  ;;  %3186 = vmatprep.mubr.msk.f32.mxu1 %vm4010_vm0, %v6502_v31 }
 0x124   :  { %1254 = vmatprep.mubr.f32.mxu0 %v242_v40  ;;  %v353_v40 = vld [vmem:[%s6490_s0 + $0x9d0] sm:$0xff] }
 0x126   :  { %3187 = vmatmul.mubr.msk.f32.gmra.mrb[100].mxu1 %vm494_vm1, %v209_v44  ;;  %v90_v44 = vld [vmem:[%s6490_s0 + $0x198] sm:$0xff] }
 0x127   :  { %1255 = vmatmul.mubr.f32.gmra.mrb[44].mxu0 %v241_v42  ;;  %3189 = vmatprep.mubr.msk.f32.mxu1 %vm4010_vm0, %v6502_v31  ;;  %v91_v42 = vld [vmem:[%s6490_s0 + $0x1a0] sm:$0xff] }
 0x128   :  { %1259 = vmatprep.mubr.f32.mxu0 %v251_v43 }
 0x12a   :  { %3190 = vmatmul.mubr.msk.f32.gmra.mrb[102].mxu1 %vm494_vm1, %v218_v48 }
 0x12b   :  { %1260 = vmatmul.mubr.f32.gmra.mrb[46].mxu0 %v250_v45  ;;  %3192 = vmatprep.mubr.msk.f32.mxu1 %vm4010_vm0, %v6502_v31  ;;  %v100_v45 = vld [vmem:[%s6490_s0 + $0x1e8] sm:$0xff] }
 0x12c   :  { %1264 = vmatprep.mubr.f32.mxu0 %v260_v46 }
 0x12e   :  { %3193 = vmatmul.mubr.msk.f32.gmra.mrb[104].mxu1 %vm494_vm1, %v227_v51 }
 0x12f   :  { %1265 = vmatmul.mubr.f32.gmra.mrb[48].mxu0 %v259_v49  ;;  %3195 = vmatprep.mubr.msk.f32.mxu1 %vm4010_vm0, %v6502_v31  ;;  %v99_v49 = vld [vmem:[%s6490_s0 + $0x1e0] sm:$0xff] }
 0x130   :  { %1269 = vmatprep.mubr.f32.mxu0 %v269_v50  ;;  %v109_v50 = vld [vmem:[%s6490_s0 + $0x230] sm:$0xff] }
 0x131   :  { %v5402_v27 = vpop.f32.mrb[0].mxu1 }
 0x132   :  { %3196 = vmatmul.mubr.msk.f32.gmra.mrb[106].mxu1 %vm494_vm1, %v236_v54  ;;  %6506 = vst [vmem:[#allocation5_spill] sm:$0xff] %v5402_v27  ;;  %v668_v29 = vpop.f32.mrb[1].mxu1  ;;  %v108_v54 = vld [vmem:[%s6490_s0 + $0x228] sm:$0xff] }
 0x133   :  { %1270 = vmatmul.mubr.f32.gmra.mrb[50].mxu0 %v268_v52  ;;  %3198 = vmatprep.mubr.msk.f32.mxu1 %vm4010_vm0, %v6502_v31 }
 0x134   :  { %1274 = vmatprep.mubr.f32.mxu0 %v278_v53 }
 0x135   :  { %v5418_v32 = vpop.f32.mrb[2].mxu1 }
 0x136   :  { %3199 = vmatmul.mubr.msk.f32.gmra.mrb[108].mxu1 %vm494_vm1, %v245_v58  ;;  %6507 = vst [vmem:[#allocation6_spill] sm:$0xff] %v5418_v32  ;;  %v673_v34 = vpop.f32.mrb[3].mxu1 }
 0x137   :  { %1275 = vmatmul.mubr.f32.gmra.mrb[52].mxu0 %v277_v55  ;;  %3201 = vmatprep.mubr.msk.f32.mxu1 %vm4010_vm0, %v6502_v31  ;;  %v172_v34 = vld [vmem:[%s6490_s0 + $0x428] sm:$0xff] }
 0x138   :  { %1279 = vmatprep.mubr.f32.mxu0 %v287_v56 }
 0x139   :  { %v5434_v36 = vpop.f32.mrb[4].mxu1 }
 0x13a   :  { %3202 = vmatmul.mubr.msk.f32.gmra.mrb[110].mxu1 %vm494_vm1, %v254_v61  ;;  %6508 = vst [vmem:[#allocation7_spill] sm:$0xff] %v5434_v36  ;;  %v678_v39 = vpop.f32.mrb[5].mxu1 }
 0x13b   :  { %1280 = vmatmul.mubr.f32.gmra.mrb[54].mxu0 %v286_v59  ;;  %3204 = vmatprep.mubr.msk.f32.mxu1 %vm4010_vm0, %v6502_v31  ;;  %v171_v39 = vld [vmem:[%s6490_s0 + $0x420] sm:$0xff] }
 0x13c   :  { %1284 = vmatprep.mubr.f32.mxu0 %v296_v60  ;;  %v117_v60 = vld [vmem:[%s6490_s0 + $0x270] sm:$0xff] }
 0x13d   :  { %v5450_v41 = vpop.f32.mrb[6].mxu1 }
 0x13e   :  { %3205 = vmatmul.mubr.msk.f32.gmra.mrb[112].mxu1 %vm494_vm1, %v263_v0  ;;  %v683_v43 = vpop.f32.mrb[7].mxu1 }
 0x13f   :  { %1285 = vmatmul.mubr.f32.gmra.mrb[56].mxu0 %v295_v62  ;;  %3207 = vmatprep.mubr.msk.f32.mxu1 %vm4010_vm0, %v6502_v31  ;;  %v127_v62 = vld [vmem:[%s6490_s0 + $0x2c0] sm:$0xff] }
 0x140   :  { %1289 = vmatprep.mubr.f32.mxu0 %v305_v63 }
 0x142   :  { %3208 = vmatmul.mubr.msk.f32.gmra.mrb[114].mxu1 %vm494_vm1, %v272_v5 }
 0x143   :  { %1290 = vmatmul.mubr.f32.gmra.mrb[58].mxu0 %v304_v1  ;;  %3210 = vmatprep.mubr.msk.f32.mxu1 %vm4010_vm0, %v6502_v31 }
 0x144   :  { %1294 = vmatprep.mubr.f32.mxu0 %v314_v2  ;;  %v126_v2 = vld [vmem:[%s6490_s0 + $0x2b8] sm:$0xff] }
 0x146   :  { %3211 = vmatmul.mubr.msk.f32.gmra.mrb[116].mxu1 %vm494_vm1, %v281_v8 }
 0x147   :  { %1295 = vmatmul.mubr.f32.gmra.mrb[60].mxu0 %v313_v6  ;;  %3213 = vmatprep.mubr.msk.f32.mxu1 %vm4010_vm0, %v6502_v31  ;;  %v136_v6 = vld [vmem:[%s6490_s0 + $0x308] sm:$0xff] }
 0x148   :  { %1299 = vmatprep.mubr.f32.mxu0 %v323_v7 }
 0x14a   :  { %3214 = vmatmul.mubr.msk.f32.gmra.mrb[118].mxu1 %vm494_vm1, %v290_v11 }
 0x14b   :  { %1300 = vmatmul.mubr.f32.gmra.mrb[62].mxu0 %v322_v9  ;;  %3216 = vmatprep.mubr.msk.f32.mxu1 %vm4010_vm0, %v6502_v31 }
 0x14c   :  { %1304 = vmatprep.mubr.f32.mxu0 %v332_v10  ;;  %v135_v10 = vld [vmem:[%s6490_s0 + $0x300] sm:$0xff] }
 0x14e   :  { %3217 = vmatmul.mubr.msk.f32.gmra.mrb[120].mxu1 %vm494_vm1, %v299_v15 }
 0x14f   :  { %1305 = vmatmul.mubr.f32.gmra.mrb[64].mxu0 %v331_v12  ;;  %3219 = vmatprep.mubr.msk.f32.mxu1 %vm4010_vm0, %v6502_v31  ;;  %v145_v12 = vld [vmem:[%s6490_s0 + $0x350] sm:$0xff] }
 0x150   :  { %1309 = vmatprep.mubr.f32.mxu0 %v341_v13 }
 0x152   :  { %3220 = vmatmul.mubr.msk.f32.gmra.mrb[122].mxu1 %vm494_vm1, %v308_v18 }
 0x153   :  { %1310 = vmatmul.mubr.f32.gmra.mrb[66].mxu0 %v340_v16  ;;  %3222 = vmatprep.mubr.msk.f32.mxu1 %vm4010_vm0, %v6502_v31 }
 0x154   :  { %1314 = vmatprep.mubr.f32.mxu0 %v350_v17  ;;  %v144_v17 = vld [vmem:[%s6490_s0 + $0x348] sm:$0xff] }
 0x156   :  { %3223 = vmatmul.mubr.msk.f32.gmra.mrb[124].mxu1 %vm494_vm1, %v317_v21 }
 0x157   :  { %1315 = vmatmul.mubr.f32.gmra.mrb[68].mxu0 %v349_v19  ;;  %3225 = vmatprep.mubr.msk.f32.mxu1 %vm4010_vm0, %v6502_v31  ;;  %v154_v19 = vld [vmem:[%s6490_s0 + $0x398] sm:$0xff] }
 0x158   :  { %1384 = vmatprep.mubr.f32.mxu0 %v46_v20 }
 0x15a   :  { %3226 = vmatmul.mubr.msk.f32.gmra.mrb[126].mxu1 %vm494_vm1, %v326_v25 }
 0x15b   :  { %1385 = vmatmul.mubr.f32.vlgmr.msra.gmra.mrb[0].mxu0 %v45_v22  ;;  %3228 = vmatprep.mubr.msk.f32.mxu1 %vm4010_vm0, %v6502_v31 }
 0x15c   :  { %1389 = vmatprep.mubr.f32.mxu0 %v55_v23  ;;  %3494 = vmatpush3.bf16.msra.mxu0 %v4842_v37  ;;  %v63_v37 = vld [vmem:[%s6490_s0 + $0xc0] sm:$0xff]  ;;  %v153_v23 = vld [vmem:[%s6490_s0 + $0x390] sm:$0xff] }
 0x15d   :  { %3495 = vmatprep.subr.bf16.mxu0 %v6504_v3 }
 0x15e   :  { %3229 = vmatmul.mubr.msk.f32.gmra.mrb[128].mxu1 %vm494_vm1, %v335_v30 }
 0x15f   :  { %1390 = vmatmul.mubr.f32.gmra.mrb[2].mxu0 %v54_v26  ;;  %3231 = vmatprep.mubr.msk.f32.mxu1 %vm4010_vm0, %v6502_v31  ;;  %v163_v26 = vld [vmem:[%s6490_s0 + $0x3e0] sm:$0xff] }
 0x160   :  { %1394 = vmatprep.mubr.f32.mxu0 %v64_v28  ;;  %3497 = vmatpush3.bf16.msra.mxu0 %v4870_v47  ;;  %v72_v47 = vld [vmem:[%s6490_s0 + $0x108] sm:$0xff] }
 0x161   :  { %3498 = vmatprep.subr.bf16.mxu0 %v6504_v3 }
 0x162   :  { %3232 = vmatmul.mubr.msk.f32.gmra.mrb[130].mxu1 %vm494_vm1, %v344_v35 }
 0x163   :  { %1395 = vmatmul.mubr.f32.gmra.mrb[4].mxu0 %v63_v37  ;;  %3234 = vmatprep.mubr.msk.f32.mxu1 %vm4010_vm0, %v6502_v31  ;;  %v162_v37 = vld [vmem:[%s6490_s0 + $0x3d8] sm:$0xff] }
 0x164   :  { %1399 = vmatprep.mubr.f32.mxu0 %v73_v33  ;;  %3500 = vmatpush3.bf16.msra.mxu0 %v4899_v57  ;;  %v81_v57 = vld [vmem:[%s6490_s0 + $0x150] sm:$0xff] }
 0x165   :  { %3501 = vmatprep.subr.bf16.mxu0 %v6504_v3 }
 0x166   :  { %3235 = vmatmul.mubr.msk.f32.gmra.mrb[132].mxu1 %vm494_vm1, %v353_v40 }
 0x167   :  { %1400 = vmatmul.mubr.f32.gmra.mrb[6].mxu0 %v72_v47 }
 0x168   :  { %1404 = vmatprep.mubr.f32.mxu0 %v82_v38  ;;  %3503 = vmatpush3.bf16.msra.mxu0 %v4928_v4  ;;  %v5461_v4 = vpop.f32.mrb[8].mxu1 }
 0x169   :  { %3504 = vmatprep.subr.bf16.mxu0 %v6504_v3  ;;  %v688_v46 = vpop.f32.mrb[9].mxu1 }
 0x16a   :  { %v5467_v48 = vpop.f32.mrb[10].mxu1 }
 0x16b   :  { %1405 = vmatmul.mubr.f32.gmra.mrb[8].mxu0 %v81_v57  ;;  %v181_v57 = vld [vmem:[%s6490_s0 + $0x470] sm:$0xff] }
 0x16c   :  { %1409 = vmatprep.mubr.f32.mxu0 %v91_v42  ;;  %3506 = vmatpush3.bf16.msra.mxu0 %v4957_v14  ;;  %v693_v14 = vpop.f32.mrb[11].mxu1 }
 0x16d   :  { %3507 = vmatprep.subr.bf16.mxu0 %v6504_v3  ;;  %v5476_v51 = vpop.f32.mrb[12].mxu1 }
 0x16e   :  { %v698_v52 = vpop.f32.mrb[13].mxu1 }
 0x16f   :  { %1410 = vmatmul.mubr.f32.gmra.mrb[10].mxu0 %v90_v44  ;;  %v5478_v53 = vpop.f32.mrb[14].mxu1  ;;  %v189_v52 = vld [vmem:[%s6490_s0 + $0x4b0] sm:$0xff] }
 0x170   :  { %1414 = vmatprep.mubr.f32.mxu0 %v100_v45  ;;  %3509 = vmatpush3.bf16.msra.mxu0 %v4986_v24  ;;  %v703_v55 = vpop.f32.mrb[15].mxu1  ;;  %v118_v24 = vld [vmem:[%s6490_s0 + $0x278] sm:$0xff]  ;;  %v180_v45 = vld [vmem:[%s6490_s0 + $0x468] sm:$0xff] }
 0x171   :  { %v5486_v56 = vpop.f32.mrb[16].mxu1  ;;  %v199_v55 = vld [vmem:[%s6490_s0 + $0x500] sm:$0xff] }
 0x172   :  { %v708_v58 = vpop.f32.mrb[17].mxu1 }
 0x173   :  { %1415 = vmatmul.mubr.f32.gmra.mrb[12].mxu0 %v99_v49  ;;  %v5488_v59 = vpop.f32.mrb[18].mxu1  ;;  %v190_v49 = vld [vmem:[%s6490_s0 + $0x4b8] sm:$0xff] }
 0x174   :  { %1419 = vmatprep.mubr.f32.mxu0 %v109_v50  ;;  %v713_v61 = vpop.f32.mrb[19].mxu1  ;;  %v198_v58 = vld [vmem:[%s6490_s0 + $0x4f8] sm:$0xff] }
 0x175   :  { %v5496_v63 = vpop.f32.mrb[20].mxu1  ;;  %v208_v61 = vld [vmem:[%s6490_s0 + $0x548] sm:$0xff] }
 0x176   :  { %v718_v0 = vpop.f32.mrb[21].mxu1 }
 0x177   :  { %1420 = vmatmul.mubr.f32.gmra.mrb[14].mxu0 %v108_v54  ;;  %v5498_v1 = vpop.f32.mrb[22].mxu1  ;;  %v207_v0 = vld [vmem:[%s6490_s0 + $0x540] sm:$0xff] }
 0x178   :  { %1424 = vmatprep.mubr.f32.mxu0 %v118_v24  ;;  %v723_v5 = vpop.f32.mrb[23].mxu1 }
 0x179   :  { %v5506_v7 = vpop.f32.mrb[24].mxu1  ;;  %v217_v5 = vld [vmem:[%s6490_s0 + $0x590] sm:$0xff] }
 0x17a   :  { %v728_v8 = vpop.f32.mrb[25].mxu1 }
 0x17b   :  { %1425 = vmatmul.mubr.f32.gmra.mrb[16].mxu0 %v117_v60  ;;  %v5508_v9 = vpop.f32.mrb[26].mxu1  ;;  %v216_v8 = vld [vmem:[%s6490_s0 + $0x588] sm:$0xff] }
 0x17c   :  { %1429 = vmatprep.mubr.f32.mxu0 %v127_v62  ;;  %v733_v11 = vpop.f32.mrb[27].mxu1 }
 0x17d   :  { %v5516_v13 = vpop.f32.mrb[28].mxu1  ;;  %v226_v11 = vld [vmem:[%s6490_s0 + $0x5d8] sm:$0xff] }
 0x17e   :  { %v738_v15 = vpop.f32.mrb[29].mxu1 }
 0x17f   :  { %1430 = vmatmul.mubr.f32.gmra.mrb[18].mxu0 %v126_v2  ;;  %v5518_v16 = vpop.f32.mrb[30].mxu1  ;;  %v225_v15 = vld [vmem:[%s6490_s0 + $0x5d0] sm:$0xff] }
 0x180   :  { %1434 = vmatprep.mubr.f32.mxu0 %v136_v6  ;;  %v743_v18 = vpop.f32.mrb[31].mxu1 }
 0x181   :  { %v5526_v20 = vpop.f32.mrb[32].mxu1  ;;  %v235_v18 = vld [vmem:[%s6490_s0 + $0x620] sm:$0xff] }
 0x182   :  { %v748_v21 = vpop.f32.mrb[33].mxu1 }
 0x183   :  { %1435 = vmatmul.mubr.f32.gmra.mrb[20].mxu0 %v135_v10  ;;  %v5528_v22 = vpop.f32.mrb[34].mxu1  ;;  %v234_v21 = vld [vmem:[%s6490_s0 + $0x618] sm:$0xff] }
 0x184   :  { %1439 = vmatprep.mubr.f32.mxu0 %v145_v12  ;;  %v753_v25 = vpop.f32.mrb[35].mxu1 }
 0x185   :  { %v5536_v28 = vpop.f32.mrb[36].mxu1  ;;  %v244_v25 = vld [vmem:[%s6490_s0 + $0x668] sm:$0xff] }
 0x186   :  { %v758_v29 = vpop.f32.mrb[37].mxu1 }
 0x187   :  { %1440 = vmatmul.mubr.f32.gmra.mrb[22].mxu0 %v144_v17  ;;  %v5538_v30 = vpop.f32.mrb[38].mxu1  ;;  %v243_v29 = vld [vmem:[%s6490_s0 + $0x660] sm:$0xff] }
 0x188   :  { %1444 = vmatprep.mubr.f32.mxu0 %v154_v19  ;;  %v763_v33 = vpop.f32.mrb[39].mxu1 }
 0x189   :  { %v5546_v35 = vpop.f32.mrb[40].mxu1  ;;  %v253_v33 = vld [vmem:[%s6490_s0 + $0x6b0] sm:$0xff] }
 0x18a   :  { %v768_v47 = vpop.f32.mrb[41].mxu1 }
 0x18b   :  { %1445 = vmatmul.mubr.f32.gmra.mrb[24].mxu0 %v153_v23  ;;  %v5548_v38 = vpop.f32.mrb[42].mxu1  ;;  %v252_v47 = vld [vmem:[%s6490_s0 + $0x6a8] sm:$0xff] }
 0x18c   :  { %1449 = vmatprep.mubr.f32.mxu0 %v163_v26  ;;  %v773_v40 = vpop.f32.mrb[43].mxu1 }
 0x18d   :  { %v5556_v42 = vpop.f32.mrb[44].mxu1  ;;  %v262_v40 = vld [vmem:[%s6490_s0 + $0x6f8] sm:$0xff] }
 0x18e   :  { %v778_v43 = vpop.f32.mrb[45].mxu1 }
 0x18f   :  { %1450 = vmatmul.mubr.f32.gmra.mrb[26].mxu0 %v162_v37  ;;  %v5558_v44 = vpop.f32.mrb[46].mxu1  ;;  %v261_v43 = vld [vmem:[%s6490_s0 + $0x6f0] sm:$0xff] }
 0x190   :  { %1454 = vmatprep.mubr.f32.mxu0 %v172_v34  ;;  %v783_v46 = vpop.f32.mrb[47].mxu1 }
 0x191   :  { %v5566_v14 = vpop.f32.mrb[48].mxu1  ;;  %v271_v46 = vld [vmem:[%s6490_s0 + $0x740] sm:$0xff] }
 0x192   :  { %v788_v50 = vpop.f32.mrb[49].mxu1 }
 0x193   :  { %1455 = vmatmul.mubr.f32.gmra.mrb[28].mxu0 %v171_v39  ;;  %v270_v50 = vld [vmem:[%s6490_s0 + $0x738] sm:$0xff] }
 0x194   :  { %1459 = vmatprep.mubr.f32.mxu0 %v181_v57 }
 0x195   :  { %v5571_v54 = vpop.f32.mrb[50].mxu1 }
 0x196   :  { %v793_v24 = vpop.f32.mrb[51].mxu1 }
 0x197   :  { %1460 = vmatmul.mubr.f32.gmra.mrb[30].mxu0 %v180_v45 }
 0x198   :  { %1464 = vmatprep.mubr.f32.mxu0 %v190_v49 }
 0x199   :  { %v5579_v60 = vpop.f32.mrb[52].mxu1 }
 0x19a   :  { %v798_v62 = vpop.f32.mrb[53].mxu1 }
 0x19b   :  { %1465 = vmatmul.mubr.f32.gmra.mrb[32].mxu0 %v189_v52  ;;  %v289_v62 = vld [vmem:[%s6490_s0 + $0x7d0] sm:$0xff] }
 0x19c   :  { %1469 = vmatprep.mubr.f32.mxu0 %v199_v55  ;;  %v280_v55 = vld [vmem:[%s6490_s0 + $0x788] sm:$0xff] }
 0x19d   :  { %v5587_v2 = vpop.f32.mrb[54].mxu1 }
 0x19e   :  { %v803_v6 = vpop.f32.mrb[55].mxu1 }
 0x19f   :  { %1470 = vmatmul.mubr.f32.gmra.mrb[34].mxu0 %v198_v58  ;;  %v279_v58 = vld [vmem:[%s6490_s0 + $0x780] sm:$0xff] }
 0x1a0   :  { %1474 = vmatprep.mubr.f32.mxu0 %v208_v61 }
 0x1a1   :  { %v5595_v10 = vpop.f32.mrb[56].mxu1 }
 0x1a2   :  { %6509 = vst [vmem:[#allocation8_spill] sm:$0xff] %v5595_v10  ;;  %v808_v12 = vpop.f32.mrb[57].mxu1 }
 0x1a3   :  { %1475 = vmatmul.mubr.f32.gmra.mrb[36].mxu0 %v207_v0  ;;  %v297_v12 = vld [vmem:[%s6490_s0 + $0x810] sm:$0xff] }
 0x1a4   :  { %1479 = vmatprep.mubr.f32.mxu0 %v217_v5  ;;  %v288_v5 = vld [vmem:[%s6490_s0 + $0x7c8] sm:$0xff] }
 0x1a5   :  { %v5603_v17 = vpop.f32.mrb[58].mxu1 }
 0x1a6   :  { %6510 = vst [vmem:[#allocation9_spill] sm:$0xff] %v5603_v17  ;;  %v813_v19 = vpop.f32.mrb[59].mxu1 }
 0x1a7   :  { %1480 = vmatmul.mubr.f32.gmra.mrb[38].mxu0 %v216_v8  ;;  %v298_v8 = vld [vmem:[%s6490_s0 + $0x818] sm:$0xff] }
 0x1a8   :  { %1484 = vmatprep.mubr.f32.mxu0 %v226_v11 }
 0x1a9   :  { %v5611_v23 = vpop.f32.mrb[60].mxu1 }
 0x1aa   :  { %6511 = vst [vmem:[#allocation10_spill] sm:$0xff] %v5611_v23  ;;  %v818_v26 = vpop.f32.mrb[61].mxu1 }
 0x1ab   :  { %1485 = vmatmul.mubr.f32.gmra.mrb[40].mxu0 %v225_v15  ;;  %v316_v26 = vld [vmem:[%s6490_s0 + $0x8a8] sm:$0xff] }
 0x1ac   :  { %1489 = vmatprep.mubr.f32.mxu0 %v235_v18  ;;  %v307_v18 = vld [vmem:[%s6490_s0 + $0x860] sm:$0xff] }
 0x1ad   :  { %v5619_v37 = vpop.f32.mrb[62].mxu1 }
 0x1ae   :  { %6512 = vst [vmem:[#allocation11_spill] sm:$0xff] %v5619_v37  ;;  %v823_v34 = vpop.f32.mrb[63].mxu1 }
 0x1af   :  { %1490 = vmatmul.mubr.f32.gmra.mrb[42].mxu0 %v234_v21  ;;  %v306_v21 = vld [vmem:[%s6490_s0 + $0x858] sm:$0xff] }
 0x1b0   :  { %1494 = vmatprep.mubr.f32.mxu0 %v244_v25 }
 0x1b1   :  { %v5627_v39 = vpop.f32.mrb[64].mxu1 }
 0x1b2   :  { %6513 = vst [vmem:[#allocation12_spill] sm:$0xff] %v5627_v39  ;;  %v828_v57 = vpop.f32.mrb[65].mxu1 }
 0x1b3   :  { %1495 = vmatmul.mubr.f32.gmra.mrb[44].mxu0 %v243_v29  ;;  %v324_v57 = vld [vmem:[%s6490_s0 + $0x8e8] sm:$0xff] }
 0x1b4   :  { %1499 = vmatprep.mubr.f32.mxu0 %v253_v33  ;;  %v315_v33 = vld [vmem:[%s6490_s0 + $0x8a0] sm:$0xff] }
 0x1b5   :  { %v5635_v45 = vpop.f32.mrb[66].mxu1 }
 0x1b6   :  { %6514 = vst [vmem:[#allocation13_spill] sm:$0xff] %v5635_v45  ;;  %v833_v49 = vpop.f32.mrb[67].mxu1 }
 0x1b7   :  { %1500 = vmatmul.mubr.f32.gmra.mrb[46].mxu0 %v252_v47  ;;  %v325_v47 = vld [vmem:[%s6490_s0 + $0x8f0] sm:$0xff] }
 0x1b8   :  { %1504 = vmatprep.mubr.f32.mxu0 %v262_v40 }
 0x1b9   :  { %v5643_v52 = vpop.f32.mrb[68].mxu1 }
 0x1ba   :  { %6515 = vst [vmem:[#allocation14_spill] sm:$0xff] %v5643_v52  ;;  %v838_v24 = vpop.f32.mrb[69].mxu1 }
 0x1bb   :  { %1505 = vmatmul.mubr.f32.gmra.mrb[48].mxu0 %v261_v43  ;;  %v343_v24 = vld [vmem:[%s6490_s0 + $0x980] sm:$0xff] }
 0x1bc   :  { %1509 = vmatprep.mubr.f32.mxu0 %v271_v46  ;;  %v334_v46 = vld [vmem:[%s6490_s0 + $0x938] sm:$0xff] }
 0x1bd   :  { %v5651_v61 = vpop.f32.mrb[70].mxu1 }
 0x1be   :  { %v3143_v0 = vpop.f32.mrb[71].mxu1 }
 0x1bf   :  { %1510 = vmatmul.mubr.f32.gmra.mrb[50].mxu0 %v270_v50  ;;  %v333_v50 = vld [vmem:[%s6490_s0 + $0x930] sm:$0xff] }
 0x1c0   :  { %1514 = vmatprep.mubr.f32.mxu0 %v280_v55 }
 0x1c1   :  { %v5659_v6 = vpop.f32.mrb[72].mxu1 }
 0x1c2   :  { %v3146_v11 = vpop.f32.mrb[73].mxu1 }
 0x1c3   :  { %1515 = vmatmul.mubr.f32.gmra.mrb[52].mxu0 %v279_v58  ;;  %v351_v11 = vld [vmem:[%s6490_s0 + $0x9c0] sm:$0xff] }
 0x1c4   :  { %1519 = vmatprep.mubr.f32.mxu0 %v289_v62  ;;  %v342_v62 = vld [vmem:[%s6490_s0 + $0x978] sm:$0xff] }
 0x1c5   :  { %v5667_v15 = vpop.f32.mrb[74].mxu1 }
 0x1c6   :  { %v3149_v19 = vpop.f32.mrb[75].mxu1 }
 0x1c7   :  { %1520 = vmatmul.mubr.f32.gmra.mrb[54].mxu0 %v288_v5  ;;  %v352_v5 = vld [vmem:[%s6490_s0 + $0x9c8] sm:$0xff]  ;;  %v47_v19 = vld [vmem:[%s6490_s0 + $0x40] sm:$0xff] }
 0x1c8   :  { %1524 = vmatprep.mubr.f32.mxu0 %v298_v8 }
 0x1c9   :  { %v5675_v25 = vpop.f32.mrb[76].mxu1 }
 0x1ca   :  { %v3152_v29 = vpop.f32.mrb[77].mxu1 }
 0x1cb   :  { %1525 = vmatmul.mubr.f32.gmra.mrb[56].mxu0 %v297_v12  ;;  %v56_v29 = vld [vmem:[%s6490_s0 + $0x88] sm:$0xff] }
 0x1cc   :  { %1529 = vmatprep.mubr.f32.mxu0 %v307_v18 }
 0x1cd   :  { %v5683_v34 = vpop.f32.mrb[78].mxu1 }
 0x1ce   :  { %v3155_v40 = vpop.f32.mrb[79].mxu1 }
 0x1cf   :  { %1530 = vmatmul.mubr.f32.gmra.mrb[58].mxu0 %v306_v21  ;;  %v65_v40 = vld [vmem:[%s6490_s0 + $0xd0] sm:$0xff] }
 0x1d0   :  { %1534 = vmatprep.mubr.f32.mxu0 %v316_v26 }
 0x1d1   :  { %v5691_v43 = vpop.f32.mrb[80].mxu1 }
 0x1d2   :  { %v3158_v49 = vpop.f32.mrb[81].mxu1 }
 0x1d3   :  { %1535 = vmatmul.mubr.f32.gmra.mrb[60].mxu0 %v315_v33 }
 0x1d4   :  { %1539 = vmatprep.mubr.f32.mxu0 %v325_v47 }
 0x1d5   :  { %v5699_v55 = vpop.f32.mrb[82].mxu1 }
 0x1d6   :  { %v3161_v58 = vpop.f32.mrb[83].mxu1 }
 0x1d7   :  { %1540 = vmatmul.mubr.f32.gmra.mrb[62].mxu0 %v324_v57 }
 0x1d8   :  { %1544 = vmatprep.mubr.f32.mxu0 %v334_v46 }
 0x1d9   :  { %v5707_v0 = vpop.f32.mrb[84].mxu1 }
 0x1da   :  { %v3164_v8 = vpop.f32.mrb[85].mxu1 }
 0x1db   :  { %1545 = vmatmul.mubr.f32.gmra.mrb[64].mxu0 %v333_v50 }
 0x1dc   :  { %1549 = vmatprep.mubr.f32.mxu0 %v343_v24 }
 0x1dd   :  { %v5715_v12 = vpop.f32.mrb[86].mxu1 }
 0x1de   :  { %v3167_v18 = vpop.f32.mrb[87].mxu1 }
 0x1df   :  { %1550 = vmatmul.mubr.f32.gmra.mrb[66].mxu0 %v342_v62 }
 0x1e0   :  { %1554 = vmatprep.mubr.f32.mxu0 %v352_v5 }
 0x1e1   :  { %v5722_v21 = vpop.f32.mrb[88].mxu1 }
 0x1e2   :  { %v3170_v26 = vpop.f32.mrb[89].mxu1 }
 0x1e3   :  { %1555 = vmatmul.mubr.f32.gmra.mrb[68].mxu0 %v351_v11 }
 0x1e4   :  { %3132 = vmatprep.mubr.msk.f32.mxu0 %vm4010_vm0, %v6502_v31 }
 0x1e5   :  { %v5730_v33 = vpop.f32.mrb[90].mxu1 }
 0x1e6   :  { %v3173_v47 = vpop.f32.mrb[91].mxu1 }
 0x1e7   :  { %3133 = vmatmul.mubr.msk.f32.vlgmr.msra.gmra.mrb[0].mxu0 %vm494_vm1, %v47_v19 }
 0x1e8   :  { %3135 = vmatprep.mubr.msk.f32.mxu0 %vm4010_vm0, %v6502_v31 }
 0x1e9   :  { %v5738_v57 = vpop.f32.mrb[92].mxu1 }
 0x1ea   :  { %v3176_v46 = vpop.f32.mrb[93].mxu1 }
 0x1eb   :  { %3136 = vmatmul.mubr.msk.f32.gmra.mrb[2].mxu0 %vm494_vm1, %v56_v29 }
 0x1ec   :  { %3138 = vmatprep.mubr.msk.f32.mxu0 %vm4010_vm0, %v6502_v31 }
 0x1ed   :  { %v5741_v49 = vpop.f32.mrb[94].mxu1 }
 0x1ee   :  { %v3179_v50 = vpop.f32.mrb[95].mxu1 }
 0x1ef   :  { %3139 = vmatmul.mubr.msk.f32.gmra.mrb[4].mxu0 %vm494_vm1, %v65_v40 }
 0x1f1   :  { %v5743_v24 = vpop.f32.mrb[96].mxu1 }
 0x1f2   :  { %v3182_v58 = vpop.f32.mrb[97].mxu1 }
 0x1f5   :  { %v5745_v62 = vpop.f32.mrb[98].mxu1 }
 0x1f6   :  { %v3185_v5 = vpop.f32.mrb[99].mxu1 }
 0x1f9   :  { %v5747_v8 = vpop.f32.mrb[100].mxu1 }
 0x1fa   :  { %v3188_v11 = vpop.f32.mrb[101].mxu1 }
 0x1fd   :  { %v5749_v18 = vpop.f32.mrb[102].mxu1 }
 0x1fe   :  { %v3191_v19 = vpop.f32.mrb[103].mxu1 }
 0x201   :  { %v5751_v26 = vpop.f32.mrb[104].mxu1 }
 0x202   :  { %v3194_v29 = vpop.f32.mrb[105].mxu1 }
 0x205   :  { %v5753_v47 = vpop.f32.mrb[106].mxu1 }
 0x206   :  { %v3197_v40 = vpop.f32.mrb[107].mxu1 }
 0x209   :  { %v5755_v46 = vpop.f32.mrb[108].mxu1 }
 0x20a   :  { %v3200_v50 = vpop.f32.mrb[109].mxu1 }
 0x20d   :  { %v5757_v31 = vpop.f32.mrb[110].mxu1 }
 0x20e   :  { %v3203_v58 = vpop.f32.mrb[111].mxu1 }
 0x211   :  { %v5759_v3 = vpop.f32.mrb[112].mxu1 }
 0x212   :  { %v3206_v5 = vpop.f32.mrb[113].mxu1 }
 0x215   :  { %v5761_v36 = vpop.f32.mrb[114].mxu1 }
 0x216   :  { %v3209_v11 = vpop.f32.mrb[115].mxu1 }
 0x219   :  { %v5763_v32 = vpop.f32.mrb[116].mxu1 }
 0x21a   :  { %v3212_v19 = vpop.f32.mrb[117].mxu1 }
 0x21d   :  { %v5765_v27 = vpop.f32.mrb[118].mxu1 }
 0x21e   :  { %v3215_v29 = vpop.f32.mrb[119].mxu1 }
 0x221   :  { %v5767_v52 = vpop.f32.mrb[120].mxu1 }
 0x222   :  { %6516 = vst [vmem:[#allocation15_spill] sm:$0xff] %v5767_v52  ;;  %v3218_v40 = vpop.f32.mrb[121].mxu1 }
 0x225   :  { %v5769_v45 = vpop.f32.mrb[122].mxu1 }
 0x226   :  { %v3221_v50 = vpop.f32.mrb[123].mxu1 }
 0x229   :  { %v5771_v39 = vpop.f32.mrb[124].mxu1 }
 0x22a   :  { %6517 = vst [vmem:[#allocation16_spill] sm:$0xff] %v5771_v39  ;;  %v3224_v58 = vpop.f32.mrb[125].mxu1 }
 0x22d   :  { %v5773_v37 = vpop.f32.mrb[126].mxu1 }
 0x22e   :  { %6518 = vst [vmem:[#allocation17_spill] sm:$0xff] %v5773_v37  ;;  %v3227_v5 = vpop.f32.mrb[127].mxu1 }
 0x231   :  { %v5775_v23 = vpop.f32.mrb[128].mxu1 }
 0x232   :  { %6519 = vst [vmem:[#allocation18_spill] sm:$0xff] %v5775_v23  ;;  %v3230_v11 = vpop.f32.mrb[129].mxu1 }
 0x235   :  { %v5777_v17 = vpop.f32.mrb[130].mxu1 }
 0x236   :  { %6520 = vst [vmem:[#allocation19_spill] sm:$0xff] %v5777_v17  ;;  %v3233_v19 = vpop.f32.mrb[131].mxu1 }
 0x239   :  { %v5780_v40 = vpop.f32.mrb[132].mxu1 }
 0x23a   :  { %v1401_v10 = vpop.f32.mrb[6].mxu0  ;;  %v3236_v39 = vpop.f32.mrb[133].mxu1 }
 0x23b   :  { %v3693_v29 = vadd.f32 %v1401_v10, %v5450_v41  ;;  %v1403_v52 = vpop.f32.mrb[7].mxu0 }
 0x23d   :  { %v5783_v50 = vadd.f32 %v3693_v29, %v5651_v61 }
 0x23e   :  { %v1406_v58 = vpop.f32.mrb[8].mxu0 }
 0x23f   :  { %v3695_v37 = vadd.f32 %v1406_v58, %v5461_v4  ;;  %v1408_v5 = vpop.f32.mrb[9].mxu0 }
 0x241   :  { %v5787_v23 = vadd.f32 %v3695_v37, %v5659_v6 }
 0x242   :  { %v1411_v11 = vpop.f32.mrb[10].mxu0 }
 0x243   :  { %v3697_v19 = vadd.f32 %v1411_v11, %v5467_v48  ;;  %v1413_v17 = vpop.f32.mrb[11].mxu0 }
 0x245   :  { %v5791_v41 = vadd.f32 %v3697_v19, %v5667_v15 }
 0x246   :  { %v1416_v10 = vpop.f32.mrb[12].mxu0 }
 0x247   :  { %v3520_v52 = vpack.c.bf16 %v5791_v41, %v5787_v23  ;;  %v3699_v39 = vadd.f32 %v1416_v10, %v5476_v51  ;;  %v1418_v61 = vpop.f32.mrb[13].mxu0  ;;  %v1800_v23 = vld [vmem:[%s6491_s1] sm:$0xff]  ;;  %v1803_v41 = vld [vmem:[%s6491_s1 + $0x18] sm:$0xff] }
 0x249   :  { %v5797_v4 = vadd.f32 %v3699_v39, %v5675_v25 }
 0x24a   :  { %v1421_v29 = vpop.f32.mrb[14].mxu0 }
 0x24b   :  { %v3701_v37 = vadd.f32 %v1421_v29, %v5478_v53  ;;  %v1423_v6 = vpop.f32.mrb[15].mxu0 }
 0x24d   :  { %v5801_v48 = vadd.f32 %v3701_v37, %v5683_v34 }
 0x24e   :  { %v1426_v17 = vpop.f32.mrb[16].mxu0 }
 0x24f   :  { %v3524_v15 = vpack.c.bf16 %v5801_v48, %v5797_v4  ;;  %v3703_v58 = vadd.f32 %v1426_v17, %v5486_v56  ;;  %v1428_v5 = vpop.f32.mrb[17].mxu0  ;;  %v1806_v4 = vld [vmem:[%s6491_s1 + $0x30] sm:$0xff] }
 0x250   :  { %v1810_v48 = vld [vmem:[%s6491_s1 + $0x50] sm:$0xf] }
 0x251   :  { %v5807_v51 = vadd.f32 %v3703_v58, %v5691_v43 }
 0x252   :  { %v1431_v11 = vpop.f32.mrb[18].mxu0 }
 0x253   :  { %v3705_v25 = vadd.f32 %v1431_v11, %v5488_v59  ;;  %v1433_v19 = vpop.f32.mrb[19].mxu0 }
 0x255   :  { %v5811_v53 = vadd.f32 %v3705_v25, %v5699_v55 }
 0x256   :  { %v1436_v10 = vpop.f32.mrb[20].mxu0 }
 0x257   :  { %v3528_v34 = vpack.c.bf16 %v5811_v53, %v5807_v51  ;;  %v3707_v39 = vadd.f32 %v1436_v10, %v5496_v63  ;;  %v1438_v61 = vpop.f32.mrb[21].mxu0  ;;  %v1801_v63 = vld [vmem:[%s6491_s1 + $0x8] sm:$0xff]  ;;  %v1802_v51 = vld [vmem:[%s6491_s1 + $0x10] sm:$0xff] }
 0x258   :  { %1889 = vmatprep.mubr.f32.mxu1 %v1801_v63  ;;  %v1805_v53 = vld [vmem:[%s6491_s1 + $0x28] sm:$0xff] }
 0x259   :  { %v5817_v56 = vadd.f32 %v3707_v39, %v5707_v0 }
 0x25a   :  { %v1441_v29 = vpop.f32.mrb[22].mxu0 }
 0x25b   :  { %v3709_v43 = vadd.f32 %v1441_v29, %v5498_v1  ;;  %v1443_v37 = vpop.f32.mrb[23].mxu0 }
 0x25d   :  { %v5821_v59 = vadd.f32 %v3709_v43, %v5715_v12 }
 0x25e   :  { %v1446_v6 = vpop.f32.mrb[24].mxu0 }
 0x25f   :  { %v3532_v55 = vpack.c.bf16 %v5821_v59, %v5817_v56  ;;  %v3711_v17 = vadd.f32 %v1446_v6, %v5506_v7  ;;  %v1448_v58 = vpop.f32.mrb[25].mxu0  ;;  %v1811_v56 = vld [vmem:[%s6491_s1 + $0x58] sm:$0xf]  ;;  %v2178_v59 = vld [vmem:[%s6493_s3 + $0x80] sm:$0xff] }
 0x261   :  { %v5830_v0 = vadd.f32 %v3711_v17, %v5722_v21 }
 0x262   :  { %v1451_v1 = vpop.f32.mrb[26].mxu0 }
 0x263   :  { %v3713_v5 = vadd.f32 %v1451_v1, %v5508_v9  ;;  %v1453_v12 = vpop.f32.mrb[27].mxu0 }
 0x265   :  { %v5834_v11 = vadd.f32 %v3713_v5, %v5730_v33 }
 0x266   :  { %v1456_v25 = vpop.f32.mrb[28].mxu0 }
 0x267   :  { %v3536_v7 = vpack.c.bf16 %v5834_v11, %v5830_v0  ;;  %v3715_v19 = vadd.f32 %v1456_v25, %v5516_v13  ;;  %v1458_v10 = vpop.f32.mrb[29].mxu0  ;;  %v2162_v0 = vld [vmem:[%s6493_s3] sm:$0xff] }
 0x269   :  { %v5840_v39 = vadd.f32 %v3715_v19, %v5738_v57 }
 0x26a   :  { %v1461_v21 = vpop.f32.mrb[30].mxu0 }
 0x26b   :  { %v3717_v61 = vadd.f32 %v1461_v21, %v5518_v16  ;;  %v1463_v29 = vpop.f32.mrb[31].mxu0 }
 0x26d   :  { %v5844_v9 = vadd.f32 %v3717_v61, %v5741_v49 }
 0x26e   :  { %v1466_v43 = vpop.f32.mrb[32].mxu0 }
 0x26f   :  { %v3540_v33 = vpack.c.bf16 %v5844_v9, %v5840_v39  ;;  %v3719_v37 = vadd.f32 %v1466_v43, %v5526_v20  ;;  %v1468_v6 = vpop.f32.mrb[33].mxu0  ;;  %v2180_v39 = vld [vmem:[%s6493_s3 + $0x90] sm:$0xff]  ;;  %v2181_v9 = vld [vmem:[%s6493_s3 + $0x98] sm:$0xff] }
 0x271   :  { %v3720_v13 = vadd.f32 %v3719_v37, %v5743_v24 }
 0x272   :  { %v1471_v17 = vpop.f32.mrb[34].mxu0 }
 0x273   :  { %v3721_v57 = vadd.f32 %v1471_v17, %v5528_v22  ;;  %v1473_v58 = vpop.f32.mrb[35].mxu0 }
 0x275   :  { %v3722_v63 = vadd.f32 %v3721_v57, %v5745_v62 }
 0x276   :  { %v1476_v16 = vpop.f32.mrb[36].mxu0 }
 0x277   :  { %v3510_v1 = vpack.c.bf16 %v3722_v63, %v3720_v13  ;;  %v3723_v49 = vadd.f32 %v1476_v16, %v5536_v28  ;;  %v1478_v5 = vpop.f32.mrb[37].mxu0 }
 0x279   :  { %v5854_v12 = vadd.f32 %v3723_v49, %v5747_v8  ;;  %3511 = vmatprep.subr.bf16.mxu1 %v3510_v1 }
 0x27a   :  { %v1481_v25 = vpop.f32.mrb[38].mxu0 }
 0x27b   :  { %v3725_v20 = vadd.f32 %v1481_v25, %v5538_v30  ;;  %v1483_v19 = vpop.f32.mrb[39].mxu0 }
 0x27d   :  { %v5858_v24 = vadd.f32 %v3725_v20, %v5749_v18 }
 0x27e   :  { %v1486_v22 = vpop.f32.mrb[40].mxu0 }
 0x27f   :  { %v3514_v62 = vpack.c.bf16 %v5858_v24, %v5854_v12  ;;  %v3727_v10 = vadd.f32 %v1486_v22, %v5546_v35  ;;  %v1488_v21 = vpop.f32.mrb[41].mxu0  ;;  %v3550_v12 = vpack.c.bf16 %v2181_v9, %v2180_v39  ;;  %v2164_v24 = vld [vmem:[%s6493_s3 + $0x10] sm:$0xff] }
 0x281   :  { %v5864_v28 = vadd.f32 %v3727_v10, %v5751_v26 }
 0x282   :  { %v1491_v8 = vpop.f32.mrb[42].mxu0 }
 0x283   :  { %v3729_v61 = vadd.f32 %v1491_v8, %v5548_v38  ;;  %v1493_v29 = vpop.f32.mrb[43].mxu0 }
 0x285   :  { %v5868_v30 = vadd.f32 %v3729_v61, %v5753_v47 }
 0x286   :  { %v1496_v43 = vpop.f32.mrb[44].mxu0 }
 0x287   :  { %v3518_v18 = vpack.c.bf16 %v5868_v30, %v5864_v28  ;;  %v3731_v37 = vadd.f32 %v1496_v43, %v5556_v42  ;;  %v1498_v6 = vpop.f32.mrb[45].mxu0  ;;  %v2182_v28 = vld [vmem:[%s6493_s3 + $0xa0] sm:$0xff]  ;;  %v2183_v30 = vld [vmem:[%s6493_s3 + $0xa8] sm:$0xff] }
 0x289   :  { %v5874_v35 = vadd.f32 %v3731_v37, %v5755_v46  ;;  %v6523_v37 = vld [vmem:[#allocation9_spill] sm:$0xff] }
 0x28a   :  { %v1501_v13 = vpop.f32.mrb[46].mxu0 }
 0x28b   :  { %v3733_v26 = vadd.f32 %v1501_v13, %v5558_v44  ;;  %v1503_v17 = vpop.f32.mrb[47].mxu0 }
 0x28c   :  { %v6524_v17 = vld [vmem:[#allocation10_spill] sm:$0xff] }
 0x28d   :  { %v5878_v38 = vadd.f32 %v3733_v26, %v5757_v31 }
 0x28e   :  { %v1506_v57 = vpop.f32.mrb[48].mxu0 }
 0x28f   :  { %v3522_v47 = vpack.c.bf16 %v5878_v38, %v5874_v35  ;;  %v3735_v58 = vadd.f32 %v1506_v57, %v5566_v14  ;;  %v1508_v63 = vpop.f32.mrb[49].mxu0  ;;  %v3554_v35 = vpack.c.bf16 %v2183_v30, %v2182_v28  ;;  %v2166_v38 = vld [vmem:[%s6493_s3 + $0x20] sm:$0xff] }
 0x291   :  { %v5884_v42 = vadd.f32 %v3735_v58, %v5759_v3  ;;  %v6525_v58 = vld [vmem:[#allocation16_spill] sm:$0xff] }
 0x292   :  { %v1511_v16 = vpop.f32.mrb[50].mxu0 }
 0x293   :  { %v3737_v46 = vadd.f32 %v1511_v16, %v5571_v54  ;;  %v1513_v1 = vpop.f32.mrb[51].mxu0  ;;  %v6521_v54 = vld [vmem:[#allocation8_spill] sm:$0xff] }
 0x294   :  { %v6527_v1 = vld [vmem:[#allocation17_spill] sm:$0xff] }
 0x295   :  { %v3738_v44 = vadd.f32 %v3737_v46, %v5761_v36  ;;  %v6522_v36 = vld [vmem:[#allocation15_spill] sm:$0xff] }
 0x296   :  { %v1516_v49 = vpop.f32.mrb[52].mxu0 }
 0x297   :  { %v3526_v31 = vpack.c.bf16 %v3738_v44, %v5884_v42  ;;  %v3739_v5 = vadd.f32 %v1516_v49, %v5579_v60  ;;  %v1518_v25 = vpop.f32.mrb[53].mxu0  ;;  %v6526_v42 = vld [vmem:[#allocation11_spill] sm:$0xff] }
 0x298   :  { %v6528_v25 = vld [vmem:[#allocation12_spill] sm:$0xff] }
 0x299   :  { %v3740_v20 = vadd.f32 %v3739_v5, %v5763_v32 }
 0x29a   :  { %v1521_v19 = vpop.f32.mrb[54].mxu0 }
 0x29b   :  { %v3741_v14 = vadd.f32 %v1521_v19, %v5587_v2  ;;  %v1523_v22 = vpop.f32.mrb[55].mxu0 }
 0x29d   :  { %v3742_v3 = vadd.f32 %v3741_v14, %v5765_v27  ;;  %v6529_v14 = vld [vmem:[#allocation18_spill] sm:$0xff] }
 0x29e   :  { %v1526_v10 = vpop.f32.mrb[56].mxu0 }
 0x29f   :  { %v3530_v21 = vpack.c.bf16 %v3742_v3, %v3740_v20  ;;  %v3743_v8 = vadd.f32 %v1526_v10, %v6521_v54  ;;  %v1528_v61 = vpop.f32.mrb[57].mxu0  ;;  %v6530_v3 = vld [vmem:[#allocation13_spill] sm:$0xff] }
 0x2a1   :  { %v3744_v29 = vadd.f32 %v3743_v8, %v6522_v36  ;;  %v6531_v8 = vld [vmem:[#allocation19_spill] sm:$0xff] }
 0x2a2   :  { %v1531_v43 = vpop.f32.mrb[58].mxu0 }
 0x2a3   :  { %v3745_v6 = vadd.f32 %v1531_v43, %v6523_v37  ;;  %v1533_v60 = vpop.f32.mrb[59].mxu0  ;;  %v6532_v43 = vld [vmem:[#allocation14_spill] sm:$0xff] }
 0x2a5   :  { %v3746_v13 = vadd.f32 %v3745_v6, %v5769_v45 }
 0x2a6   :  { %v1536_v32 = vpop.f32.mrb[60].mxu0 }
 0x2a7   :  { %v3534_v26 = vpack.c.bf16 %v3746_v13, %v3744_v29  ;;  %v3747_v2 = vadd.f32 %v1536_v32, %v6524_v17  ;;  %v1538_v57 = vpop.f32.mrb[61].mxu0  ;;  %v6533_v32 = vld [vmem:[#allocation5_spill] sm:$0xff] }
 0x2a9   :  { %v3748_v27 = vadd.f32 %v3747_v2, %v6525_v58  ;;  %v6534_v58 = vld [vmem:[#allocation6_spill] sm:$0xff] }
 0x2aa   :  { %v1541_v63 = vpop.f32.mrb[62].mxu0 }
 0x2ab   :  { %v3749_v16 = vadd.f32 %v1541_v63, %v6526_v42  ;;  %v1543_v46 = vpop.f32.mrb[63].mxu0 }
 0x2ac   :  { %v6535_v46 = vld [vmem:[#allocation7_spill] sm:$0xff] }
 0x2ad   :  { %v3750_v44 = vadd.f32 %v3749_v16, %v6527_v1 }
 0x2ae   :  { %v1546_v49 = vpop.f32.mrb[64].mxu0 }
 0x2af   :  { %v3538_v5 = vpack.c.bf16 %v3750_v44, %v3748_v27  ;;  %v3751_v20 = vadd.f32 %v1546_v49, %v6528_v25  ;;  %v1548_v19 = vpop.f32.mrb[65].mxu0  ;;  %v2169_v25 = vld [vmem:[%s6493_s3 + $0x38] sm:$0xff] }
 0x2b0   :  { %v2187_v19 = vld [vmem:[%s6493_s3 + $0xc8] sm:$0xff] }
 0x2b1   :  { %v3752_v45 = vadd.f32 %v3751_v20, %v6529_v14  ;;  %v2186_v20 = vld [vmem:[%s6493_s3 + $0xc0] sm:$0xff] }
 0x2b2   :  { %v1551_v22 = vpop.f32.mrb[66].mxu0 }
 0x2b3   :  { %v3753_v10 = vadd.f32 %v1551_v22, %v6530_v3  ;;  %v1553_v54 = vpop.f32.mrb[67].mxu0  ;;  %v2170_v22 = vld [vmem:[%s6493_s3 + $0x40] sm:$0xff]  ;;  %v2171_v3 = vld [vmem:[%s6493_s3 + $0x48] sm:$0xff] }
 0x2b4   :  { %v2189_v54 = vld [vmem:[%s6493_s3 + $0xd8] sm:$0xff] }
 0x2b5   :  { %v3754_v61 = vadd.f32 %v3753_v10, %v6531_v8  ;;  %v2188_v10 = vld [vmem:[%s6493_s3 + $0xd0] sm:$0xff]  ;;  %v3564_v8 = vpack.c.bf16 %v2171_v3, %v2170_v22  ;;  %v2177_v22 = vld [vmem:[%s6493_s3 + $0x78] sm:$0xff]  ;;  %v2210_v3 = vld [vmem:[%s6493_s3 + $0x180] sm:$0xff] }
 0x2b6   :  { %v1556_v36 = vpop.f32.mrb[68].mxu0 }
 0x2b7   :  { %v3542_v29 = vpack.c.bf16 %v3754_v61, %v3752_v45  ;;  %v3755_v37 = vadd.f32 %v1556_v36, %v6532_v43  ;;  %v1558_v6 = vpop.f32.mrb[69].mxu0  ;;  %v3562_v45 = vpack.c.bf16 %v2187_v19, %v2186_v20  ;;  %v3566_v61 = vpack.c.bf16 %v2189_v54, %v2188_v10  ;;  %v2172_v36 = vld [vmem:[%s6493_s3 + $0x50] sm:$0xff]  ;;  %v2211_v10 = vld [vmem:[%s6493_s3 + $0x188] sm:$0xff] }
 0x2b9   :  { %v3756_v60 = vadd.f32 %v3755_v37, %v5780_v40 }
 0x2ba   :  { %v1626_v13 = vpop.f32.mrb[0].mxu0 }
 0x2bb   :  { %v3690_v17 = vadd.f32 %v1626_v13, %v6533_v32  ;;  %v3134_v2 = vpop.f32.mrb[1].mxu0 }
 0x2be   :  { %v1631_v57 = vpop.f32.mrb[2].mxu0 }
 0x2bf   :  { %v3691_v27 = vadd.f32 %v1631_v57, %v6534_v58  ;;  %v3137_v63 = vpop.f32.mrb[3].mxu0 }
 0x2c1   :  { %v3512_v42 = vpack.c.bf16 %v3691_v27, %v3690_v17 }
 0x2c2   :  { %v1636_v16 = vpop.f32.mrb[4].mxu0 }
 0x2c3   :  { %v3692_v1 = vadd.f32 %v1636_v16, %v6535_v46  ;;  %v3140_v44 = vpop.f32.mrb[5].mxu0  ;;  %3513 = vmatpush3.bf16.msra.mxu1 %v3512_v42  ;;  %v2190_v16 = vld [vmem:[%s6493_s3 + $0xe0] sm:$0xff]  ;;  %v2191_v46 = vld [vmem:[%s6493_s3 + $0xe8] sm:$0xff] }
 0x2c4   :  { %3515 = vmatprep.subr.bf16.mxu1 %v3514_v62  ;;  %v2165_v62 = vld [vmem:[%s6493_s3 + $0x18] sm:$0xff] }
 0x2c5   :  { %v3516_v40 = vpack.c.bf16 %v5783_v50, %v3692_v1  ;;  %v1804_v50 = vld [vmem:[%s6491_s1 + $0x20] sm:$0xff] }
 0x2c6   :  { %v2174_v1 = vld [vmem:[%s6493_s3 + $0x60] sm:$0xff] }
 0x2c7   :  { %3517 = vmatpush3.bf16.msra.mxu1 %v3516_v40  ;;  %v3570_v40 = vpack.c.bf16 %v2191_v46, %v2190_v16 }
 0x2c8   :  { %3519 = vmatprep.subr.bf16.mxu1 %v3518_v18  ;;  %v3552_v18 = vpack.c.bf16 %v2165_v62, %v2164_v24 }
 0x2cb   :  { %3521 = vmatpush3.bf16.msra.mxu1 %v3520_v52  ;;  %v1807_v52 = vld [vmem:[%s6491_s1 + $0x38] sm:$0xff] }
 0x2cc   :  { %3523 = vmatprep.subr.bf16.mxu1 %v3522_v47  ;;  %v2167_v47 = vld [vmem:[%s6493_s3 + $0x28] sm:$0xff] }
 0x2cf   :  { %3525 = vmatpush3.bf16.msra.mxu1 %v3524_v15  ;;  %v1809_v15 = vld [vmem:[%s6491_s1 + $0x48] sm:$0xf] }
 0x2d0   :  { %3527 = vmatprep.subr.bf16.mxu1 %v3526_v31  ;;  %v2184_v31 = vld [vmem:[%s6493_s3 + $0xb0] sm:$0xff] }
 0x2d3   :  { %3529 = vmatpush3.bf16.msra.mxu1 %v3528_v34  ;;  %v1808_v34 = vld [vmem:[%s6491_s1 + $0x40] sm:$0xff] }
 0x2d4   :  { %3531 = vmatprep.subr.bf16.mxu1 %v3530_v21  ;;  %v2185_v21 = vld [vmem:[%s6493_s3 + $0xb8] sm:$0xff] }
 0x2d5   :  { %v3558_v49 = vpack.c.bf16 %v2185_v21, %v2184_v31 }
 0x2d7   :  { %3533 = vmatpush3.bf16.msra.mxu1 %v3532_v55  ;;  %v2179_v55 = vld [vmem:[%s6493_s3 + $0x88] sm:$0xff] }
 0x2d8   :  { %3535 = vmatprep.subr.bf16.mxu1 %v3534_v26  ;;  %v3546_v11 = vpack.c.bf16 %v2179_v55, %v2178_v59  ;;  %v3556_v26 = vpack.c.bf16 %v2167_v47, %v2166_v38 }
 0x2db   :  { %3537 = vmatpush3.bf16.msra.mxu1 %v3536_v7  ;;  %v2163_v7 = vld [vmem:[%s6493_s3 + $0x8] sm:$0xff] }
 0x2dc   :  { %3539 = vmatprep.subr.bf16.mxu1 %v3538_v5  ;;  %v2168_v5 = vld [vmem:[%s6493_s3 + $0x30] sm:$0xff] }
 0x2dd   :  { %v3560_v14 = vpack.c.bf16 %v2169_v25, %v2168_v5  ;;  %v2193_v5 = vld [vmem:[%s6493_s3 + $0xf8] sm:$0xff]  ;;  %v2176_v25 = vld [vmem:[%s6493_s3 + $0x70] sm:$0xff] }
 0x2df   :  { %3541 = vmatpush3.bf16.msra.mxu1 %v3540_v33  ;;  %v3548_v33 = vpack.c.bf16 %v2163_v7, %v2162_v0 }
 0x2e0   :  { %3543 = vmatprep.subr.bf16.mxu1 %v3542_v29 }
 0x2e2   :  { %1890 = vmatmul.mubr.f32.vlgmr.msra.gmra.mrb[134].mxu1 %v1800_v23  ;;  %v2175_v23 = vld [vmem:[%s6493_s3 + $0x68] sm:$0xff] }
 0x2e3   :  { %3545 = vmatpush3.bf16.msra.mxu1 %v3542_v29  ;;  %1894 = vmatprep.mubr.f32.mxu1 %v1804_v50  ;;  %v2173_v29 = vld [vmem:[%s6493_s3 + $0x58] sm:$0xff] }
 0x2e4   :  { %3241 = vmatprep.subr.mxu1 %v3756_v60  ;;  %v3568_v43 = vpack.c.bf16 %v2173_v29, %v2172_v36  ;;  %v3576_v29 = vpack.c.bf16 %v2177_v22, %v2176_v25 }
 0x2e6   :  { %1895 = vmatmul.mubr.f32.gmra.mrb[136].mxu1 %v1803_v41 }
 0x2e7   :  { %3242 = vmatpush3.msra.mxu1 %v3756_v60  ;;  %1899 = vmatprep.mubr.f32.mxu1 %v1807_v52  ;;  %v3572_v52 = vpack.c.bf16 %v2175_v23, %v2174_v1 }
 0x2e8   :  { %3547 = vmatprep.subr.bf16.mxu1 %v3546_v11 }
 0x2ea   :  { %1900 = vmatmul.mubr.f32.gmra.mrb[138].mxu1 %v1806_v4 }
 0x2eb   :  { %1904 = vmatprep.mubr.f32.mxu1 %v1810_v48 }
 0x2ee   :  { %1905 = vmatmul.mubr.f32.gmra.mrb[140].mxu1 %v1809_v15 }
 0x2ef   :  { %3243 = vmatprep.mubr.msk.f32.mxu1 %vm1812_vm2, %v1802_v51 }
 0x2f2   :  { %3244 = vmatmul.mubr.msk.f32.vlgmr.msra.gmra.mrb[142].mxu1 %vm1812_vm2, %v1805_v53 }
 0x2f3   :  { %3246 = vmatprep.mubr.msk.f32.mxu1 %vm1812_vm2, %v1808_v34  ;;  %3549 = vmatpush3.bf16.msra.mxu1 %v3548_v33 }
 0x2f4   :  { %3551 = vmatprep.subr.bf16.mxu1 %v3550_v12 }
 0x2f6   :  { %3247 = vmatmul.mubr.msk.f32.gmra.mrb[144].mxu1 %vm1812_vm2, %v1811_v56 }
 0x2f7   :  { %3553 = vmatpush3.bf16.msra.mxu1 %v3552_v18 }
 0x2f8   :  { %3555 = vmatprep.subr.bf16.mxu1 %v3554_v35 }
 0x2fb   :  { %3557 = vmatpush3.bf16.msra.mxu1 %v3556_v26 }
 0x2fc   :  { %3559 = vmatprep.subr.bf16.mxu1 %v3558_v49  ;;  %v2192_v49 = vld [vmem:[%s6493_s3 + $0xf0] sm:$0xff] }
 0x2ff   :  { %3561 = vmatpush3.bf16.msra.mxu1 %v3560_v14 }
 0x300   :  { %3563 = vmatprep.subr.bf16.mxu1 %v3562_v45 }
 0x303   :  { %3565 = vmatpush3.bf16.msra.mxu1 %v3564_v8 }
 0x304   :  { %3567 = vmatprep.subr.bf16.mxu1 %v3566_v61  ;;  %v3574_v61 = vpack.c.bf16 %v2193_v5, %v2192_v49 }
 0x307   :  { %3569 = vmatpush3.bf16.msra.mxu1 %v3568_v43  ;;  %v3578_v43 = vpack.c.bf16 %v2211_v10, %v2210_v3  ;;  %v2214_v3 = vld [vmem:[%s6493_s3 + $0x1a0] sm:$0xff]  ;;  %v2215_v10 = vld [vmem:[%s6493_s3 + $0x1a8] sm:$0xff] }
 0x308   :  { %3571 = vmatprep.subr.bf16.mxu1 %v3570_v40 }
 0x30b   :  { %3573 = vmatpush3.bf16.msra.mxu1 %v3572_v52 }
 0x30c   :  { %3575 = vmatprep.subr.bf16.mxu1 %v3574_v61 }
 0x30f   :  { %3577 = vmatpush3.bf16.msra.mxu1 %v3576_v29 }
 0x310   :  { %3579 = vmatprep.subr.bf16.mxu1 %v3578_v43 }
 0x3b5   :  { %v2953_v37 = vpop.f32.mrb[134].mxu1 }
 0x3b6   :  { %v2954_v6 = vpop.f32.mrb[135].mxu1 }
 0x3b7   :  { %v2955_v60 = vadd.f32 %v2954_v6, %v2953_v37 }
 0x3b9   :  { %v2956_v13 = vpop.f32.mrb[136].mxu1 }
 0x3ba   :  { %v2957_v32 = vpop.f32.mrb[137].mxu1 }
 0x3bb   :  { %v2958_v17 = vadd.f32 %v2957_v32, %v2956_v13 }
 0x3bd   :  { %v2959_v2 = vpop.f32.mrb[138].mxu1 }
 0x3be   :  { %v2960_v57 = vpop.f32.mrb[139].mxu1 }
 0x3bf   :  { %v2961_v58 = vadd.f32 %v2960_v57, %v2959_v2 }
 0x3c1   :  { %v2962_v27 = vpop.f32.mrb[140].mxu1 }
 0x3c2   :  { %v2963_v63 = vpop.f32.mrb[141].mxu1 }
 0x3c3   :  { %v2964_v42 = vadd.f32 %v2963_v63, %v2962_v27 }
 0x3c5   :  { %v3245_v44 = vpop.f32.mrb[142].mxu1 }
 0x3c6   :  { %v6055_v50 = vadd.f32 %v3245_v44, %v2958_v17  ;;  %v1976_v41 = vpop.f32.mrb[143].mxu1 }
 0x3c7   :  { %v6057_v4 = vadd.f32 %v2955_v60, %v1976_v41 }
 0x3c8   :  { %v6060_v48 = vrot.slane %v6055_v50, 3  ;;  %v2056_v15 = vrot.slane %v6055_v50, 7  ;;  %v1999_v51 = vrot.slane %v6055_v50, 1  ;;  %v2035_v53 = vrot.slane %v6055_v50, 5 }
 0x3c9   :  { %v3248_v34 = vpop.f32.mrb[144].mxu1  ;;  %v2018_v56 = vrot.slane %v6057_v4, 3  ;;  %v2055_v59 = vrot.slane %v6057_v4, 7  ;;  %v1998_v55 = vrot.slane %v6057_v4, 1  ;;  %v2034_v0 = vrot.slane %v6057_v4, 5 }
 0x3ca   :  { %v6069_v11 = vadd.f32 %v3248_v34, %v2964_v42  ;;  %v1986_v7 = vpop.f32.mrb[145].mxu1  ;;  %v2008_v39 = vrot.slane %v6057_v4, 2  ;;  %v2009_v9 = vrot.slane %v6055_v50, 2  ;;  %v2044_v35 = vrot.slane %v6057_v4, 6 }
 0x3cb   :  { %v6073_v33 = vadd.f32 %v2961_v58, %v1986_v7  ;;  %v2020_v12 = vsel %vm2017_vm3, %v2018_v56, %v6060_v48  ;;  %v2057_v24 = vsel %vm2054_vm4, %v2055_v59, %v2056_v15  ;;  %v2000_v62 = vsel %vm1997_vm5, %v1998_v55, %v1999_v51  ;;  %v2194_v56 = vld [vmem:[%s6493_s3 + $0x100] sm:$0xff]  ;;  %v2212_v7 = vld [vmem:[%s6493_s3 + $0x190] sm:$0xff] }
 0x3cc   :  { %v3921_v28 = vpack.i.bf16 %v2020_v12, %v2057_v24  ;;  %v2036_v30 = vsel %vm2033_vm6, %v2034_v0, %v2035_v53  ;;  %v2045_v38 = vrot.slane %v6055_v50, 6  ;;  %v2010_v31 = vsel %vm2007_vm7, %v2008_v39, %v2009_v9  ;;  %v2195_v0 = vld [vmem:[%s6493_s3 + $0x108] sm:$0xff]  ;;  %v2213_v39 = vld [vmem:[%s6493_s3 + $0x198] sm:$0xff] }
 0x3cd   :  { %v3911_v18 = vpack.i.bf16 %v2000_v62, %v2036_v30  ;;  %v2058_v47 = vrot.slane %v6073_v33, 7  ;;  %v3926_v26 = vpack.i.bf16 %v1999_v51, %v2035_v53  ;;  %v2074_v14 = vrot.slane %v6073_v33, 2 }
 0x3ce   :  { %3922 = vrot.lane.b32.xlu1 %v3921_v28, %s4012_s13  ;;  %v2046_v21 = vsel %vm2043_vm8, %v2044_v35, %v2045_v38  ;;  %v2102_v45 = vrot.slane %v6073_v33, 6  ;;  %v2066_v54 = vrot.slane %v6073_v33, 1  ;;  %v2094_v8 = vrot.slane %v6073_v33, 5 }
 0x3cf   :  { %3912 = vrot.lane.b32.xlu0 %v3911_v18, %s4013_s14  ;;  %v3916_v20 = vpack.i.bf16 %v2010_v31, %v2046_v21  ;;  %v2059_v19 = vsel %vm2054_vm4, %v2056_v15, %v2058_v47  ;;  %v3931_v37 = vpack.i.bf16 %v2009_v9, %v2045_v38  ;;  %v2075_v6 = vsel %vm2007_vm7, %v2009_v9, %v2074_v14 }
 0x3d0   :  { %v3936_v36 = vpack.i.bf16 %v6060_v48, %v2059_v19  ;;  %v2103_v60 = vsel %vm2043_vm8, %v2045_v38, %v2102_v45  ;;  %v2067_v13 = vsel %vm1997_vm5, %v1999_v51, %v2066_v54  ;;  %v2095_v32 = vsel %vm2033_vm6, %v2035_v53, %v2094_v8 }
 0x3d1   :  { %v3946_v17 = vpack.i.bf16 %v2075_v6, %v2103_v60  ;;  %v2111_v2 = vrot.slane %v6069_v11, 7  ;;  %v3941_v57 = vpack.i.bf16 %v2067_v13, %v2095_v32  ;;  %v2082_v58 = vrot.slane %v6073_v33, 3 }
 0x3d2   :  { %3927 = vrot.lane.b32.xlu1 %v3926_v26, %s4013_s14  ;;  %v3951_v27 = vpack.i.bf16 %v2066_v54, %v2094_v8  ;;  %v3956_v46 = vpack.i.bf16 %v2074_v14, %v2102_v45  ;;  %v2142_v1 = vrot.slane %v6069_v11, 1  ;;  %v2150_v40 = vrot.slane %v6069_v11, 2 }
 0x3d3   :  { %3917 = vrot.lane.b32.xlu0 %v3916_v20, %s4014_s26  ;;  %v2112_v63 = vsel %vm2054_vm4, %v2058_v47, %v2111_v2  ;;  %v2083_v42 = vsel %vm2017_vm3, %v6060_v48, %v2082_v58  ;;  %v2028_v48 = vrot.slane %v6057_v4, 4  ;;  %v2029_v15 = vrot.slane %v6055_v50, 4  ;;  %v2198_v2 = vld [vmem:[%s6493_s3 + $0x120] sm:$0xff] }
 0x3d4   :  { %v3961_v16 = vpack.i.bf16 %v2082_v58, %v2112_v63  ;;  %v2143_v44 = vsel %vm1997_vm5, %v2066_v54, %v2142_v1  ;;  %v2151_v23 = vsel %vm2007_vm7, %v2074_v14, %v2150_v40  ;;  %v3580_v21 = vpack.c.bf16 %v2195_v0, %v2194_v56  ;;  %v2197_v14 = vld [vmem:[%s6493_s3 + $0x118] sm:$0xff]  ;;  %v2220_v56 = vld [vmem:[%s6493_s3 + $0x1d0] sm:$0xff] }
 0x3d5   :  { %v2030_v55 = vsel %vm2027_vm9, %v2028_v48, %v2029_v15  ;;  %v3582_v26 = vpack.c.bf16 %v2213_v39, %v2212_v7  ;;  %v2090_v61 = vrot.slane %v6073_v33, 4  ;;  %v2217_v63 = vld [vmem:[%s6493_s3 + $0x1b8] sm:$0xff]  ;;  %v2219_v48 = vld [vmem:[%s6493_s3 + $0x1c8] sm:$0xff]  ;;  %v2204_v7 = vld [vmem:[%s6493_s3 + $0x150] sm:$0xff] }
 0x3d6   :  { %3937 = vrot.lane.b32.xlu1 %v3936_v36, %s4012_s13  ;;  %v2205_v39 = vld [vmem:[%s6493_s3 + $0x158] sm:$0xff] }
 0x3d7   :  { %3932 = vrot.lane.b32.xlu0 %v3931_v37, %s4014_s26 }
 0x3da   :  { %3947 = vrot.lane.b32.xlu1 %v3946_v17, %s4014_s26  ;;  %v3586_v17 = vpack.c.bf16 %v2215_v10, %v2214_v3 }
 0x3db   :  { %3942 = vrot.lane.b32.xlu0 %v3941_v57, %s4013_s14  ;;  %v2199_v57 = vld [vmem:[%s6493_s3 + $0x128] sm:$0xff] }
 0x3de   :  { %3952 = vrot.lane.b32.xlu1 %v3951_v27, %s4013_s14  ;;  %v2216_v27 = vld [vmem:[%s6493_s3 + $0x1b0] sm:$0xff] }
 0x3df   :  { %2084 = vrot.lane.b32.xlu0 %v2083_v42, %s4012_s13  ;;  %v2091_v42 = vsel %vm2027_vm9, %v2029_v15, %v2090_v61 }
 0x3e2   :  { %3962 = vrot.lane.b32.xlu1 %v3961_v16, %s4012_s13  ;;  %v3588_v16 = vpack.c.bf16 %v2199_v57, %v2198_v2 }
 0x3e3   :  { %3957 = vrot.lane.b32.xlu0 %v3956_v46, %s4014_s26 }
 0x3e6   :  { %2146 = vrot.lane.b32.xlu1 %v2142_v1, %s4013_s14 }
 0x3e7   :  { %2144 = vrot.lane.b32.xlu0 %v2143_v44, %s4013_s14  ;;  %v3590_v44 = vpack.c.bf16 %v2217_v63, %v2216_v27  ;;  %v2231_v27 = vld [vmem:[%s6493_s3 + $0x228] sm:$0xff] }
 0x3ea   :  { %2154 = vrot.lane.b32.xlu1 %v2150_v40, %s4014_s26  ;;  %v2200_v40 = vld [vmem:[%s6493_s3 + $0x130] sm:$0xff] }
 0x3eb   :  { %2152 = vrot.lane.b32.xlu0 %v2151_v23, %s4014_s26  ;;  %v2201_v23 = vld [vmem:[%s6493_s3 + $0x138] sm:$0xff] }
 0x440   :  { %v3923_v41 = vpop.permute.xlu1 %3922 }
 0x441   :  { %v3913_v52 = vpop.permute.xlu0 %3912  ;;  %v3925_v9 = vunpack.i.h.bf16 %v3923_v41  ;;  %v3924_v12 = vunpack.i.l.bf16 %v3923_v41 }
 0x442   :  { %v3915_v51 = vunpack.i.h.bf16 %v3913_v52  ;;  %v3914_v53 = vunpack.i.l.bf16 %v3913_v52  ;;  %v2218_v52 = vld [vmem:[%s6493_s3 + $0x1c0] sm:$0xff] }
 0x444   :  { %v3928_v34 = vpop.permute.xlu1 %3927  ;;  %v2117_v28 = vsel %vm2116_vm10, %v6057_v4, %v3915_v51  ;;  %v2124_v35 = vsel %vm2116_vm10, %v2030_v55, %v3914_v53  ;;  %v2196_v4 = vld [vmem:[%s6493_s3 + $0x110] sm:$0xff]  ;;  %v3594_v51 = vpack.c.bf16 %v2219_v48, %v2218_v52  ;;  %v2202_v53 = vld [vmem:[%s6493_s3 + $0x140] sm:$0xff]  ;;  %v2235_v52 = vld [vmem:[%s6493_s3 + $0x248] sm:$0xff] }
 0x445   :  { %v3918_v59 = vpop.permute.xlu0 %3917  ;;  %v3930_v30 = vunpack.i.h.bf16 %v3928_v34  ;;  %v3929_v18 = vunpack.i.l.bf16 %v3928_v34  ;;  %v3584_v37 = vpack.c.bf16 %v2197_v14, %v2196_v4  ;;  %v2203_v34 = vld [vmem:[%s6493_s3 + $0x148] sm:$0xff] }
 0x446   :  { %v3920_v24 = vunpack.i.h.bf16 %v3918_v59  ;;  %v3919_v62 = vunpack.i.l.bf16 %v3918_v59  ;;  %v2221_v59 = vld [vmem:[%s6493_s3 + $0x1d8] sm:$0xff]  ;;  %v3596_v55 = vpack.c.bf16 %v2203_v34, %v2202_v53 }
 0x447   :  { %v2125_v54 = vsel %vm2116_vm10, %v2029_v15, %v3929_v18  ;;  %v2118_v8 = vsel %vm2116_vm10, %v6055_v50, %v3930_v30  ;;  %v3592_v15 = vpack.c.bf16 %v2201_v23, %v2200_v40  ;;  %v3598_v0 = vpack.c.bf16 %v2221_v59, %v2220_v56  ;;  %v2206_v30 = vld [vmem:[%s6493_s3 + $0x160] sm:$0xff]  ;;  %v2207_v18 = vld [vmem:[%s6493_s3 + $0x168] sm:$0xff]  ;;  %v2233_v40 = vld [vmem:[%s6493_s3 + $0x238] sm:$0xff] }
 0x448   :  { %v2120_v38 = vsel %vm2119_vm11, %v2117_v28, %v3920_v24  ;;  %v3938_v47 = vpop.permute.xlu1 %3937  ;;  %v2126_v31 = vsel %vm2119_vm11, %v2124_v35, %v3919_v62  ;;  %v2223_v24 = vld [vmem:[%s6493_s3 + $0x1e8] sm:$0xff]  ;;  %v3600_v62 = vpack.c.bf16 %v2205_v39, %v2204_v7  ;;  %v2516_v39 = vld [vmem:[%s6495_s5] sm:$0xff] }
 0x449   :  { %v3940_v49 = vunpack.i.h.bf16 %v3938_v47  ;;  %v3939_v5 = vunpack.i.l.bf16 %v3938_v47  ;;  %v3933_v25 = vpop.permute.xlu0 %3932  ;;  %v2128_v20 = vsel %vm494_vm1, %v2126_v31, %v3924_v12  ;;  %v2122_v19 = vsel %vm494_vm1, %v2120_v38, %v3925_v9  ;;  %v2222_v12 = vld [vmem:[%s6493_s3 + $0x1e0] sm:$0xff]  ;;  %v2224_v38 = vld [vmem:[%s6493_s3 + $0x1f0] sm:$0xff]  ;;  %v2225_v47 = vld [vmem:[%s6493_s3 + $0x1f8] sm:$0xff] }
 0x44a   :  { %v3935_v45 = vunpack.i.h.bf16 %v3933_v25  ;;  %v3934_v22 = vunpack.i.l.bf16 %v3933_v25  ;;  %2315 = vmatprep.mubr.f32.mxu1 %v2128_v20  ;;  %v3602_v28 = vpack.c.bf16 %v2223_v24, %v2222_v12  ;;  %v2209_v25 = vld [vmem:[%s6493_s3 + $0x178] sm:$0xff]  ;;  %v2226_v20 = vld [vmem:[%s6493_s3 + $0x200] sm:$0xff]  ;;  %v2533_v7 = vld [vmem:[%s6495_s5 + $0x88] sm:$0xff] }
 0x44b   :  { %2316 = vmatmul.mubr.f32.vlgmr.msra.gmra.mrb[146].mxu1 %v2122_v19  ;;  %v2227_v19 = vld [vmem:[%s6493_s3 + $0x208] sm:$0xff]  ;;  %v2534_v12 = vld [vmem:[%s6495_s5 + $0x90] sm:$0xff]  ;;  %v2535_v24 = vld [vmem:[%s6495_s5 + $0x98] sm:$0xff] }
 0x44c   :  { %3581 = vmatpush3.bf16.msra.mxu1 %v3580_v21  ;;  %v6176_v36 = vpop.permute.xlu1 %3947  ;;  %v2127_v29 = vsel %vm2119_vm11, %v2125_v54, %v3934_v22  ;;  %v2121_v43 = vsel %vm2119_vm11, %v2118_v8, %v3935_v45  ;;  %v3610_v54 = vpack.c.bf16 %v2227_v19, %v2226_v20  ;;  %v2522_v19 = vld [vmem:[%s6495_s5 + $0x30] sm:$0xff] }
 0x44d   :  { %v3949_v6 = vunpack.i.l.bf16 %v6176_v36  ;;  %v6181_v60 = vpop.permute.xlu0 %3942  ;;  %v2129_v13 = vsel %vm494_vm1, %v2127_v29, %v3939_v5  ;;  %3583 = vmatprep.subr.bf16.mxu1 %v3582_v26  ;;  %v2123_v32 = vsel %vm494_vm1, %v2121_v43, %v3940_v49  ;;  %v3604_v26 = vpack.c.bf16 %v2207_v18, %v2206_v30  ;;  %v2228_v43 = vld [vmem:[%s6493_s3 + $0x210] sm:$0xff]  ;;  %v2519_v18 = vld [vmem:[%s6495_s5 + $0x18] sm:$0xff] }
 0x44e   :  { %v3944_v58 = vunpack.i.l.bf16 %v6181_v60  ;;  %2320 = vmatprep.mubr.f32.mxu1 %v2129_v13  ;;  %v3945_v31 = vunpack.i.h.bf16 %v6181_v60  ;;  %v3606_v49 = vpack.c.bf16 %v2225_v47, %v2224_v38  ;;  %v3950_v4 = vunpack.i.h.bf16 %v6176_v36  ;;  %v2229_v36 = vld [vmem:[%s6493_s3 + $0x218] sm:$0xff]  ;;  %v2518_v30 = vld [vmem:[%s6495_s5 + $0x10] sm:$0xff]  ;;  %v2537_v38 = vld [vmem:[%s6495_s5 + $0xa8] sm:$0xff] }
 0x44f   :  { %2321 = vmatmul.mubr.f32.gmra.mrb[148].mxu1 %v2123_v32  ;;  %v3614_v32 = vpack.c.bf16 %v2229_v36, %v2228_v43  ;;  %v3640_v47 = vpack.c.bf16 %v2519_v18, %v2518_v30 }
 0x450   :  { %3585 = vmatpush3.bf16.msra.mxu1 %v3584_v37  ;;  %v2136_v46 = vsel %vm2116_vm10, %v2091_v42, %v3944_v58  ;;  %v3953_v35 = vpop.permute.xlu1 %3952  ;;  %v2130_v45 = vsel %vm2116_vm10, %v6055_v50, %v3945_v31  ;;  %v2230_v58 = vld [vmem:[%s6493_s3 + $0x220] sm:$0xff] }
 0x451   :  { %3587 = vmatprep.subr.bf16.mxu1 %v3586_v17  ;;  %v2138_v1 = vsel %vm2119_vm11, %v2136_v46, %v3949_v6  ;;  %v2085_v9 = vpop.permute.xlu0 %2084  ;;  %v3954_v14 = vunpack.i.l.bf16 %v3953_v35  ;;  %v3955_v8 = vunpack.i.h.bf16 %v3953_v35  ;;  %v2132_v37 = vsel %vm2119_vm11, %v2130_v45, %v3950_v4  ;;  %v2536_v35 = vld [vmem:[%s6495_s5 + $0xa0] sm:$0xff]  ;;  %v2523_v4 = vld [vmem:[%s6495_s5 + $0x38] sm:$0xff]  ;;  %v2541_v45 = vld [vmem:[%s6495_s5 + $0xc8] sm:$0xff] }
 0x452   :  { %v2140_v41 = vsel %vm494_vm1, %v2138_v1, %v3939_v5  ;;  %v2208_v5 = vld [vmem:[%s6493_s3 + $0x170] sm:$0xff]  ;;  %v2134_v17 = vsel %vm494_vm1, %v2132_v37, %v2085_v9  ;;  %v3642_v31 = vpack.c.bf16 %v2537_v38, %v2536_v35 }
 0x453   :  { %2390 = vmatprep.mubr.f32.mxu1 %v2140_v41  ;;  %v3608_v10 = vpack.c.bf16 %v2209_v25, %v2208_v5  ;;  %v2137_v60 = vsel %vm2116_vm10, %v2090_v61, %v3954_v14  ;;  %v2131_v57 = vsel %vm2116_vm10, %v6073_v33, %v3955_v8  ;;  %v2539_v5 = vld [vmem:[%s6495_s5 + $0xb8] sm:$0xff]  ;;  %v2540_v14 = vld [vmem:[%s6495_s5 + $0xc0] sm:$0xff]  ;;  %v2542_v8 = vld [vmem:[%s6495_s5 + $0xd0] sm:$0xff] }
 0x454   :  { %3589 = vmatpush3.bf16.msra.mxu1 %v3588_v16  ;;  %v3963_v22 = vpop.permute.xlu1 %3962  ;;  %v3618_v16 = vpack.c.bf16 %v2231_v27, %v2230_v58  ;;  %v2526_v37 = vld [vmem:[%s6495_s5 + $0x50] sm:$0xff]  ;;  %v2867_v58 = vld [vmem:[%s6494_s4] ss:$0 sm:$0xff] }
 0x455   :  { %3591 = vmatprep.subr.bf16.mxu1 %v3590_v44  ;;  %v3958_v21 = vpop.permute.xlu0 %3957  ;;  %v3964_v6 = vunpack.i.l.bf16 %v3963_v22  ;;  %v3965_v2 = vunpack.i.h.bf16 %v3963_v22  ;;  %v2232_v44 = vld [vmem:[%s6493_s3 + $0x230] sm:$0xff]  ;;  %v3648_v22 = vpack.c.bf16 %v2523_v4, %v2522_v19 }
 0x456   :  { %v3959_v3 = vunpack.i.l.bf16 %v3958_v21  ;;  %v3960_v50 = vunpack.i.h.bf16 %v3958_v21  ;;  %v3622_v41 = vpack.c.bf16 %v2233_v40, %v2232_v44  ;;  %v2520_v21 = vld [vmem:[%s6495_s5 + $0x20] sm:$0xff] }
 0x458   :  { %3593 = vmatpush3.bf16.msra.mxu1 %v3592_v15  ;;  %v2139_v13 = vsel %vm2119_vm11, %v2137_v60, %v3959_v3  ;;  %v2133_v63 = vsel %vm2119_vm11, %v2131_v57, %v3960_v50  ;;  %v2236_v15 = vld [vmem:[%s6493_s3 + $0x250] sm:$0xff]  ;;  %v2147_v53 = vpop.permute.xlu1 %2146  ;;  %v3650_v3 = vpack.c.bf16 %v2541_v45, %v2540_v14 }
 0x459   :  { %3595 = vmatprep.subr.bf16.mxu1 %v3594_v51  ;;  %v2145_v29 = vpop.permute.xlu0 %2144  ;;  %v2141_v61 = vsel %vm494_vm1, %v2139_v13, %v3964_v6  ;;  %v2135_v1 = vsel %vm494_vm1, %v2133_v63, %v3965_v2  ;;  %v2237_v51 = vld [vmem:[%s6493_s3 + $0x258] sm:$0xff]  ;;  %v2159_v59 = vsel %vm2116_vm10, %v6069_v11, %v2147_v53  ;;  %v2517_v11 = vld [vmem:[%s6495_s5 + $0x8] sm:$0xff] }
 0x45a   :  { %v2158_v46 = vsel %vm2116_vm10, %v6073_v33, %v2145_v29  ;;  %v2234_v33 = vld [vmem:[%s6493_s3 + $0x240] sm:$0xff]  ;;  %v3630_v34 = vpack.c.bf16 %v2237_v51, %v2236_v15  ;;  %v2543_v29 = vld [vmem:[%s6495_s5 + $0xd8] sm:$0xff]  ;;  %v2529_v51 = vld [vmem:[%s6495_s5 + $0x68] sm:$0xff] }
 0x45b   :  { %v3626_v48 = vpack.c.bf16 %v2235_v52, %v2234_v33  ;;  %v3654_v36 = vpack.c.bf16 %v2543_v29, %v2542_v8  ;;  %v2527_v6 = vld [vmem:[%s6495_s5 + $0x58] sm:$0xff]  ;;  %v2545_v33 = vld [vmem:[%s6495_s5 + $0xe8] sm:$0xff]  ;;  %v2528_v52 = vld [vmem:[%s6495_s5 + $0x60] sm:$0xff] }
 0x45c   :  { %3597 = vmatpush3.bf16.msra.mxu1 %v3596_v55  ;;  %v2155_v56 = vpop.permute.xlu1 %2154  ;;  %v3656_v50 = vpack.c.bf16 %v2527_v6, %v2526_v37 }
 0x45d   :  { %3599 = vmatprep.subr.bf16.mxu1 %v3598_v0  ;;  %v2153_v42 = vpop.permute.xlu0 %2152  ;;  %v2161_v55 = vsel %vm2119_vm11, %v2159_v59, %v2155_v56  ;;  %v2532_v0 = vld [vmem:[%s6495_s5 + $0x80] sm:$0xff]  ;;  %v3660_v56 = vpack.c.bf16 %v2529_v51, %v2528_v52  ;;  %v2546_v59 = vld [vmem:[%s6495_s5 + $0xf0] sm:$0xff] }
 0x45e   :  { %v2160_v23 = vsel %vm2119_vm11, %v2158_v46, %v2153_v42  ;;  %v3634_v9 = vpack.c.bf16 %v2533_v7, %v2532_v0  ;;  %v2530_v0 = vld [vmem:[%s6495_s5 + $0x70] sm:$0xff] }
 0x460   :  { %3601 = vmatpush3.bf16.msra.mxu1 %v3600_v62  ;;  %v3636_v62 = vpack.c.bf16 %v2517_v11, %v2516_v39 }
 0x461   :  { %3603 = vmatprep.subr.bf16.mxu1 %v3602_v28  ;;  %v3638_v28 = vpack.c.bf16 %v2535_v24, %v2534_v12 }
 0x464   :  { %3605 = vmatpush3.bf16.msra.mxu1 %v3604_v26  ;;  %v2521_v26 = vld [vmem:[%s6495_s5 + $0x28] sm:$0xff] }
 0x465   :  { %3607 = vmatprep.subr.bf16.mxu1 %v3606_v49  ;;  %v2538_v49 = vld [vmem:[%s6495_s5 + $0xb0] sm:$0xff]  ;;  %v3644_v25 = vpack.c.bf16 %v2521_v26, %v2520_v21 }
 0x466   :  { %v3646_v20 = vpack.c.bf16 %v2539_v5, %v2538_v49  ;;  %v6536_v49 = vmov 0.0|0.0  }
 0x468   :  { %3609 = vmatpush3.bf16.msra.mxu1 %v3608_v10  ;;  %v2524_v10 = vld [vmem:[%s6495_s5 + $0x40] sm:$0xff] }
 0x469   :  { %3611 = vmatprep.subr.bf16.mxu1 %v3610_v54 }
 0x46b   :  { %2391 = vmatmul.mubr.f32.vlgmr.msra.gmra.mrb[150].mxu1 %v2134_v17 }
 0x46c   :  { %2395 = vmatprep.mubr.f32.mxu1 %v2141_v61  ;;  %3613 = vmatpush3.bf16.msra.mxu1 %v3610_v54  ;;  %v2525_v54 = vld [vmem:[%s6495_s5 + $0x48] sm:$0xff] }
 0x46d   :  { %3615 = vmatprep.subr.bf16.mxu1 %v3614_v32  ;;  %v3652_v43 = vpack.c.bf16 %v2525_v54, %v2524_v10 }
 0x46f   :  { %2396 = vmatmul.mubr.f32.gmra.mrb[152].mxu1 %v2135_v1 }
 0x470   :  { %3617 = vmatpush3.bf16.msra.mxu1 %v3614_v32  ;;  %3273 = vmatprep.mubr.msk.f32.mxu1 %vm494_vm1, %v2160_v23 }
 0x471   :  { %3619 = vmatprep.subr.bf16.mxu1 %v3618_v16 }
 0x474   :  { %3621 = vmatpush3.bf16.msra.mxu1 %v3618_v16 }
 0x475   :  { %3623 = vmatprep.subr.bf16.mxu1 %v3622_v41 }
 0x478   :  { %3625 = vmatpush3.bf16.msra.mxu1 %v3622_v41  ;;  %v2544_v41 = vld [vmem:[%s6495_s5 + $0xe0] sm:$0xff] }
 0x479   :  { %3627 = vmatprep.subr.bf16.mxu1 %v3626_v48  ;;  %v3658_v15 = vpack.c.bf16 %v2545_v33, %v2544_v41 }
 0x47c   :  { %3629 = vmatpush3.bf16.msra.mxu1 %v3626_v48 }
 0x47d   :  { %3631 = vmatprep.subr.bf16.mxu1 %v3630_v34 }
 0x480   :  { %3633 = vmatpush3.bf16.msra.mxu1 %v3630_v34 }
 0x481   :  { %3635 = vmatprep.subr.bf16.mxu1 %v3634_v9  ;;  %v2531_v9 = vld [vmem:[%s6495_s5 + $0x78] sm:$0xff] }
 0x482   :  { %v3664_v12 = vpack.c.bf16 %v2531_v9, %v2530_v0 }
 0x483   :  { %3274 = vmatmul.mubr.msk.f32.vlgmr.msra.gmra.mrb[154].mxu1 %vm494_vm1, %v2161_v55  ;;  %v2547_v55 = vld [vmem:[%s6495_s5 + $0xf8] sm:$0xff] }
 0x484   :  { %3637 = vmatpush3.bf16.msra.mxu1 %v3636_v62  ;;  %v3662_v39 = vpack.c.bf16 %v2547_v55, %v2546_v59  ;;  %v2722_v59 = vld [vmem:[%s6499_s9 + $0x10] sm:$0xf]  ;;  %v2644_v55 = vld [vmem:[%s6498_s8] sm:$0x1]  ;;  %s4016_s8 = smov [#allocation2]  }
 0x485   :  { %3639 = vmatprep.subr.bf16.mxu1 %v3638_v28 }
 0x488   :  { %3641 = vmatpush3.bf16.msra.mxu1 %v3640_v47 }
 0x489   :  { %3643 = vmatprep.subr.bf16.mxu1 %v3642_v31 }
 0x48c   :  { %3645 = vmatpush3.bf16.msra.mxu1 %v3644_v25 }
 0x48d   :  { %3647 = vmatprep.subr.bf16.mxu1 %v3646_v20 }
 0x490   :  { %3649 = vmatpush3.bf16.msra.mxu1 %v3648_v22 }
 0x491   :  { %3651 = vmatprep.subr.bf16.mxu1 %v3650_v3 }
 0x494   :  { %3653 = vmatpush3.bf16.msra.mxu1 %v3652_v43 }
 0x495   :  { %3655 = vmatprep.subr.bf16.mxu1 %v3654_v36 }
 0x498   :  { %3657 = vmatpush3.bf16.msra.mxu1 %v3656_v50 }
 0x499   :  { %3659 = vmatprep.subr.bf16.mxu1 %v3658_v15 }
 0x49c   :  { %3661 = vmatpush3.bf16.msra.mxu1 %v3660_v56 }
 0x49d   :  { %3663 = vmatprep.subr.bf16.mxu1 %v3662_v39 }
 0x4a0   :  { %3665 = vmatpush3.bf16.msra.mxu1 %v3664_v12 }
 0x4a1   :  { %3666 = vmatprep.subr.bf16.mxu1 %v6536_v49 }
 0x51e   :  { %v3004_v60 = vpop.f32.mrb[146].mxu1 }
 0x51f   :  { %v3005_v13 = vpop.f32.mrb[147].mxu1 }
 0x520   :  { %v3006_v32 = vadd.f32 %v3005_v13, %v3004_v60  ;;  %v6537_v13 = vmov 0.0  }
 0x522   :  { %v3007_v17 = vpop.f32.mrb[148].mxu1  ;;  %v2318_v63 = vadd.f32 %v3006_v32, %v2867_v58  ;;  %v2638_v32 = vld [vmem:[%s6497_s7] sm:$0xff] }
 0x523   :  { %v3008_v2 = vpop.f32.mrb[149].mxu1 }
 0x524   :  { %v3009_v57 = vadd.f32 %v3008_v2, %v3007_v17  ;;  %v2639_v17 = vld [vmem:[%s6497_s7 + $0x8] sm:$0xff]  ;;  %v2640_v2 = vld [vmem:[%s6497_s7 + $0x10] sm:$0xff] }
 0x526   :  { %v2323_v44 = vadd.f32 %v3009_v57, %v2867_v58  ;;  %v3667_v57 = vpack.c.bf16 %v2639_v17, %v2638_v32  ;;  %v2641_v58 = vld [vmem:[%s6497_s7 + $0x18] sm:$0xff] }
 0x53e   :  { %v3042_v27 = vpop.f32.mrb[150].mxu1 }
 0x53f   :  { %v3043_v61 = vpop.f32.mrb[151].mxu1 }
 0x540   :  { %v3044_v42 = vadd.f32 %v3043_v61, %v3042_v27  ;;  %v3670_v27 = vpack.c.bf16 %v2641_v58, %v2640_v2  ;;  %v2642_v61 = vld [vmem:[%s6497_s7 + $0x20] sm:$0xff] }
 0x542   :  { %v3045_v16 = vpop.f32.mrb[152].mxu1  ;;  %v2393_v46 = vadd.f32 %v3044_v42, %v2318_v63  ;;  %v2643_v63 = vld [vmem:[%s6497_s7 + $0x28] sm:$0xff]  ;;  %s4015_s7 = smov 16  }
 0x543   :  { %v3046_v1 = vpop.f32.mrb[153].mxu1  ;;  %v3673_v42 = vpack.c.bf16 %v2643_v63, %v2642_v61 }
 0x544   :  { %v3047_v40 = vadd.f32 %v3046_v1, %v3045_v16 }
 0x546   :  { %v2398_v23 = vadd.f32 %v3047_v40, %v2323_v44 }
 0x556   :  { %v3275_v48 = vpop.f32.mrb[154].mxu1 }
 0x557   :  { %v2473_v53 = vadd.f32 %v3275_v48, %v2398_v23  ;;  %v2467_v34 = vpop.f32.mrb[155].mxu1 }
 0x558   :  { %v2468_v7 = vadd.f32 %v2467_v34, %v2393_v46  ;;  %v2870_v46 = vld [vmem:[%s6496_s6] ss:$0 sm:$0xff]  ;;  %v2721_v34 = vld [vmem:[%s6499_s9 + $0x8] sm:$0xff] }
 0x559   :  { %v2477_v11 = vmax.f32 %v2473_v53, 0.0  ;;  %v2720_v53 = vld [vmem:[%s6499_s9] sm:$0xff]  ;;  %s2820_s9 = sshll.u32 %s4016_s8, 4  ;;  %s2821_s9 = int_to_ptr.vmem [resolvable:$true] %s2820_s9 }
 0x55a   :  { %v2476_v24 = vmax.f32 %v2468_v7, 0.0  ;;  %v3676_v56 = vpack.c.bf16 %v2721_v34, %v2720_v53  ;;  %s3989_s18 = scalar_lea.vmem %s2821_s9, 32  ;;  %p3990_p1 = scmp.lt.s32.totalorder %s2821_s9, %s2821_s9 }
 0x55b   :  { %v2499_v62 = vrot.slane %v2477_v11, 6  ;;  %v2505_v28 = vrot.slane %v2477_v11, 7  ;;  %v2723_v11 = vld [vmem:[%s6500_s10] sm:$0x1]  ;;  %s3985_s10 = scalar_lea.vmem %s2821_s9, 16 }
 0x55c   :  { %v2479_v30 = vrot.slane %v2476_v24, 1  ;;  %v2493_v18 = vrot.slane %v2476_v24, 5  ;;  %v2483_v35 = vrot.slane %v2476_v24, 2  ;;  %v2498_v38 = vrot.slane %v2476_v24, 6  ;;  %p3986_p0 = scmp.ne.s32.totalorder %s2821_s9, %s3985_s10  ;;  %p3991_p2 = scmp.lt.s32.totalorder %s3989_s18, %s3985_s10 }
 0x55d   :  { %v2504_v47 = vrot.slane %v2476_v24, 7  ;;  %v2487_v26 = vrot.slane %v2476_v24, 3  ;;  %v2491_v22 = vrot.slane %v2476_v24, 4 }
 0x55e   :  { %v3966_v31 = vpack.i.bf16 %v2479_v30, %v2493_v18  ;;  %v2500_v21 = vsel %vm2043_vm8, %v2498_v38, %v2499_v62  ;;  %p3992_p3 = por %p3991_p2, %p3990_p1 }
 0x55f   :  { %v3971_v5 = vpack.i.bf16 %v2483_v35, %v2500_v21  ;;  %v2506_v25 = vsel %vm2054_vm4, %v2504_v47, %v2505_v28 }
 0x560   :  { %3967 = vrot.lane.b32.xlu0 %v3966_v31, %s4013_s14  ;;  %v3976_v20 = vpack.i.bf16 %v2487_v26, %v2506_v25  ;;  %p3993_p4 = pnand %p3992_p3, %p3986_p0 }
 0x561   :  { %3972 = vrot.lane.b32.xlu1 %v3971_v5, %s4014_s26 }
 0x564   :  { %3977 = vrot.lane.b32.xlu0 %v3976_v20, %s4012_s13 }
 0x5d2   :  { %v3968_v19 = vpop.permute.xlu0 %3967 }
 0x5d3   :  { %v3970_v4 = vunpack.i.h.bf16 %v3968_v19  ;;  %v3969_v14 = vunpack.i.l.bf16 %v3968_v19  ;;  %v3973_v45 = vpop.permute.xlu1 %3972 }
 0x5d4   :  { %v3975_v3 = vunpack.i.h.bf16 %v3973_v45  ;;  %v3974_v10 = vunpack.i.l.bf16 %v3973_v45 }
 0x5d5   :  { %v2510_v54 = vsel %vm2116_vm10, %v2476_v24, %v3970_v4  ;;  %v2513_v8 = vsel %vm2116_vm10, %v2491_v22, %v3969_v14 }
 0x5d6   :  { %v3978_v29 = vpop.permute.xlu0 %3977  ;;  %v2514_v37 = vsel %vm2119_vm11, %v2513_v8, %v3974_v10  ;;  %v2511_v6 = vsel %vm2119_vm11, %v2510_v54, %v3975_v3 }
 0x5d7   :  { %v3980_v43 = vunpack.i.h.bf16 %v3978_v29  ;;  %v3979_v36 = vunpack.i.l.bf16 %v3978_v29 }
 0x5d9   :  { %v2515_v50 = vsel %vm494_vm1, %v2514_v37, %v3979_v36  ;;  %v2512_v60 = vsel %vm494_vm1, %v2511_v6, %v3980_v43 }
 0x5da   :  { %2619 = vmatprep.mubr.f32.mxu1 %v2515_v50 }
 0x5db   :  { %2620 = vmatmul.mubr.f32.vlgmr.msra.gmra.mrb[156].mxu1 %v2512_v60 }
 0x5dc   :  { %3288 = vmatprep.mubr.msk.f32.mxu1 %vm4010_vm0, %v6537_v13  ;;  %3668 = vmatpush3.bf16.msra.mxu1 %v3667_v57 }
 0x5dd   :  { %3669 = vmatprep.subr.bf16.mxu1 %v6536_v49 }
 0x5e0   :  { %3671 = vmatpush3.bf16.msra.mxu1 %v3670_v27 }
 0x5e1   :  { %3672 = vmatprep.subr.bf16.mxu1 %v6536_v49 }
 0x5e4   :  { %3674 = vmatpush3.bf16.msra.mxu1 %v3673_v42 }
 0x5e5   :  { %3675 = vmatprep.subr.bf16.mxu1 %v6536_v49 }
 0x6ae   :  { %v3094_v16 = vpop.f32.mrb[156].mxu1 }
 0x6af   :  { %v3095_v1 = vpop.f32.mrb[157].mxu1 }
 0x6b0   :  { %v3096_v44 = vadd.f32 %v3095_v1, %v3094_v16 }
 0x6b2   :  { %v2622_v40 = vadd.f32 %v3096_v44, %v2870_v46 }
 0x6b4   :  { %v2625_v23 = vmax.f32 %v2622_v40, 0.0 }
 0x6b6   :  { %v2631_v41 = vrot.slane %v2625_v23, 2  ;;  %v2627_v33 = vrot.slane %v2625_v23, 1 }
 0x6b8   :  { %2632 = vrot.lane.b32.xlu0 %v2631_v41, %s4013_s14  ;;  %2628 = vrot.lane.b32.xlu1 %v2627_v33, %s4015_s7 }
 0x72a   :  { %v2633_v52 = vpop.permute.xlu0 %2632  ;;  %v2629_v48 = vpop.permute.xlu1 %2628 }
 0x72b   :  { %v2636_v15 = vsel %vm2635_vm12, %v2625_v23, %v2629_v48 }
 0x72c   :  { %v2637_v51 = vsel %vm2116_vm10, %v2636_v15, %v2633_v52 }
 0x72d   :  { %3289 = vmatmul.mubr.msk.f32.vlgmr.msra.gmra.mrb[158].mxu1 %vm2645_vm13, %v2637_v51 }
 0x72e   :  { %3297 = vmatprep.mubr.msk.f32.mxu1 %vm4010_vm0, %v6537_v13  ;;  %3677 = vmatpush3.bf16.msra.mxu1 %v3676_v56 }
 0x72f   :  { %3295 = vmatprep.subr.mxu1 %v6537_v13 }
 0x732   :  { %3296 = vmatpush3.msk.msra.mxu1 %vm2027_vm9, %v2722_v59 }
 0x800   :  { %v2715_v0 = vpop.f32.mrb[158].mxu1 }
 0x801   :  { %v2716_v7 = vadd.f32 %v2715_v0, %v2644_v55  ;;  %v3290_v39 = vpop.f32.mrb[159].mxu1 }
 0x803   :  { %v2719_v9 = vmax.f32 %v2716_v7, 0.0 }
 0x805   :  { %3298 = vmatmul.mubr.msk.f32.vlgmr.msra.gmra.mrb[160].mxu1 %vm2724_vm14, %v2719_v9 }
 0x8d8   :  { %v2797_v12 = vpop.f32.mrb[160].mxu1 }
 0x8d9   :  { %v2798_v24 = vadd.f32 %v2797_v12, %v2723_v11  ;;  %v3299_v62 = vpop.f32.mrb[161].mxu1 }
 0x8db   :  { %v2802_v28 = vsel %vm2801_vm15, %v2798_v24, -inf }
 0x8dc   :  { %2803 = vmax.xlane.f32.xlu1 %v2802_v28 }
 0x969   :  { %v2804_v30 = vpop.xlane.xlu1 %2803 }
 0x96a   :  { %v2805_v18 = vsub.f32 %v2798_v24, %v2804_v30 }
 0x96c   :  { %v2806_v35 = vmul.f32 1.442695, %v2805_v18 }
 0x96e   :  { %3981 = vpow2.f32 %v2806_v35 }
 0x978   :  { %v3982_v38 = vpop.eup %3981 }
 0x979   :  { %v2808_v47 = vsel %vm2801_vm15, %v3982_v38, 0.0 }
 0x97a   :  { %2809 = vadd.xlane.f32.xlu0 %v2808_v47 }
 0xa07   :  { %v2810_v31 = vpop.xlane.xlu0 %2809 }
 0xa08   :  { %3983 = vrcp.f32 %v2810_v31 }
 0xa12   :  { %v3984_v21 = vpop.eup %3983 }
 0xa13   :  { %v2812_v26 = vmul.f32 %v3984_v21, %v3982_v38 }
 0xa15   :  { %2813 = vst.msk [vmem:[#allocation2] sm:$0x1] %vm2801_vm15, %v2812_v26 }
 0xa16   :  { %3996 = shalt.err (!%p3993_p4)
}
 0xa17   :  { %s3997_s13 = scalar_lea.hbm %s6501_s11, 16 }
 0xa18   :  { %p3998_p5 = scmp.ne.s32.totalorder %s6501_s11, %s3997_s13  ;;  %p4001_p6 = scmp.lt.u32.totalorder %s3997_s13, %s6501_s11 }
 0xa1a   :  { %p4003_p7 = pnand %p4001_p6, %p3998_p5 }
 0xa1c   :  { %4006 = shalt.err (!%p4003_p7)
}
 0xa1d   :  { %2823 = dma.vmem_to_hbm [thread:$0]  %s2821_s9, 16, %s6501_s11, [#allocation3]  }
 0xa1e   :  { %4007 = dma.done.wait [#allocation3], 16  }
 0xa1f   :  { %4008 = vsyncadd [#allocation3], 4294967280 }
 0xa20   :  { %2827 = vsyncpa [#allocation3], 1 }

</bundles_post_ra>
